<compile_context>
chip_gen: v7x
topology: tpu7x:2x2x1
jax: 0.10.0
libtpu: 0.0.40
codegen_flags: <defaults>
</compile_context>

<pallas_src>
import jax
import jax.numpy as jnp
from jax.experimental import pallas as pl
from jax.experimental.pallas import tpu as pltpu


# ----------------------------- fused Pallas kernel ---------------------------

def fused_cnn_kernel(x_ref,
                     r1, B1, c1, r2, B2, c2, r3, B3, c3,
                     m1, p1, d1, m2, p2, d2, m3, p3, d3,
                     f_ref, fb_ref, o_ref):
    """One batch element per grid step; every layer stays in registers/VMEM."""

    def enc(X, r_ref, b_ref, bias_ref):
        # conv3x3(SAME) + 2x2 maxpool, expressed as selection/weight matmuls.
        half = b_ref.shape[-1] // 2            # Wo*Cout (=128 for all 3 layers)
        cands = []
        for pr in range(2):                    # pool row-position
            acc = None
            for ky in range(3):                # conv row tap
                xs = jnp.dot(r_ref[pr, ky], X, preferred_element_type=jnp.float32)
                t = jnp.dot(xs, b_ref[ky], preferred_element_type=jnp.float32)
                acc = t if acc is None else acc + t
            # columns [0:half] = pool col-position 0, [half:] = position 1
            cands.append(jnp.maximum(acc[:, :half], acc[:, half:]))
        pooled = jnp.maximum(cands[0], cands[1])
        # bias + ReLU hoisted past the pool max (bias branch-invariant, relu monotone)
        return jnp.maximum(pooled + bias_ref[...], 0.0)

    def dec(X, m_ref, p_ref, bias_ref):
        # ConvTranspose2d(k=2, s=2): per output-row parity matmul + row interleave.
        out = None
        for dy in range(2):
            z = jnp.dot(X, m_ref[dy], preferred_element_type=jnp.float32)
            z = jnp.dot(p_ref[dy], z, preferred_element_type=jnp.float32)
            out = z if out is None else out + z
        return jnp.maximum(out + bias_ref[...], 0.0)

    X = x_ref[0]                               # (H, W) slab, Cin = 1
    X = enc(X, r1, B1, c1)                     # -> (H/2, (W/2)*16)
    X = enc(X, r2, B2, c2)                     # -> (H/4, (W/4)*32)
    X = enc(X, r3, B3, c3)                     # -> (H/8, (W/8)*64)
    X = dec(X, m1, p1, d1)                     # -> (H/4, (W/4)*32)
    X = dec(X, m2, p2, d2)                     # -> (H/2, (W/2)*16)
    X = dec(X, m3, p3, d3)                     # -> (H,   W*8)
    # fused final 1x1 conv + sigmoid (no separate (R,1) lane-width-1 output)
    y = jnp.dot(X, f_ref[...], preferred_element_type=jnp.float32) + fb_ref[...]
    o_ref[0] = 1.0 / (1.0 + jnp.exp(-y))


# ------------------- wrapper-side weight reorganization (glue) ---------------

def _conv_pool_mats(w, b, H, W):
    """Conv2d(Cin,Cout,3,padding=1)+ReLU+MaxPool2d(2) -> selection/weight mats.

    w: (Cout, Cin, 3, 3) torch layout, b: (Cout,).
    Returns R: (2,3,Ho,H) 0/1 row shift+subsample; B: (3, W*Cin, 2*Wo*Cout)
    tap weights (columns split by pool col-position); bias: (1, Wo*Cout).
    """
    Cout, Cin = int(w.shape[0]), int(w.shape[1])
    Ho, Wo = H // 2, W // 2
    ii = jnp.arange(Ho)[:, None]
    hh = jnp.arange(H)[None, :]
    R = jnp.stack([
        jnp.stack([(hh == 2 * ii + pr + ky - 1).astype(jnp.float32)
                   for ky in range(3)], 0)
        for pr in range(2)], 0)                                   # (2,3,Ho,H)

    wp = jnp.arange(W)[:, None]       # input pixel index
    jj = jnp.arange(Wo)[None, :]      # pooled output pixel index
    Bks = []
    for ky in range(3):
        halves = []
        for pc in range(2):
            b4 = jnp.zeros((W, Cin, Wo, Cout), jnp.float32)
            for kx in range(3):
                sel = (wp == 2 * jj + pc + kx - 1).astype(jnp.float32)  # (W,Wo)
                b4 = b4 + jnp.einsum("wj,oi->wijo", sel, w[:, :, ky, kx])
            halves.append(b4.reshape(W * Cin, Wo * Cout))
        Bks.append(jnp.concatenate(halves, axis=1))
    B = jnp.stack(Bks, 0)                                         # (3, W*Cin, 2*Wo*Cout)
    bias = jnp.tile(b, Wo).reshape(1, Wo * Cout)
    return R, B, bias


def _deconv_mats(w, b, H, W):
    """ConvTranspose2d(Cin,Cout,2,stride=2)+ReLU -> matmul matrices.

    w: (Cin, Cout, 2, 2) torch layout, b: (Cout,).
    Returns M: (2, W*Cin, 2W*Cout); P: (2, 2H, H); bias: (1, 2W*Cout).
    """
    Cin, Cout = int(w.shape[0]), int(w.shape[1])
    wp = jnp.arange(W)[:, None]
    vv = jnp.arange(2 * W)[None, :]
    Ms = []
    for dy in range(2):
        m4 = jnp.zeros((W, Cin, 2 * W, Cout), jnp.float32)
        for dx in range(2):
            sel = (vv == 2 * wp + dx).astype(jnp.float32)         # (W, 2W)
            m4 = m4 + jnp.einsum("wv,io->wivo", sel, w[:, :, dy, dx])
        Ms.append(m4.reshape(W * Cin, 2 * W * Cout))
    M = jnp.stack(Ms, 0)
    rr = jnp.arange(2 * H)[:, None]
    hh = jnp.arange(H)[None, :]
    P = jnp.stack([(rr == 2 * hh + dy).astype(jnp.float32) for dy in range(2)], 0)
    bias = jnp.tile(b, 2 * W).reshape(1, 2 * W * Cout)
    return M, P, bias


def _final_mats(w, b, W):
    """1x1 Conv2d(Cin,1) folded into a (W*Cin, W) matrix; bias as (1,1)."""
    Cin = int(w.shape[1])
    fw = w.reshape(Cin)
    F = jnp.einsum("wv,c->wcv", jnp.eye(W, dtype=jnp.float32), fw).reshape(W * Cin, W)
    fb = b.reshape(1, 1).astype(jnp.float32)
    return F, fb


def prepare_fused_params(params, H, W):
    fp = {}
    fp["r1"], fp["B1"], fp["c1"] = _conv_pool_mats(params["e1_w"], params["e1_b"], H, W)
    fp["r2"], fp["B2"], fp["c2"] = _conv_pool_mats(params["e2_w"], params["e2_b"], H // 2, W // 2)
    fp["r3"], fp["B3"], fp["c3"] = _conv_pool_mats(params["e3_w"], params["e3_b"], H // 4, W // 4)
    fp["m1"], fp["p1"], fp["d1"] = _deconv_mats(params["d1_w"], params["d1_b"], H // 8, W // 8)
    fp["m2"], fp["p2"], fp["d2"] = _deconv_mats(params["d2_w"], params["d2_b"], H // 4, W // 4)
    fp["m3"], fp["p3"], fp["d3"] = _deconv_mats(params["d3_w"], params["d3_b"], H // 2, W // 2)
    fp["F"], fp["fb"] = _final_mats(params["f_w"], params["f_b"], W)
    return fp


_ARG_ORDER = ["r1", "B1", "c1", "r2", "B2", "c2", "r3", "B3", "c3",
              "m1", "p1", "d1", "m2", "p2", "d2", "m3", "p3", "d3", "F", "fb"]


def _cost_estimate(N, H, W, args):
    flops = 0
    enc = [(H, W, 1, 16), (H // 2, W // 2, 16, 32), (H // 4, W // 4, 32, 64)]
    for (h, w, ci, co) in enc:
        ho, wo = h // 2, w // 2
        flops += 6 * 2 * ho * h * (w * ci)                 # R @ X
        flops += 6 * 2 * ho * (w * ci) * (2 * wo * co)     # (R@X) @ B
    dec = [(H // 8, W // 8, 64, 32), (H // 4, W // 4, 32, 16), (H // 2, W // 2, 16, 8)]
    for (h, w, ci, co) in dec:
        flops += 2 * 2 * h * (w * ci) * (2 * w * co)       # X @ M
        flops += 2 * 2 * (2 * h) * h * (2 * w * co)        # P @ Z
    flops += 2 * H * (W * 8) * W                           # fused final 1x1
    flops *= N
    bytes_accessed = int(sum(a.size for a in args) * 4 + N * H * W * 4)
    return int(flops), bytes_accessed


# ------------------------------- full forward --------------------------------

def cnn_for_segmentation_forward(x_nchw, params):
    """Reproduces CNN_FOR_SEGMENTATION.forward. NCHW in, NCHW out."""
    N, C, H, W = x_nchw.shape
    fp = prepare_fused_params(params, H, W)
    x2d = x_nchw[:, 0, :, :]                               # (N, H, W): slab per image (Cin=1)
    args = [x2d] + [fp[k] for k in _ARG_ORDER]

    def full_spec(a):
        nd = a.ndim
        return pl.BlockSpec(a.shape, lambda n, _nd=nd: (0,) * _nd)

    in_specs = [pl.BlockSpec((1, H, W), lambda n: (n, 0, 0))] + \
               [full_spec(a) for a in args[1:]]

    flops, bytes_accessed = _cost_estimate(N, H, W, args)

    out = pl.pallas_call(
        fused_cnn_kernel,
        out_shape=jax.ShapeDtypeStruct((N, H, W), jnp.float32),
        grid=(N,),
        in_specs=in_specs,
        out_specs=pl.BlockSpec((1, H, W), lambda n: (n, 0, 0)),
        compiler_params=pltpu.CompilerParams(
            dimension_semantics=("parallel",),      # >=2 parallel steps -> both v7x TCs
            vmem_limit_bytes=32 * 1024 * 1024),     # whole working set is ~3 MiB
        cost_estimate=pl.CostEstimate(
            flops=flops, transcendentals=N * H * W, bytes_accessed=bytes_accessed),
    )(*args)
    return out[:, None, :, :]                              # (N, 1, H, W)


# --------------------------- pure-JAX reference -------------------------------

def _reference_forward(x_nchw, params):
    x = jnp.transpose(x_nchw, (0, 2, 3, 1))

    def conv_block(x, w, b):
        y = jax.lax.conv_general_dilated(
            x, jnp.transpose(w, (2, 3, 1, 0)), window_strides=(1, 1),
            padding="SAME", dimension_numbers=("NHWC", "HWIO", "NHWC"))
        y = jnp.maximum(y + b, 0.0)
        N, H, W, C = y.shape
        return y.reshape(N, H // 2, 2, W // 2, 2, C).max(axis=(2, 4))

    def deconv_block(x, w, b):
        N, H, W, _ = x.shape
        Cout = w.shape[1]
        t = jnp.einsum("nhwi,iojk->nhjwko", x, w)          # (N,H,2,W,2,Cout)
        y = t.reshape(N, 2 * H, 2 * W, Cout) + b
        return jnp.maximum(y, 0.0)

    x = conv_block(x, params["e1_w"], params["e1_b"])
    x = conv_block(x, params["e2_w"], params["e2_b"])
    x = conv_block(x, params["e3_w"], params["e3_b"])
    x = deconv_block(x, params["d1_w"], params["d1_b"])
    x = deconv_block(x, params["d2_w"], params["d2_b"])
    x = deconv_block(x, params["d3_w"], params["d3_b"])
    y = jnp.sum(x * params["f_w"].reshape(1, 1, 1, 8), axis=-1, keepdims=True) + params["f_b"]
    y = 1.0 / (1.0 + jnp.exp(-y))
    return jnp.transpose(y, (0, 3, 1, 2))


# ----------------------------------- main -------------------------------------

def _init_params(key):
    shapes = {
        "e1_w": (16, 1, 3, 3),  "e1_b": (16,),
        "e2_w": (32, 16, 3, 3), "e2_b": (32,),
        "e3_w": (64, 32, 3, 3), "e3_b": (64,),
        "d1_w": (64, 32, 2, 2), "d1_b": (32,),
        "d2_w": (32, 16, 2, 2), "d2_b": (16,),
        "d3_w": (16, 8, 2, 2),  "d3_b": (8,),
        "f_w": (1, 8, 1, 1),    "f_b": (1,),
    }
    params = {}
    keys = jax.random.split(key, len(shapes))
    for (name, shape), k in zip(sorted(shapes.items()), keys):
        params[name] = 0.1 * jax.random.normal(k, shape, dtype=jnp.float32)
    return params


if __name__ == "__main__":
    root = jax.random.PRNGKey(0)
    k_x, k_p = jax.random.split(root)

    # small deterministic input, NCHW like PyTorch: batch=2, 1 channel, 16x16
    x = jax.random.normal(k_x, (2, 1, 16, 16), dtype=jnp.float32)
    params = _init_params(k_p)

    out = jax.jit(cnn_for_segmentation_forward)(x, params)
    out = jax.block_until_ready(out)

    assert out.shape == (2, 1, 16, 16), out.shape
    assert bool(jnp.all(jnp.isfinite(out)))

    ref = _reference_forward(x, params)
    max_diff = float(jnp.max(jnp.abs(out - ref)))
    assert max_diff < 2e-4, f"mismatch vs reference: {max_diff}"

    print("KERNEL_OK")
</pallas_src>

<mosaic_0001>
module attributes {stable_mosaic.version = 11 : i64} {
  func.func @fused_cnn_kernel(%arg0: i32, %arg1: memref<1x16x16xf32, #tpu.memory_space<vmem>>, %arg2: memref<2x3x8x16xf32, #tpu.memory_space<vmem>>, %arg3: memref<3x16x256xf32, #tpu.memory_space<vmem>>, %arg4: memref<1x128xf32, #tpu.memory_space<vmem>>, %arg5: memref<2x3x4x8xf32, #tpu.memory_space<vmem>>, %arg6: memref<3x128x256xf32, #tpu.memory_space<vmem>>, %arg7: memref<1x128xf32, #tpu.memory_space<vmem>>, %arg8: memref<2x3x2x4xf32, #tpu.memory_space<vmem>>, %arg9: memref<3x128x256xf32, #tpu.memory_space<vmem>>, %arg10: memref<1x128xf32, #tpu.memory_space<vmem>>, %arg11: memref<2x128x128xf32, #tpu.memory_space<vmem>>, %arg12: memref<2x4x2xf32, #tpu.memory_space<vmem>>, %arg13: memref<1x128xf32, #tpu.memory_space<vmem>>, %arg14: memref<2x128x128xf32, #tpu.memory_space<vmem>>, %arg15: memref<2x8x4xf32, #tpu.memory_space<vmem>>, %arg16: memref<1x128xf32, #tpu.memory_space<vmem>>, %arg17: memref<2x128x128xf32, #tpu.memory_space<vmem>>, %arg18: memref<2x16x8xf32, #tpu.memory_space<vmem>>, %arg19: memref<1x128xf32, #tpu.memory_space<vmem>>, %arg20: memref<128x16xf32, #tpu.memory_space<vmem>>, %arg21: memref<1x1xf32, #tpu.memory_space<vmem>>, %arg22: memref<1x16x16xf32, #tpu.memory_space<vmem>>) attributes {dimension_semantics = [#tpu.dimension_semantics<parallel>], iteration_bounds = array<i64: 2>, scalar_prefetch = 0 : i64, scratch_operands = 0 : i64, tpu.core_type = #tpu.core_type<tc>, window_params = [{transform_indices = @transform_0, window_bounds = array<i64: 1, 16, 16>}, {pipeline_mode = #tpu.pipeline_mode<synchronous>, transform_indices = @transform_1, window_bounds = array<i64: 2, 3, 8, 16>}, {pipeline_mode = #tpu.pipeline_mode<synchronous>, transform_indices = @transform_2, window_bounds = array<i64: 3, 16, 256>}, {pipeline_mode = #tpu.pipeline_mode<synchronous>, transform_indices = @transform_3, window_bounds = array<i64: 1, 128>}, {pipeline_mode = #tpu.pipeline_mode<synchronous>, transform_indices = @transform_4, window_bounds = array<i64: 2, 3, 4, 8>}, {pipeline_mode = #tpu.pipeline_mode<synchronous>, transform_indices = @transform_5, window_bounds = array<i64: 3, 128, 256>}, {pipeline_mode = #tpu.pipeline_mode<synchronous>, transform_indices = @transform_6, window_bounds = array<i64: 1, 128>}, {pipeline_mode = #tpu.pipeline_mode<synchronous>, transform_indices = @transform_7, window_bounds = array<i64: 2, 3, 2, 4>}, {pipeline_mode = #tpu.pipeline_mode<synchronous>, transform_indices = @transform_8, window_bounds = array<i64: 3, 128, 256>}, {pipeline_mode = #tpu.pipeline_mode<synchronous>, transform_indices = @transform_9, window_bounds = array<i64: 1, 128>}, {pipeline_mode = #tpu.pipeline_mode<synchronous>, transform_indices = @transform_10, window_bounds = array<i64: 2, 128, 128>}, {pipeline_mode = #tpu.pipeline_mode<synchronous>, transform_indices = @transform_11, window_bounds = array<i64: 2, 4, 2>}, {pipeline_mode = #tpu.pipeline_mode<synchronous>, transform_indices = @transform_12, window_bounds = array<i64: 1, 128>}, {pipeline_mode = #tpu.pipeline_mode<synchronous>, transform_indices = @transform_13, window_bounds = array<i64: 2, 128, 128>}, {pipeline_mode = #tpu.pipeline_mode<synchronous>, transform_indices = @transform_14, window_bounds = array<i64: 2, 8, 4>}, {pipeline_mode = #tpu.pipeline_mode<synchronous>, transform_indices = @transform_15, window_bounds = array<i64: 1, 128>}, {pipeline_mode = #tpu.pipeline_mode<synchronous>, transform_indices = @transform_16, window_bounds = array<i64: 2, 128, 128>}, {pipeline_mode = #tpu.pipeline_mode<synchronous>, transform_indices = @transform_17, window_bounds = array<i64: 2, 16, 8>}, {pipeline_mode = #tpu.pipeline_mode<synchronous>, transform_indices = @transform_18, window_bounds = array<i64: 1, 128>}, {pipeline_mode = #tpu.pipeline_mode<synchronous>, transform_indices = @transform_19, window_bounds = array<i64: 128, 16>}, {pipeline_mode = #tpu.pipeline_mode<synchronous>, transform_indices = @transform_20, window_bounds = array<i64: 1, 1>}, {transform_indices = @transform_21, window_bounds = array<i64: 1, 16, 16>}]} {
    %c0 = arith.constant 0 : index
    %c0_0 = arith.constant 0 : index
    %c0_1 = arith.constant 0 : index
    %0 = vector.load %arg1[%c0, %c0_0, %c0_1] : memref<1x16x16xf32, #tpu.memory_space<vmem>>, vector<1x16x16xf32>
    %1 = vector.shape_cast %0 : vector<1x16x16xf32> to vector<16x16xf32>
    %c0_2 = arith.constant 0 : index
    %c0_3 = arith.constant 0 : index
    %c0_4 = arith.constant 0 : index
    %c0_5 = arith.constant 0 : index
    %2 = vector.load %arg2[%c0_2, %c0_3, %c0_4, %c0_5] : memref<2x3x8x16xf32, #tpu.memory_space<vmem>>, vector<1x1x8x16xf32>
    %3 = vector.shape_cast %2 : vector<1x1x8x16xf32> to vector<8x16xf32>
    %cst = arith.constant dense<0.000000e+00> : vector<8x16xf32>
    %4 = tpu.matmul %3, %1, %cst {dimension_numbers = #tpu.dot_dimension_numbers<[1], [0], [0], [1], [0, 0, 1, 1], [], []>} : vector<8x16xf32>, vector<16x16xf32>, vector<8x16xf32> -> vector<8x16xf32>
    %c0_6 = arith.constant 0 : index
    %c0_7 = arith.constant 0 : index
    %c0_8 = arith.constant 0 : index
    %5 = vector.load %arg3[%c0_6, %c0_7, %c0_8] : memref<3x16x256xf32, #tpu.memory_space<vmem>>, vector<1x16x256xf32>
    %6 = vector.shape_cast %5 : vector<1x16x256xf32> to vector<16x256xf32>
    %cst_9 = arith.constant dense<0.000000e+00> : vector<8x256xf32>
    %7 = tpu.matmul %4, %6, %cst_9 {dimension_numbers = #tpu.dot_dimension_numbers<[1], [0], [0], [1], [0, 0, 1, 1], [], []>} : vector<8x16xf32>, vector<16x256xf32>, vector<8x256xf32> -> vector<8x256xf32>
    %c0_10 = arith.constant 0 : index
    %c1 = arith.constant 1 : index
    %c0_11 = arith.constant 0 : index
    %c0_12 = arith.constant 0 : index
    %8 = vector.load %arg2[%c0_10, %c1, %c0_11, %c0_12] : memref<2x3x8x16xf32, #tpu.memory_space<vmem>>, vector<1x1x8x16xf32>
    %9 = vector.shape_cast %8 : vector<1x1x8x16xf32> to vector<8x16xf32>
    %cst_13 = arith.constant dense<0.000000e+00> : vector<8x16xf32>
    %10 = tpu.matmul %9, %1, %cst_13 {dimension_numbers = #tpu.dot_dimension_numbers<[1], [0], [0], [1], [0, 0, 1, 1], [], []>} : vector<8x16xf32>, vector<16x16xf32>, vector<8x16xf32> -> vector<8x16xf32>
    %c1_14 = arith.constant 1 : index
    %c0_15 = arith.constant 0 : index
    %c0_16 = arith.constant 0 : index
    %11 = vector.load %arg3[%c1_14, %c0_15, %c0_16] : memref<3x16x256xf32, #tpu.memory_space<vmem>>, vector<1x16x256xf32>
    %12 = vector.shape_cast %11 : vector<1x16x256xf32> to vector<16x256xf32>
    %cst_17 = arith.constant dense<0.000000e+00> : vector<8x256xf32>
    %13 = tpu.matmul %10, %12, %cst_17 {dimension_numbers = #tpu.dot_dimension_numbers<[1], [0], [0], [1], [0, 0, 1, 1], [], []>} : vector<8x16xf32>, vector<16x256xf32>, vector<8x256xf32> -> vector<8x256xf32>
    %14 = arith.addf %7, %13 : vector<8x256xf32>
    %c0_18 = arith.constant 0 : index
    %c2 = arith.constant 2 : index
    %c0_19 = arith.constant 0 : index
    %c0_20 = arith.constant 0 : index
    %15 = vector.load %arg2[%c0_18, %c2, %c0_19, %c0_20] : memref<2x3x8x16xf32, #tpu.memory_space<vmem>>, vector<1x1x8x16xf32>
    %16 = vector.shape_cast %15 : vector<1x1x8x16xf32> to vector<8x16xf32>
    %cst_21 = arith.constant dense<0.000000e+00> : vector<8x16xf32>
    %17 = tpu.matmul %16, %1, %cst_21 {dimension_numbers = #tpu.dot_dimension_numbers<[1], [0], [0], [1], [0, 0, 1, 1], [], []>} : vector<8x16xf32>, vector<16x16xf32>, vector<8x16xf32> -> vector<8x16xf32>
    %c2_22 = arith.constant 2 : index
    %c0_23 = arith.constant 0 : index
    %c0_24 = arith.constant 0 : index
    %18 = vector.load %arg3[%c2_22, %c0_23, %c0_24] : memref<3x16x256xf32, #tpu.memory_space<vmem>>, vector<1x16x256xf32>
    %19 = vector.shape_cast %18 : vector<1x16x256xf32> to vector<16x256xf32>
    %cst_25 = arith.constant dense<0.000000e+00> : vector<8x256xf32>
    %20 = tpu.matmul %17, %19, %cst_25 {dimension_numbers = #tpu.dot_dimension_numbers<[1], [0], [0], [1], [0, 0, 1, 1], [], []>} : vector<8x16xf32>, vector<16x256xf32>, vector<8x256xf32> -> vector<8x256xf32>
    %21 = arith.addf %14, %20 : vector<8x256xf32>
    %22 = vector.extract_strided_slice %21 {offsets = [0, 0], sizes = [8, 128], strides = [1, 1]} : vector<8x256xf32> to vector<8x128xf32>
    %23 = vector.extract_strided_slice %21 {offsets = [0, 128], sizes = [8, 128], strides = [1, 1]} : vector<8x256xf32> to vector<8x128xf32>
    %24 = arith.maximumf %22, %23 : vector<8x128xf32>
    %c1_26 = arith.constant 1 : index
    %c0_27 = arith.constant 0 : index
    %c0_28 = arith.constant 0 : index
    %c0_29 = arith.constant 0 : index
    %25 = vector.load %arg2[%c1_26, %c0_27, %c0_28, %c0_29] : memref<2x3x8x16xf32, #tpu.memory_space<vmem>>, vector<1x1x8x16xf32>
    %26 = vector.shape_cast %25 : vector<1x1x8x16xf32> to vector<8x16xf32>
    %cst_30 = arith.constant dense<0.000000e+00> : vector<8x16xf32>
    %27 = tpu.matmul %26, %1, %cst_30 {dimension_numbers = #tpu.dot_dimension_numbers<[1], [0], [0], [1], [0, 0, 1, 1], [], []>} : vector<8x16xf32>, vector<16x16xf32>, vector<8x16xf32> -> vector<8x16xf32>
    %c0_31 = arith.constant 0 : index
    %c0_32 = arith.constant 0 : index
    %c0_33 = arith.constant 0 : index
    %28 = vector.load %arg3[%c0_31, %c0_32, %c0_33] : memref<3x16x256xf32, #tpu.memory_space<vmem>>, vector<1x16x256xf32>
    %29 = vector.shape_cast %28 : vector<1x16x256xf32> to vector<16x256xf32>
    %cst_34 = arith.constant dense<0.000000e+00> : vector<8x256xf32>
    %30 = tpu.matmul %27, %29, %cst_34 {dimension_numbers = #tpu.dot_dimension_numbers<[1], [0], [0], [1], [0, 0, 1, 1], [], []>} : vector<8x16xf32>, vector<16x256xf32>, vector<8x256xf32> -> vector<8x256xf32>
    %c1_35 = arith.constant 1 : index
    %c1_36 = arith.constant 1 : index
    %c0_37 = arith.constant 0 : index
    %c0_38 = arith.constant 0 : index
    %31 = vector.load %arg2[%c1_35, %c1_36, %c0_37, %c0_38] : memref<2x3x8x16xf32, #tpu.memory_space<vmem>>, vector<1x1x8x16xf32>
    %32 = vector.shape_cast %31 : vector<1x1x8x16xf32> to vector<8x16xf32>
    %cst_39 = arith.constant dense<0.000000e+00> : vector<8x16xf32>
    %33 = tpu.matmul %32, %1, %cst_39 {dimension_numbers = #tpu.dot_dimension_numbers<[1], [0], [0], [1], [0, 0, 1, 1], [], []>} : vector<8x16xf32>, vector<16x16xf32>, vector<8x16xf32> -> vector<8x16xf32>
    %c1_40 = arith.constant 1 : index
    %c0_41 = arith.constant 0 : index
    %c0_42 = arith.constant 0 : index
    %34 = vector.load %arg3[%c1_40, %c0_41, %c0_42] : memref<3x16x256xf32, #tpu.memory_space<vmem>>, vector<1x16x256xf32>
    %35 = vector.shape_cast %34 : vector<1x16x256xf32> to vector<16x256xf32>
    %cst_43 = arith.constant dense<0.000000e+00> : vector<8x256xf32>
    %36 = tpu.matmul %33, %35, %cst_43 {dimension_numbers = #tpu.dot_dimension_numbers<[1], [0], [0], [1], [0, 0, 1, 1], [], []>} : vector<8x16xf32>, vector<16x256xf32>, vector<8x256xf32> -> vector<8x256xf32>
    %37 = arith.addf %30, %36 : vector<8x256xf32>
    %c1_44 = arith.constant 1 : index
    %c2_45 = arith.constant 2 : index
    %c0_46 = arith.constant 0 : index
    %c0_47 = arith.constant 0 : index
    %38 = vector.load %arg2[%c1_44, %c2_45, %c0_46, %c0_47] : memref<2x3x8x16xf32, #tpu.memory_space<vmem>>, vector<1x1x8x16xf32>
    %39 = vector.shape_cast %38 : vector<1x1x8x16xf32> to vector<8x16xf32>
    %cst_48 = arith.constant dense<0.000000e+00> : vector<8x16xf32>
    %40 = tpu.matmul %39, %1, %cst_48 {dimension_numbers = #tpu.dot_dimension_numbers<[1], [0], [0], [1], [0, 0, 1, 1], [], []>} : vector<8x16xf32>, vector<16x16xf32>, vector<8x16xf32> -> vector<8x16xf32>
    %c2_49 = arith.constant 2 : index
    %c0_50 = arith.constant 0 : index
    %c0_51 = arith.constant 0 : index
    %41 = vector.load %arg3[%c2_49, %c0_50, %c0_51] : memref<3x16x256xf32, #tpu.memory_space<vmem>>, vector<1x16x256xf32>
    %42 = vector.shape_cast %41 : vector<1x16x256xf32> to vector<16x256xf32>
    %cst_52 = arith.constant dense<0.000000e+00> : vector<8x256xf32>
    %43 = tpu.matmul %40, %42, %cst_52 {dimension_numbers = #tpu.dot_dimension_numbers<[1], [0], [0], [1], [0, 0, 1, 1], [], []>} : vector<8x16xf32>, vector<16x256xf32>, vector<8x256xf32> -> vector<8x256xf32>
    %44 = arith.addf %37, %43 : vector<8x256xf32>
    %45 = vector.extract_strided_slice %44 {offsets = [0, 0], sizes = [8, 128], strides = [1, 1]} : vector<8x256xf32> to vector<8x128xf32>
    %46 = vector.extract_strided_slice %44 {offsets = [0, 128], sizes = [8, 128], strides = [1, 1]} : vector<8x256xf32> to vector<8x128xf32>
    %47 = arith.maximumf %45, %46 : vector<8x128xf32>
    %48 = arith.maximumf %24, %47 : vector<8x128xf32>
    %c0_53 = arith.constant 0 : index
    %c0_54 = arith.constant 0 : index
    %49 = vector.load %arg4[%c0_53, %c0_54] : memref<1x128xf32, #tpu.memory_space<vmem>>, vector<1x128xf32>
    %50 = vector.broadcast %49 : vector<1x128xf32> to vector<8x128xf32>
    %51 = arith.addf %48, %50 : vector<8x128xf32>
    %cst_55 = arith.constant 0.000000e+00 : f32
    %52 = vector.broadcast %cst_55 : f32 to vector<8x128xf32>
    %53 = arith.maximumf %51, %52 : vector<8x128xf32>
    %c0_56 = arith.constant 0 : index
    %c0_57 = arith.constant 0 : index
    %c0_58 = arith.constant 0 : index
    %c0_59 = arith.constant 0 : index
    %54 = vector.load %arg5[%c0_56, %c0_57, %c0_58, %c0_59] : memref<2x3x4x8xf32, #tpu.memory_space<vmem>>, vector<1x1x4x8xf32>
    %55 = vector.shape_cast %54 : vector<1x1x4x8xf32> to vector<4x8xf32>
    %cst_60 = arith.constant dense<0.000000e+00> : vector<4x128xf32>
    %56 = tpu.matmul %55, %53, %cst_60 {dimension_numbers = #tpu.dot_dimension_numbers<[1], [0], [0], [1], [0, 0, 1, 1], [], []>} : vector<4x8xf32>, vector<8x128xf32>, vector<4x128xf32> -> vector<4x128xf32>
    %c0_61 = arith.constant 0 : index
    %c0_62 = arith.constant 0 : index
    %c0_63 = arith.constant 0 : index
    %57 = vector.load %arg6[%c0_61, %c0_62, %c0_63] : memref<3x128x256xf32, #tpu.memory_space<vmem>>, vector<1x128x256xf32>
    %58 = vector.shape_cast %57 : vector<1x128x256xf32> to vector<128x256xf32>
    %cst_64 = arith.constant dense<0.000000e+00> : vector<4x256xf32>
    %59 = tpu.matmul %56, %58, %cst_64 {dimension_numbers = #tpu.dot_dimension_numbers<[1], [0], [0], [1], [0, 0, 1, 1], [], []>} : vector<4x128xf32>, vector<128x256xf32>, vector<4x256xf32> -> vector<4x256xf32>
    %c0_65 = arith.constant 0 : index
    %c1_66 = arith.constant 1 : index
    %c0_67 = arith.constant 0 : index
    %c0_68 = arith.constant 0 : index
    %60 = vector.load %arg5[%c0_65, %c1_66, %c0_67, %c0_68] : memref<2x3x4x8xf32, #tpu.memory_space<vmem>>, vector<1x1x4x8xf32>
    %61 = vector.shape_cast %60 : vector<1x1x4x8xf32> to vector<4x8xf32>
    %cst_69 = arith.constant dense<0.000000e+00> : vector<4x128xf32>
    %62 = tpu.matmul %61, %53, %cst_69 {dimension_numbers = #tpu.dot_dimension_numbers<[1], [0], [0], [1], [0, 0, 1, 1], [], []>} : vector<4x8xf32>, vector<8x128xf32>, vector<4x128xf32> -> vector<4x128xf32>
    %c1_70 = arith.constant 1 : index
    %c0_71 = arith.constant 0 : index
    %c0_72 = arith.constant 0 : index
    %63 = vector.load %arg6[%c1_70, %c0_71, %c0_72] : memref<3x128x256xf32, #tpu.memory_space<vmem>>, vector<1x128x256xf32>
    %64 = vector.shape_cast %63 : vector<1x128x256xf32> to vector<128x256xf32>
    %cst_73 = arith.constant dense<0.000000e+00> : vector<4x256xf32>
    %65 = tpu.matmul %62, %64, %cst_73 {dimension_numbers = #tpu.dot_dimension_numbers<[1], [0], [0], [1], [0, 0, 1, 1], [], []>} : vector<4x128xf32>, vector<128x256xf32>, vector<4x256xf32> -> vector<4x256xf32>
    %66 = arith.addf %59, %65 : vector<4x256xf32>
    %c0_74 = arith.constant 0 : index
    %c2_75 = arith.constant 2 : index
    %c0_76 = arith.constant 0 : index
    %c0_77 = arith.constant 0 : index
    %67 = vector.load %arg5[%c0_74, %c2_75, %c0_76, %c0_77] : memref<2x3x4x8xf32, #tpu.memory_space<vmem>>, vector<1x1x4x8xf32>
    %68 = vector.shape_cast %67 : vector<1x1x4x8xf32> to vector<4x8xf32>
    %cst_78 = arith.constant dense<0.000000e+00> : vector<4x128xf32>
    %69 = tpu.matmul %68, %53, %cst_78 {dimension_numbers = #tpu.dot_dimension_numbers<[1], [0], [0], [1], [0, 0, 1, 1], [], []>} : vector<4x8xf32>, vector<8x128xf32>, vector<4x128xf32> -> vector<4x128xf32>
    %c2_79 = arith.constant 2 : index
    %c0_80 = arith.constant 0 : index
    %c0_81 = arith.constant 0 : index
    %70 = vector.load %arg6[%c2_79, %c0_80, %c0_81] : memref<3x128x256xf32, #tpu.memory_space<vmem>>, vector<1x128x256xf32>
    %71 = vector.shape_cast %70 : vector<1x128x256xf32> to vector<128x256xf32>
    %cst_82 = arith.constant dense<0.000000e+00> : vector<4x256xf32>
    %72 = tpu.matmul %69, %71, %cst_82 {dimension_numbers = #tpu.dot_dimension_numbers<[1], [0], [0], [1], [0, 0, 1, 1], [], []>} : vector<4x128xf32>, vector<128x256xf32>, vector<4x256xf32> -> vector<4x256xf32>
    %73 = arith.addf %66, %72 : vector<4x256xf32>
    %74 = vector.extract_strided_slice %73 {offsets = [0, 0], sizes = [4, 128], strides = [1, 1]} : vector<4x256xf32> to vector<4x128xf32>
    %75 = vector.extract_strided_slice %73 {offsets = [0, 128], sizes = [4, 128], strides = [1, 1]} : vector<4x256xf32> to vector<4x128xf32>
    %76 = arith.maximumf %74, %75 : vector<4x128xf32>
    %c1_83 = arith.constant 1 : index
    %c0_84 = arith.constant 0 : index
    %c0_85 = arith.constant 0 : index
    %c0_86 = arith.constant 0 : index
    %77 = vector.load %arg5[%c1_83, %c0_84, %c0_85, %c0_86] : memref<2x3x4x8xf32, #tpu.memory_space<vmem>>, vector<1x1x4x8xf32>
    %78 = vector.shape_cast %77 : vector<1x1x4x8xf32> to vector<4x8xf32>
    %cst_87 = arith.constant dense<0.000000e+00> : vector<4x128xf32>
    %79 = tpu.matmul %78, %53, %cst_87 {dimension_numbers = #tpu.dot_dimension_numbers<[1], [0], [0], [1], [0, 0, 1, 1], [], []>} : vector<4x8xf32>, vector<8x128xf32>, vector<4x128xf32> -> vector<4x128xf32>
    %c0_88 = arith.constant 0 : index
    %c0_89 = arith.constant 0 : index
    %c0_90 = arith.constant 0 : index
    %80 = vector.load %arg6[%c0_88, %c0_89, %c0_90] : memref<3x128x256xf32, #tpu.memory_space<vmem>>, vector<1x128x256xf32>
    %81 = vector.shape_cast %80 : vector<1x128x256xf32> to vector<128x256xf32>
    %cst_91 = arith.constant dense<0.000000e+00> : vector<4x256xf32>
    %82 = tpu.matmul %79, %81, %cst_91 {dimension_numbers = #tpu.dot_dimension_numbers<[1], [0], [0], [1], [0, 0, 1, 1], [], []>} : vector<4x128xf32>, vector<128x256xf32>, vector<4x256xf32> -> vector<4x256xf32>
    %c1_92 = arith.constant 1 : index
    %c1_93 = arith.constant 1 : index
    %c0_94 = arith.constant 0 : index
    %c0_95 = arith.constant 0 : index
    %83 = vector.load %arg5[%c1_92, %c1_93, %c0_94, %c0_95] : memref<2x3x4x8xf32, #tpu.memory_space<vmem>>, vector<1x1x4x8xf32>
    %84 = vector.shape_cast %83 : vector<1x1x4x8xf32> to vector<4x8xf32>
    %cst_96 = arith.constant dense<0.000000e+00> : vector<4x128xf32>
    %85 = tpu.matmul %84, %53, %cst_96 {dimension_numbers = #tpu.dot_dimension_numbers<[1], [0], [0], [1], [0, 0, 1, 1], [], []>} : vector<4x8xf32>, vector<8x128xf32>, vector<4x128xf32> -> vector<4x128xf32>
    %c1_97 = arith.constant 1 : index
    %c0_98 = arith.constant 0 : index
    %c0_99 = arith.constant 0 : index
    %86 = vector.load %arg6[%c1_97, %c0_98, %c0_99] : memref<3x128x256xf32, #tpu.memory_space<vmem>>, vector<1x128x256xf32>
    %87 = vector.shape_cast %86 : vector<1x128x256xf32> to vector<128x256xf32>
    %cst_100 = arith.constant dense<0.000000e+00> : vector<4x256xf32>
    %88 = tpu.matmul %85, %87, %cst_100 {dimension_numbers = #tpu.dot_dimension_numbers<[1], [0], [0], [1], [0, 0, 1, 1], [], []>} : vector<4x128xf32>, vector<128x256xf32>, vector<4x256xf32> -> vector<4x256xf32>
    %89 = arith.addf %82, %88 : vector<4x256xf32>
    %c1_101 = arith.constant 1 : index
    %c2_102 = arith.constant 2 : index
    %c0_103 = arith.constant 0 : index
    %c0_104 = arith.constant 0 : index
    %90 = vector.load %arg5[%c1_101, %c2_102, %c0_103, %c0_104] : memref<2x3x4x8xf32, #tpu.memory_space<vmem>>, vector<1x1x4x8xf32>
    %91 = vector.shape_cast %90 : vector<1x1x4x8xf32> to vector<4x8xf32>
    %cst_105 = arith.constant dense<0.000000e+00> : vector<4x128xf32>
    %92 = tpu.matmul %91, %53, %cst_105 {dimension_numbers = #tpu.dot_dimension_numbers<[1], [0], [0], [1], [0, 0, 1, 1], [], []>} : vector<4x8xf32>, vector<8x128xf32>, vector<4x128xf32> -> vector<4x128xf32>
    %c2_106 = arith.constant 2 : index
    %c0_107 = arith.constant 0 : index
    %c0_108 = arith.constant 0 : index
    %93 = vector.load %arg6[%c2_106, %c0_107, %c0_108] : memref<3x128x256xf32, #tpu.memory_space<vmem>>, vector<1x128x256xf32>
    %94 = vector.shape_cast %93 : vector<1x128x256xf32> to vector<128x256xf32>
    %cst_109 = arith.constant dense<0.000000e+00> : vector<4x256xf32>
    %95 = tpu.matmul %92, %94, %cst_109 {dimension_numbers = #tpu.dot_dimension_numbers<[1], [0], [0], [1], [0, 0, 1, 1], [], []>} : vector<4x128xf32>, vector<128x256xf32>, vector<4x256xf32> -> vector<4x256xf32>
    %96 = arith.addf %89, %95 : vector<4x256xf32>
    %97 = vector.extract_strided_slice %96 {offsets = [0, 0], sizes = [4, 128], strides = [1, 1]} : vector<4x256xf32> to vector<4x128xf32>
    %98 = vector.extract_strided_slice %96 {offsets = [0, 128], sizes = [4, 128], strides = [1, 1]} : vector<4x256xf32> to vector<4x128xf32>
    %99 = arith.maximumf %97, %98 : vector<4x128xf32>
    %100 = arith.maximumf %76, %99 : vector<4x128xf32>
    %c0_110 = arith.constant 0 : index
    %c0_111 = arith.constant 0 : index
    %101 = vector.load %arg7[%c0_110, %c0_111] : memref<1x128xf32, #tpu.memory_space<vmem>>, vector<1x128xf32>
    %102 = vector.broadcast %101 : vector<1x128xf32> to vector<4x128xf32>
    %103 = arith.addf %100, %102 : vector<4x128xf32>
    %cst_112 = arith.constant 0.000000e+00 : f32
    %104 = vector.broadcast %cst_112 : f32 to vector<4x128xf32>
    %105 = arith.maximumf %103, %104 : vector<4x128xf32>
    %c0_113 = arith.constant 0 : index
    %c0_114 = arith.constant 0 : index
    %c0_115 = arith.constant 0 : index
    %c0_116 = arith.constant 0 : index
    %106 = vector.load %arg8[%c0_113, %c0_114, %c0_115, %c0_116] : memref<2x3x2x4xf32, #tpu.memory_space<vmem>>, vector<1x1x2x4xf32>
    %107 = vector.shape_cast %106 : vector<1x1x2x4xf32> to vector<2x4xf32>
    %cst_117 = arith.constant dense<0.000000e+00> : vector<2x128xf32>
    %108 = tpu.matmul %107, %105, %cst_117 {dimension_numbers = #tpu.dot_dimension_numbers<[1], [0], [0], [1], [0, 0, 1, 1], [], []>} : vector<2x4xf32>, vector<4x128xf32>, vector<2x128xf32> -> vector<2x128xf32>
    %c0_118 = arith.constant 0 : index
    %c0_119 = arith.constant 0 : index
    %c0_120 = arith.constant 0 : index
    %109 = vector.load %arg9[%c0_118, %c0_119, %c0_120] : memref<3x128x256xf32, #tpu.memory_space<vmem>>, vector<1x128x256xf32>
    %110 = vector.shape_cast %109 : vector<1x128x256xf32> to vector<128x256xf32>
    %cst_121 = arith.constant dense<0.000000e+00> : vector<2x256xf32>
    %111 = tpu.matmul %108, %110, %cst_121 {dimension_numbers = #tpu.dot_dimension_numbers<[1], [0], [0], [1], [0, 0, 1, 1], [], []>} : vector<2x128xf32>, vector<128x256xf32>, vector<2x256xf32> -> vector<2x256xf32>
    %c0_122 = arith.constant 0 : index
    %c1_123 = arith.constant 1 : index
    %c0_124 = arith.constant 0 : index
    %c0_125 = arith.constant 0 : index
    %112 = vector.load %arg8[%c0_122, %c1_123, %c0_124, %c0_125] : memref<2x3x2x4xf32, #tpu.memory_space<vmem>>, vector<1x1x2x4xf32>
    %113 = vector.shape_cast %112 : vector<1x1x2x4xf32> to vector<2x4xf32>
    %cst_126 = arith.constant dense<0.000000e+00> : vector<2x128xf32>
    %114 = tpu.matmul %113, %105, %cst_126 {dimension_numbers = #tpu.dot_dimension_numbers<[1], [0], [0], [1], [0, 0, 1, 1], [], []>} : vector<2x4xf32>, vector<4x128xf32>, vector<2x128xf32> -> vector<2x128xf32>
    %c1_127 = arith.constant 1 : index
    %c0_128 = arith.constant 0 : index
    %c0_129 = arith.constant 0 : index
    %115 = vector.load %arg9[%c1_127, %c0_128, %c0_129] : memref<3x128x256xf32, #tpu.memory_space<vmem>>, vector<1x128x256xf32>
    %116 = vector.shape_cast %115 : vector<1x128x256xf32> to vector<128x256xf32>
    %cst_130 = arith.constant dense<0.000000e+00> : vector<2x256xf32>
    %117 = tpu.matmul %114, %116, %cst_130 {dimension_numbers = #tpu.dot_dimension_numbers<[1], [0], [0], [1], [0, 0, 1, 1], [], []>} : vector<2x128xf32>, vector<128x256xf32>, vector<2x256xf32> -> vector<2x256xf32>
    %118 = arith.addf %111, %117 : vector<2x256xf32>
    %c0_131 = arith.constant 0 : index
    %c2_132 = arith.constant 2 : index
    %c0_133 = arith.constant 0 : index
    %c0_134 = arith.constant 0 : index
    %119 = vector.load %arg8[%c0_131, %c2_132, %c0_133, %c0_134] : memref<2x3x2x4xf32, #tpu.memory_space<vmem>>, vector<1x1x2x4xf32>
    %120 = vector.shape_cast %119 : vector<1x1x2x4xf32> to vector<2x4xf32>
    %cst_135 = arith.constant dense<0.000000e+00> : vector<2x128xf32>
    %121 = tpu.matmul %120, %105, %cst_135 {dimension_numbers = #tpu.dot_dimension_numbers<[1], [0], [0], [1], [0, 0, 1, 1], [], []>} : vector<2x4xf32>, vector<4x128xf32>, vector<2x128xf32> -> vector<2x128xf32>
    %c2_136 = arith.constant 2 : index
    %c0_137 = arith.constant 0 : index
    %c0_138 = arith.constant 0 : index
    %122 = vector.load %arg9[%c2_136, %c0_137, %c0_138] : memref<3x128x256xf32, #tpu.memory_space<vmem>>, vector<1x128x256xf32>
    %123 = vector.shape_cast %122 : vector<1x128x256xf32> to vector<128x256xf32>
    %cst_139 = arith.constant dense<0.000000e+00> : vector<2x256xf32>
    %124 = tpu.matmul %121, %123, %cst_139 {dimension_numbers = #tpu.dot_dimension_numbers<[1], [0], [0], [1], [0, 0, 1, 1], [], []>} : vector<2x128xf32>, vector<128x256xf32>, vector<2x256xf32> -> vector<2x256xf32>
    %125 = arith.addf %118, %124 : vector<2x256xf32>
    %126 = vector.extract_strided_slice %125 {offsets = [0, 0], sizes = [2, 128], strides = [1, 1]} : vector<2x256xf32> to vector<2x128xf32>
    %127 = vector.extract_strided_slice %125 {offsets = [0, 128], sizes = [2, 128], strides = [1, 1]} : vector<2x256xf32> to vector<2x128xf32>
    %128 = arith.maximumf %126, %127 : vector<2x128xf32>
    %c1_140 = arith.constant 1 : index
    %c0_141 = arith.constant 0 : index
    %c0_142 = arith.constant 0 : index
    %c0_143 = arith.constant 0 : index
    %129 = vector.load %arg8[%c1_140, %c0_141, %c0_142, %c0_143] : memref<2x3x2x4xf32, #tpu.memory_space<vmem>>, vector<1x1x2x4xf32>
    %130 = vector.shape_cast %129 : vector<1x1x2x4xf32> to vector<2x4xf32>
    %cst_144 = arith.constant dense<0.000000e+00> : vector<2x128xf32>
    %131 = tpu.matmul %130, %105, %cst_144 {dimension_numbers = #tpu.dot_dimension_numbers<[1], [0], [0], [1], [0, 0, 1, 1], [], []>} : vector<2x4xf32>, vector<4x128xf32>, vector<2x128xf32> -> vector<2x128xf32>
    %c0_145 = arith.constant 0 : index
    %c0_146 = arith.constant 0 : index
    %c0_147 = arith.constant 0 : index
    %132 = vector.load %arg9[%c0_145, %c0_146, %c0_147] : memref<3x128x256xf32, #tpu.memory_space<vmem>>, vector<1x128x256xf32>
    %133 = vector.shape_cast %132 : vector<1x128x256xf32> to vector<128x256xf32>
    %cst_148 = arith.constant dense<0.000000e+00> : vector<2x256xf32>
    %134 = tpu.matmul %131, %133, %cst_148 {dimension_numbers = #tpu.dot_dimension_numbers<[1], [0], [0], [1], [0, 0, 1, 1], [], []>} : vector<2x128xf32>, vector<128x256xf32>, vector<2x256xf32> -> vector<2x256xf32>
    %c1_149 = arith.constant 1 : index
    %c1_150 = arith.constant 1 : index
    %c0_151 = arith.constant 0 : index
    %c0_152 = arith.constant 0 : index
    %135 = vector.load %arg8[%c1_149, %c1_150, %c0_151, %c0_152] : memref<2x3x2x4xf32, #tpu.memory_space<vmem>>, vector<1x1x2x4xf32>
    %136 = vector.shape_cast %135 : vector<1x1x2x4xf32> to vector<2x4xf32>
    %cst_153 = arith.constant dense<0.000000e+00> : vector<2x128xf32>
    %137 = tpu.matmul %136, %105, %cst_153 {dimension_numbers = #tpu.dot_dimension_numbers<[1], [0], [0], [1], [0, 0, 1, 1], [], []>} : vector<2x4xf32>, vector<4x128xf32>, vector<2x128xf32> -> vector<2x128xf32>
    %c1_154 = arith.constant 1 : index
    %c0_155 = arith.constant 0 : index
    %c0_156 = arith.constant 0 : index
    %138 = vector.load %arg9[%c1_154, %c0_155, %c0_156] : memref<3x128x256xf32, #tpu.memory_space<vmem>>, vector<1x128x256xf32>
    %139 = vector.shape_cast %138 : vector<1x128x256xf32> to vector<128x256xf32>
    %cst_157 = arith.constant dense<0.000000e+00> : vector<2x256xf32>
    %140 = tpu.matmul %137, %139, %cst_157 {dimension_numbers = #tpu.dot_dimension_numbers<[1], [0], [0], [1], [0, 0, 1, 1], [], []>} : vector<2x128xf32>, vector<128x256xf32>, vector<2x256xf32> -> vector<2x256xf32>
    %141 = arith.addf %134, %140 : vector<2x256xf32>
    %c1_158 = arith.constant 1 : index
    %c2_159 = arith.constant 2 : index
    %c0_160 = arith.constant 0 : index
    %c0_161 = arith.constant 0 : index
    %142 = vector.load %arg8[%c1_158, %c2_159, %c0_160, %c0_161] : memref<2x3x2x4xf32, #tpu.memory_space<vmem>>, vector<1x1x2x4xf32>
    %143 = vector.shape_cast %142 : vector<1x1x2x4xf32> to vector<2x4xf32>
    %cst_162 = arith.constant dense<0.000000e+00> : vector<2x128xf32>
    %144 = tpu.matmul %143, %105, %cst_162 {dimension_numbers = #tpu.dot_dimension_numbers<[1], [0], [0], [1], [0, 0, 1, 1], [], []>} : vector<2x4xf32>, vector<4x128xf32>, vector<2x128xf32> -> vector<2x128xf32>
    %c2_163 = arith.constant 2 : index
    %c0_164 = arith.constant 0 : index
    %c0_165 = arith.constant 0 : index
    %145 = vector.load %arg9[%c2_163, %c0_164, %c0_165] : memref<3x128x256xf32, #tpu.memory_space<vmem>>, vector<1x128x256xf32>
    %146 = vector.shape_cast %145 : vector<1x128x256xf32> to vector<128x256xf32>
    %cst_166 = arith.constant dense<0.000000e+00> : vector<2x256xf32>
    %147 = tpu.matmul %144, %146, %cst_166 {dimension_numbers = #tpu.dot_dimension_numbers<[1], [0], [0], [1], [0, 0, 1, 1], [], []>} : vector<2x128xf32>, vector<128x256xf32>, vector<2x256xf32> -> vector<2x256xf32>
    %148 = arith.addf %141, %147 : vector<2x256xf32>
    %149 = vector.extract_strided_slice %148 {offsets = [0, 0], sizes = [2, 128], strides = [1, 1]} : vector<2x256xf32> to vector<2x128xf32>
    %150 = vector.extract_strided_slice %148 {offsets = [0, 128], sizes = [2, 128], strides = [1, 1]} : vector<2x256xf32> to vector<2x128xf32>
    %151 = arith.maximumf %149, %150 : vector<2x128xf32>
    %152 = arith.maximumf %128, %151 : vector<2x128xf32>
    %c0_167 = arith.constant 0 : index
    %c0_168 = arith.constant 0 : index
    %153 = vector.load %arg10[%c0_167, %c0_168] : memref<1x128xf32, #tpu.memory_space<vmem>>, vector<1x128xf32>
    %154 = vector.broadcast %153 : vector<1x128xf32> to vector<2x128xf32>
    %155 = arith.addf %152, %154 : vector<2x128xf32>
    %cst_169 = arith.constant 0.000000e+00 : f32
    %156 = vector.broadcast %cst_169 : f32 to vector<2x128xf32>
    %157 = arith.maximumf %155, %156 : vector<2x128xf32>
    %c0_170 = arith.constant 0 : index
    %c0_171 = arith.constant 0 : index
    %c0_172 = arith.constant 0 : index
    %158 = vector.load %arg11[%c0_170, %c0_171, %c0_172] : memref<2x128x128xf32, #tpu.memory_space<vmem>>, vector<1x128x128xf32>
    %159 = vector.shape_cast %158 : vector<1x128x128xf32> to vector<128x128xf32>
    %cst_173 = arith.constant dense<0.000000e+00> : vector<2x128xf32>
    %160 = tpu.matmul %157, %159, %cst_173 {dimension_numbers = #tpu.dot_dimension_numbers<[1], [0], [0], [1], [0, 0, 1, 1], [], []>} : vector<2x128xf32>, vector<128x128xf32>, vector<2x128xf32> -> vector<2x128xf32>
    %c0_174 = arith.constant 0 : index
    %c0_175 = arith.constant 0 : index
    %c0_176 = arith.constant 0 : index
    %161 = vector.load %arg12[%c0_174, %c0_175, %c0_176] : memref<2x4x2xf32, #tpu.memory_space<vmem>>, vector<1x4x2xf32>
    %162 = vector.shape_cast %161 : vector<1x4x2xf32> to vector<4x2xf32>
    %cst_177 = arith.constant dense<0.000000e+00> : vector<4x128xf32>
    %163 = tpu.matmul %162, %160, %cst_177 {dimension_numbers = #tpu.dot_dimension_numbers<[1], [0], [0], [1], [0, 0, 1, 1], [], []>} : vector<4x2xf32>, vector<2x128xf32>, vector<4x128xf32> -> vector<4x128xf32>
    %c1_178 = arith.constant 1 : index
    %c0_179 = arith.constant 0 : index
    %c0_180 = arith.constant 0 : index
    %164 = vector.load %arg11[%c1_178, %c0_179, %c0_180] : memref<2x128x128xf32, #tpu.memory_space<vmem>>, vector<1x128x128xf32>
    %165 = vector.shape_cast %164 : vector<1x128x128xf32> to vector<128x128xf32>
    %cst_181 = arith.constant dense<0.000000e+00> : vector<2x128xf32>
    %166 = tpu.matmul %157, %165, %cst_181 {dimension_numbers = #tpu.dot_dimension_numbers<[1], [0], [0], [1], [0, 0, 1, 1], [], []>} : vector<2x128xf32>, vector<128x128xf32>, vector<2x128xf32> -> vector<2x128xf32>
    %c1_182 = arith.constant 1 : index
    %c0_183 = arith.constant 0 : index
    %c0_184 = arith.constant 0 : index
    %167 = vector.load %arg12[%c1_182, %c0_183, %c0_184] : memref<2x4x2xf32, #tpu.memory_space<vmem>>, vector<1x4x2xf32>
    %168 = vector.shape_cast %167 : vector<1x4x2xf32> to vector<4x2xf32>
    %cst_185 = arith.constant dense<0.000000e+00> : vector<4x128xf32>
    %169 = tpu.matmul %168, %166, %cst_185 {dimension_numbers = #tpu.dot_dimension_numbers<[1], [0], [0], [1], [0, 0, 1, 1], [], []>} : vector<4x2xf32>, vector<2x128xf32>, vector<4x128xf32> -> vector<4x128xf32>
    %170 = arith.addf %163, %169 : vector<4x128xf32>
    %c0_186 = arith.constant 0 : index
    %c0_187 = arith.constant 0 : index
    %171 = vector.load %arg13[%c0_186, %c0_187] : memref<1x128xf32, #tpu.memory_space<vmem>>, vector<1x128xf32>
    %172 = vector.broadcast %171 : vector<1x128xf32> to vector<4x128xf32>
    %173 = arith.addf %170, %172 : vector<4x128xf32>
    %cst_188 = arith.constant 0.000000e+00 : f32
    %174 = vector.broadcast %cst_188 : f32 to vector<4x128xf32>
    %175 = arith.maximumf %173, %174 : vector<4x128xf32>
    %c0_189 = arith.constant 0 : index
    %c0_190 = arith.constant 0 : index
    %c0_191 = arith.constant 0 : index
    %176 = vector.load %arg14[%c0_189, %c0_190, %c0_191] : memref<2x128x128xf32, #tpu.memory_space<vmem>>, vector<1x128x128xf32>
    %177 = vector.shape_cast %176 : vector<1x128x128xf32> to vector<128x128xf32>
    %cst_192 = arith.constant dense<0.000000e+00> : vector<4x128xf32>
    %178 = tpu.matmul %175, %177, %cst_192 {dimension_numbers = #tpu.dot_dimension_numbers<[1], [0], [0], [1], [0, 0, 1, 1], [], []>} : vector<4x128xf32>, vector<128x128xf32>, vector<4x128xf32> -> vector<4x128xf32>
    %c0_193 = arith.constant 0 : index
    %c0_194 = arith.constant 0 : index
    %c0_195 = arith.constant 0 : index
    %179 = vector.load %arg15[%c0_193, %c0_194, %c0_195] : memref<2x8x4xf32, #tpu.memory_space<vmem>>, vector<1x8x4xf32>
    %180 = vector.shape_cast %179 : vector<1x8x4xf32> to vector<8x4xf32>
    %cst_196 = arith.constant dense<0.000000e+00> : vector<8x128xf32>
    %181 = tpu.matmul %180, %178, %cst_196 {dimension_numbers = #tpu.dot_dimension_numbers<[1], [0], [0], [1], [0, 0, 1, 1], [], []>} : vector<8x4xf32>, vector<4x128xf32>, vector<8x128xf32> -> vector<8x128xf32>
    %c1_197 = arith.constant 1 : index
    %c0_198 = arith.constant 0 : index
    %c0_199 = arith.constant 0 : index
    %182 = vector.load %arg14[%c1_197, %c0_198, %c0_199] : memref<2x128x128xf32, #tpu.memory_space<vmem>>, vector<1x128x128xf32>
    %183 = vector.shape_cast %182 : vector<1x128x128xf32> to vector<128x128xf32>
    %cst_200 = arith.constant dense<0.000000e+00> : vector<4x128xf32>
    %184 = tpu.matmul %175, %183, %cst_200 {dimension_numbers = #tpu.dot_dimension_numbers<[1], [0], [0], [1], [0, 0, 1, 1], [], []>} : vector<4x128xf32>, vector<128x128xf32>, vector<4x128xf32> -> vector<4x128xf32>
    %c1_201 = arith.constant 1 : index
    %c0_202 = arith.constant 0 : index
    %c0_203 = arith.constant 0 : index
    %185 = vector.load %arg15[%c1_201, %c0_202, %c0_203] : memref<2x8x4xf32, #tpu.memory_space<vmem>>, vector<1x8x4xf32>
    %186 = vector.shape_cast %185 : vector<1x8x4xf32> to vector<8x4xf32>
    %cst_204 = arith.constant dense<0.000000e+00> : vector<8x128xf32>
    %187 = tpu.matmul %186, %184, %cst_204 {dimension_numbers = #tpu.dot_dimension_numbers<[1], [0], [0], [1], [0, 0, 1, 1], [], []>} : vector<8x4xf32>, vector<4x128xf32>, vector<8x128xf32> -> vector<8x128xf32>
    %188 = arith.addf %181, %187 : vector<8x128xf32>
    %c0_205 = arith.constant 0 : index
    %c0_206 = arith.constant 0 : index
    %189 = vector.load %arg16[%c0_205, %c0_206] : memref<1x128xf32, #tpu.memory_space<vmem>>, vector<1x128xf32>
    %190 = vector.broadcast %189 : vector<1x128xf32> to vector<8x128xf32>
    %191 = arith.addf %188, %190 : vector<8x128xf32>
    %cst_207 = arith.constant 0.000000e+00 : f32
    %192 = vector.broadcast %cst_207 : f32 to vector<8x128xf32>
    %193 = arith.maximumf %191, %192 : vector<8x128xf32>
    %c0_208 = arith.constant 0 : index
    %c0_209 = arith.constant 0 : index
    %c0_210 = arith.constant 0 : index
    %194 = vector.load %arg17[%c0_208, %c0_209, %c0_210] : memref<2x128x128xf32, #tpu.memory_space<vmem>>, vector<1x128x128xf32>
    %195 = vector.shape_cast %194 : vector<1x128x128xf32> to vector<128x128xf32>
    %cst_211 = arith.constant dense<0.000000e+00> : vector<8x128xf32>
    %196 = tpu.matmul %193, %195, %cst_211 {dimension_numbers = #tpu.dot_dimension_numbers<[1], [0], [0], [1], [0, 0, 1, 1], [], []>} : vector<8x128xf32>, vector<128x128xf32>, vector<8x128xf32> -> vector<8x128xf32>
    %c0_212 = arith.constant 0 : index
    %c0_213 = arith.constant 0 : index
    %c0_214 = arith.constant 0 : index
    %197 = vector.load %arg18[%c0_212, %c0_213, %c0_214] : memref<2x16x8xf32, #tpu.memory_space<vmem>>, vector<1x16x8xf32>
    %198 = vector.shape_cast %197 : vector<1x16x8xf32> to vector<16x8xf32>
    %cst_215 = arith.constant dense<0.000000e+00> : vector<16x128xf32>
    %199 = tpu.matmul %198, %196, %cst_215 {dimension_numbers = #tpu.dot_dimension_numbers<[1], [0], [0], [1], [0, 0, 1, 1], [], []>} : vector<16x8xf32>, vector<8x128xf32>, vector<16x128xf32> -> vector<16x128xf32>
    %c1_216 = arith.constant 1 : index
    %c0_217 = arith.constant 0 : index
    %c0_218 = arith.constant 0 : index
    %200 = vector.load %arg17[%c1_216, %c0_217, %c0_218] : memref<2x128x128xf32, #tpu.memory_space<vmem>>, vector<1x128x128xf32>
    %201 = vector.shape_cast %200 : vector<1x128x128xf32> to vector<128x128xf32>
    %cst_219 = arith.constant dense<0.000000e+00> : vector<8x128xf32>
    %202 = tpu.matmul %193, %201, %cst_219 {dimension_numbers = #tpu.dot_dimension_numbers<[1], [0], [0], [1], [0, 0, 1, 1], [], []>} : vector<8x128xf32>, vector<128x128xf32>, vector<8x128xf32> -> vector<8x128xf32>
    %c1_220 = arith.constant 1 : index
    %c0_221 = arith.constant 0 : index
    %c0_222 = arith.constant 0 : index
    %203 = vector.load %arg18[%c1_220, %c0_221, %c0_222] : memref<2x16x8xf32, #tpu.memory_space<vmem>>, vector<1x16x8xf32>
    %204 = vector.shape_cast %203 : vector<1x16x8xf32> to vector<16x8xf32>
    %cst_223 = arith.constant dense<0.000000e+00> : vector<16x128xf32>
    %205 = tpu.matmul %204, %202, %cst_223 {dimension_numbers = #tpu.dot_dimension_numbers<[1], [0], [0], [1], [0, 0, 1, 1], [], []>} : vector<16x8xf32>, vector<8x128xf32>, vector<16x128xf32> -> vector<16x128xf32>
    %206 = arith.addf %199, %205 : vector<16x128xf32>
    %c0_224 = arith.constant 0 : index
    %c0_225 = arith.constant 0 : index
    %207 = vector.load %arg19[%c0_224, %c0_225] : memref<1x128xf32, #tpu.memory_space<vmem>>, vector<1x128xf32>
    %208 = vector.broadcast %207 : vector<1x128xf32> to vector<16x128xf32>
    %209 = arith.addf %206, %208 : vector<16x128xf32>
    %cst_226 = arith.constant 0.000000e+00 : f32
    %210 = vector.broadcast %cst_226 : f32 to vector<16x128xf32>
    %211 = arith.maximumf %209, %210 : vector<16x128xf32>
    %c0_227 = arith.constant 0 : index
    %c0_228 = arith.constant 0 : index
    %212 = vector.load %arg20[%c0_227, %c0_228] : memref<128x16xf32, #tpu.memory_space<vmem>>, vector<128x16xf32>
    %cst_229 = arith.constant dense<0.000000e+00> : vector<16x16xf32>
    %213 = tpu.matmul %211, %212, %cst_229 {dimension_numbers = #tpu.dot_dimension_numbers<[1], [0], [0], [1], [0, 0, 1, 1], [], []>} : vector<16x128xf32>, vector<128x16xf32>, vector<16x16xf32> -> vector<16x16xf32>
    %c0_230 = arith.constant 0 : index
    %c0_231 = arith.constant 0 : index
    %214 = vector.load %arg21[%c0_230, %c0_231] : memref<1x1xf32, #tpu.memory_space<vmem>>, vector<1x1xf32>
    %215 = vector.broadcast %214 : vector<1x1xf32> to vector<16x16xf32>
    %216 = arith.addf %213, %215 : vector<16x16xf32>
    %cst_232 = arith.constant 0.000000e+00 : f32
    %217 = vector.broadcast %cst_232 : f32 to vector<16x16xf32>
    %218 = arith.subf %217, %216 : vector<16x16xf32>
    %219 = math.exp %218 : vector<16x16xf32>
    %cst_233 = arith.constant 1.000000e+00 : f32
    %220 = vector.broadcast %cst_233 : f32 to vector<16x16xf32>
    %221 = arith.addf %220, %219 : vector<16x16xf32>
    %cst_234 = arith.constant 1.000000e+00 : f32
    %222 = vector.broadcast %cst_234 : f32 to vector<16x16xf32>
    %223 = arith.divf %222, %221 : vector<16x16xf32>
    %c0_235 = arith.constant 0 : index
    %c0_236 = arith.constant 0 : index
    %c0_237 = arith.constant 0 : index
    %224 = vector.load %arg22[%c0_235, %c0_236, %c0_237] : memref<1x16x16xf32, #tpu.memory_space<vmem>>, vector<1x16x16xf32>
    %225 = vector.shape_cast %224 : vector<1x16x16xf32> to vector<16x16xf32>
    %226 = vector.shape_cast %223 : vector<16x16xf32> to vector<1x16x16xf32>
    tpu.vector_store %arg22[%c0_235, %c0_236, %c0_237], %226 {strides = array<i32>} : memref<1x16x16xf32, #tpu.memory_space<vmem>>, vector<1x16x16xf32>,
    return
  }
  func.func @transform_0(%arg0: i32) -> (i32, i32, i32) {
    %c0_i32 = arith.constant 0 : i32
    %c0_i32_0 = arith.constant 0 : i32
    %c0_i32_1 = arith.constant 0 : i32
    return %arg0, %c0_i32, %c0_i32_0 : i32, i32, i32
  }
  func.func @transform_1(%arg0: i32) -> (i32, i32, i32, i32) {
    %c0_i32 = arith.constant 0 : i32
    %c0_i32_0 = arith.constant 0 : i32
    %c0_i32_1 = arith.constant 0 : i32
    %c0_i32_2 = arith.constant 0 : i32
    %c0_i32_3 = arith.constant 0 : i32
    return %c0_i32, %c0_i32_0, %c0_i32_1, %c0_i32_2 : i32, i32, i32, i32
  }
  func.func @transform_2(%arg0: i32) -> (i32, i32, i32) {
    %c0_i32 = arith.constant 0 : i32
    %c0_i32_0 = arith.constant 0 : i32
    %c0_i32_1 = arith.constant 0 : i32
    %c0_i32_2 = arith.constant 0 : i32
    return %c0_i32, %c0_i32_0, %c0_i32_1 : i32, i32, i32
  }
  func.func @transform_3(%arg0: i32) -> (i32, i32) {
    %c0_i32 = arith.constant 0 : i32
    %c0_i32_0 = arith.constant 0 : i32
    %c0_i32_1 = arith.constant 0 : i32
    return %c0_i32, %c0_i32_0 : i32, i32
  }
  func.func @transform_4(%arg0: i32) -> (i32, i32, i32, i32) {
    %c0_i32 = arith.constant 0 : i32
    %c0_i32_0 = arith.constant 0 : i32
    %c0_i32_1 = arith.constant 0 : i32
    %c0_i32_2 = arith.constant 0 : i32
    %c0_i32_3 = arith.constant 0 : i32
    return %c0_i32, %c0_i32_0, %c0_i32_1, %c0_i32_2 : i32, i32, i32, i32
  }
  func.func @transform_5(%arg0: i32) -> (i32, i32, i32) {
    %c0_i32 = arith.constant 0 : i32
    %c0_i32_0 = arith.constant 0 : i32
    %c0_i32_1 = arith.constant 0 : i32
    %c0_i32_2 = arith.constant 0 : i32
    return %c0_i32, %c0_i32_0, %c0_i32_1 : i32, i32, i32
  }
  func.func @transform_6(%arg0: i32) -> (i32, i32) {
    %c0_i32 = arith.constant 0 : i32
    %c0_i32_0 = arith.constant 0 : i32
    %c0_i32_1 = arith.constant 0 : i32
    return %c0_i32, %c0_i32_0 : i32, i32
  }
  func.func @transform_7(%arg0: i32) -> (i32, i32, i32, i32) {
    %c0_i32 = arith.constant 0 : i32
    %c0_i32_0 = arith.constant 0 : i32
    %c0_i32_1 = arith.constant 0 : i32
    %c0_i32_2 = arith.constant 0 : i32
    %c0_i32_3 = arith.constant 0 : i32
    return %c0_i32, %c0_i32_0, %c0_i32_1, %c0_i32_2 : i32, i32, i32, i32
  }
  func.func @transform_8(%arg0: i32) -> (i32, i32, i32) {
    %c0_i32 = arith.constant 0 : i32
    %c0_i32_0 = arith.constant 0 : i32
    %c0_i32_1 = arith.constant 0 : i32
    %c0_i32_2 = arith.constant 0 : i32
    return %c0_i32, %c0_i32_0, %c0_i32_1 : i32, i32, i32
  }
  func.func @transform_9(%arg0: i32) -> (i32, i32) {
    %c0_i32 = arith.constant 0 : i32
    %c0_i32_0 = arith.constant 0 : i32
    %c0_i32_1 = arith.constant 0 : i32
    return %c0_i32, %c0_i32_0 : i32, i32
  }
  func.func @transform_10(%arg0: i32) -> (i32, i32, i32) {
    %c0_i32 = arith.constant 0 : i32
    %c0_i32_0 = arith.constant 0 : i32
    %c0_i32_1 = arith.constant 0 : i32
    %c0_i32_2 = arith.constant 0 : i32
    return %c0_i32, %c0_i32_0, %c0_i32_1 : i32, i32, i32
  }
  func.func @transform_11(%arg0: i32) -> (i32, i32, i32) {
    %c0_i32 = arith.constant 0 : i32
    %c0_i32_0 = arith.constant 0 : i32
    %c0_i32_1 = arith.constant 0 : i32
    %c0_i32_2 = arith.constant 0 : i32
    return %c0_i32, %c0_i32_0, %c0_i32_1 : i32, i32, i32
  }
  func.func @transform_12(%arg0: i32) -> (i32, i32) {
    %c0_i32 = arith.constant 0 : i32
    %c0_i32_0 = arith.constant 0 : i32
    %c0_i32_1 = arith.constant 0 : i32
    return %c0_i32, %c0_i32_0 : i32, i32
  }
  func.func @transform_13(%arg0: i32) -> (i32, i32, i32) {
    %c0_i32 = arith.constant 0 : i32
    %c0_i32_0 = arith.constant 0 : i32
    %c0_i32_1 = arith.constant 0 : i32
    %c0_i32_2 = arith.constant 0 : i32
    return %c0_i32, %c0_i32_0, %c0_i32_1 : i32, i32, i32
  }
  func.func @transform_14(%arg0: i32) -> (i32, i32, i32) {
    %c0_i32 = arith.constant 0 : i32
    %c0_i32_0 = arith.constant 0 : i32
    %c0_i32_1 = arith.constant 0 : i32
    %c0_i32_2 = arith.constant 0 : i32
    return %c0_i32, %c0_i32_0, %c0_i32_1 : i32, i32, i32
  }
  func.func @transform_15(%arg0: i32) -> (i32, i32) {
    %c0_i32 = arith.constant 0 : i32
    %c0_i32_0 = arith.constant 0 : i32
    %c0_i32_1 = arith.constant 0 : i32
    return %c0_i32, %c0_i32_0 : i32, i32
  }
  func.func @transform_16(%arg0: i32) -> (i32, i32, i32) {
    %c0_i32 = arith.constant 0 : i32
    %c0_i32_0 = arith.constant 0 : i32
    %c0_i32_1 = arith.constant 0 : i32
    %c0_i32_2 = arith.constant 0 : i32
    return %c0_i32, %c0_i32_0, %c0_i32_1 : i32, i32, i32
  }
  func.func @transform_17(%arg0: i32) -> (i32, i32, i32) {
    %c0_i32 = arith.constant 0 : i32
    %c0_i32_0 = arith.constant 0 : i32
    %c0_i32_1 = arith.constant 0 : i32
    %c0_i32_2 = arith.constant 0 : i32
    return %c0_i32, %c0_i32_0, %c0_i32_1 : i32, i32, i32
  }
  func.func @transform_18(%arg0: i32) -> (i32, i32) {
    %c0_i32 = arith.constant 0 : i32
    %c0_i32_0 = arith.constant 0 : i32
    %c0_i32_1 = arith.constant 0 : i32
    return %c0_i32, %c0_i32_0 : i32, i32
  }
  func.func @transform_19(%arg0: i32) -> (i32, i32) {
    %c0_i32 = arith.constant 0 : i32
    %c0_i32_0 = arith.constant 0 : i32
    %c0_i32_1 = arith.constant 0 : i32
    return %c0_i32, %c0_i32_0 : i32, i32
  }
  func.func @transform_20(%arg0: i32) -> (i32, i32) {
    %c0_i32 = arith.constant 0 : i32
    %c0_i32_0 = arith.constant 0 : i32
    %c0_i32_1 = arith.constant 0 : i32
    return %c0_i32, %c0_i32_0 : i32, i32
  }
  func.func @transform_21(%arg0: i32) -> (i32, i32, i32) {
    %c0_i32 = arith.constant 0 : i32
    %c0_i32_0 = arith.constant 0 : i32
    %c0_i32_1 = arith.constant 0 : i32
    return %arg0, %c0_i32, %c0_i32_0 : i32, i32, i32
  }
}

</mosaic_0001>

<bundles_post_ra>
// kernel: tile.59
= control target key start
LH: loop header
LB: loop body
LE: loop exit
PB: predicated region body
PF: predicated region fallthrough
CT: control target
= control target key end

     0   :  { %s131_s10 = smov 120   ;;  %s132_s11 = smov 104   ;;  %vm3_vm0 = vcmask 64512   ;;  %vm9_vm1 = vcmask 1048512   ;;  %vm15_vm2 = vcmask 982912   ;;  %vm21_vm3 = vcmask 917312   ;;  %s207_s0 = inlined_call_operand.vmem [shape: f32[16,8], index: 0, kind: input, shape index: {}]   ;;  %s208_s1 = inlined_call_operand.vmem [shape: f32[1,128], index: 1, kind: output, shape index: {}]  }
   0x1   :  { %v101_v0 = vld [vmem:[%s207_s0 + $0xf] sm:$0x1]   ;;  %v103_v1 = vld [vmem:[%s207_s0 + $0xd] sm:$0x1]   ;;  %v102_v2 = vld [vmem:[%s207_s0 + $0xe] sm:$0x1]  }
   0x2   :  { %7 = vrot.lane.b32.xlu0 %v101_v0, %s131_s10  ;;  %19 = vrot.lane.b32.xlu1 %v103_v1, %s132_s11  ;;  %v104_v3 = vld [vmem:[%s207_s0 + $0xc] sm:$0x1]   ;;  %s133_s16 = smov 112   ;;  %s134_s17 = smov 96   ;;  %v105_v4 = vld [vmem:[%s207_s0 + $0xb] sm:$0x1]  }
   0x3   :  { %v106_v5 = vld [vmem:[%s207_s0 + $0xa] sm:$0x1]   ;;  %v2_v6 = vld [vmem:[%s207_s0] sm:$0x1]   ;;  %s135_s24 = smov 88   ;;  %s136_s25 = smov 80  }
   0x4   :  { %4 = vst.msk [vmem:[#allocation0] sm:$0x1] %vm3_vm0, %v2_v6   ;;  %v107_v7 = vld [vmem:[%s207_s0 + $0x9] sm:$0x1]   ;;  %v108_v8 = vld [vmem:[%s207_s0 + $0x8] sm:$0x1]  }
   0x5   :  { %s137_s30 = smov 72   ;;  %s138_s2 = smov 64   ;;  %v109_v9 = vld [vmem:[%s207_s0 + $0x7] sm:$0x1]   ;;  %v110_v10 = vld [vmem:[%s207_s0 + $0x6] sm:$0x1]  }
   0x6   :  { %13 = vrot.lane.b32.xlu0 %v102_v2, %s133_s16  ;;  %25 = vrot.lane.b32.xlu1 %v104_v3, %s134_s17  ;;  %s139_s7 = smov 56   ;;  %s140_s8 = smov 48   ;;  %v111_v11 = vld [vmem:[%s207_s0 + $0x5] sm:$0x1]   ;;  %v112_v12 = vld [vmem:[%s207_s0 + $0x4] sm:$0x1]  }
   0x7   :  { %s141_s13 = smov 40   ;;  %s142_s14 = smov 32   ;;  %v113_v13 = vld [vmem:[%s207_s0 + $0x3] sm:$0x1]   ;;  %v114_v14 = vld [vmem:[%s207_s0 + $0x2] sm:$0x1]  }
   0x8   :  { %s143_s19 = smov 24   ;;  %s144_s20 = smov 16   ;;  %v115_v15 = vld [vmem:[%s207_s0 + $0x1] sm:$0x1]   ;;  %vm27_vm4 = vcmask 851712   ;;  %vm33_vm5 = vcmask 786112  }
   0x9   :  { %s145_s0 = smov 8   ;;  %vm39_vm6 = vcmask 720512   ;;  %vm45_vm7 = vcmask 654912   ;;  %vm51_vm8 = vcmask 589312   ;;  %vm57_vm9 = vcmask 523712  }
   0xa   :  { %31 = vrot.lane.b32.xlu0 %v105_v4, %s135_s24  ;;  %37 = vrot.lane.b32.xlu1 %v106_v5, %s136_s25  ;;  %vm63_vm10 = vcmask 458112   ;;  %vm69_vm11 = vcmask 392512   ;;  %vm75_vm12 = vcmask 326912   ;;  %vm81_vm13 = vcmask 261312  }
   0xb   :  { %vm87_vm14 = vcmask 195712   ;;  %vm93_vm15 = vcmask 130112  }
   0xe   :  { %43 = vrot.lane.b32.xlu0 %v107_v7, %s137_s30  ;;  %49 = vrot.lane.b32.xlu1 %v108_v8, %s138_s2 }
  0x12   :  { %55 = vrot.lane.b32.xlu0 %v109_v9, %s139_s7  ;;  %61 = vrot.lane.b32.xlu1 %v110_v10, %s140_s8 }
  0x16   :  { %67 = vrot.lane.b32.xlu0 %v111_v11, %s141_s13  ;;  %73 = vrot.lane.b32.xlu1 %v112_v12, %s142_s14 }
  0x1a   :  { %79 = vrot.lane.b32.xlu0 %v113_v13, %s143_s19  ;;  %85 = vrot.lane.b32.xlu1 %v114_v14, %s144_s20 }
  0x1e   :  { %91 = vrot.lane.b32.xlu0 %v115_v15, %s145_s0 }
  0x74   :  { %v8_v16 = vpop.permute.xlu0 %7   ;;  %v20_v17 = vpop.permute.xlu1 %19  }
  0x75   :  { %10 = vst.msk [vmem:[#allocation0] sm:$0x1] %vm9_vm1, %v8_v16  }
  0x78   :  { %v14_v18 = vpop.permute.xlu0 %13   ;;  %v26_v19 = vpop.permute.xlu1 %25  }
  0x79   :  { %16 = vst.msk [vmem:[#allocation0] sm:$0x1] %vm15_vm2, %v14_v18  }
  0x7a   :  { %22 = vst.msk [vmem:[#allocation0] sm:$0x1] %vm21_vm3, %v20_v17  }
  0x7b   :  { %28 = vst.msk [vmem:[#allocation0] sm:$0x1] %vm27_vm4, %v26_v19  }
  0x7c   :  { %v32_v20 = vpop.permute.xlu0 %31   ;;  %v38_v21 = vpop.permute.xlu1 %37  }
  0x7d   :  { %34 = vst.msk [vmem:[#allocation0] sm:$0x1] %vm33_vm5, %v32_v20  }
  0x7e   :  { %40 = vst.msk [vmem:[#allocation0] sm:$0x1] %vm39_vm6, %v38_v21  }
  0x80   :  { %v44_v22 = vpop.permute.xlu0 %43   ;;  %v50_v23 = vpop.permute.xlu1 %49  }
  0x81   :  { %46 = vst.msk [vmem:[#allocation0] sm:$0x1] %vm45_vm7, %v44_v22  }
  0x82   :  { %52 = vst.msk [vmem:[#allocation0] sm:$0x1] %vm51_vm8, %v50_v23  }
  0x84   :  { %v56_v24 = vpop.permute.xlu0 %55   ;;  %v62_v25 = vpop.permute.xlu1 %61  }
  0x85   :  { %58 = vst.msk [vmem:[#allocation0] sm:$0x1] %vm57_vm9, %v56_v24  }
  0x86   :  { %64 = vst.msk [vmem:[#allocation0] sm:$0x1] %vm63_vm10, %v62_v25  }
  0x88   :  { %v68_v26 = vpop.permute.xlu0 %67   ;;  %v74_v27 = vpop.permute.xlu1 %73  }
  0x89   :  { %70 = vst.msk [vmem:[#allocation0] sm:$0x1] %vm69_vm11, %v68_v26  }
  0x8a   :  { %76 = vst.msk [vmem:[#allocation0] sm:$0x1] %vm75_vm12, %v74_v27  }
  0x8c   :  { %v80_v28 = vpop.permute.xlu0 %79   ;;  %v86_v29 = vpop.permute.xlu1 %85  }
  0x8d   :  { %82 = vst.msk [vmem:[#allocation0] sm:$0x1] %vm81_vm13, %v80_v28  }
  0x8e   :  { %88 = vst.msk [vmem:[#allocation0] sm:$0x1] %vm87_vm14, %v86_v29  }
  0x90   :  { %v92_v30 = vpop.permute.xlu0 %91  }
  0x91   :  { %94 = vst.msk [vmem:[#allocation0] sm:$0x1] %vm93_vm15, %v92_v30  }
  0x98   :  { %v98_v31 = vld [vmem:[#allocation0] sm:$0x1] }
  0x99   :  { %100 = vst [vmem:[%s208_s1] sm:$0x1] %v98_v31 }

// kernel: tile.58
= control target key start
LH: loop header
LB: loop body
LE: loop exit
PB: predicated region body
PF: predicated region fallthrough
CT: control target
= control target key end

     0   :  { %s28_s0 = inlined_call_operand.vmem [shape: f32[8], index: 0, kind: input, shape index: {}]   ;;  %s29_s1 = inlined_call_operand.vmem [shape: f32[16,8], index: 1, kind: output, shape index: {}]  }
   0x1   :  { %v4_v0 = vld [vmem:[%s28_s0] ss:$0 sm:$0xff] }
   0x2   :  { %5 = vst [vmem:[%s29_s1] sm:$0xff] %v4_v0  ;;  %8 = vst [vmem:[%s29_s1 + $0x8] sm:$0xff] %v4_v0 }

// kernel: tile.33
= control target key start
LH: loop header
LB: loop body
LE: loop exit
PB: predicated region body
PF: predicated region fallthrough
CT: control target
= control target key end

     0   :  { %s22_s0 = inlined_call_operand.vmem [shape: f32[16], index: 0, kind: input, shape index: {}]   ;;  %s23_s1 = inlined_call_operand.vmem [shape: f32[8,16], index: 1, kind: output, shape index: {}]  }
   0x1   :  { %v4_v0 = vld [vmem:[%s22_s0] ss:$0 sm:$0xff] }
   0x2   :  { %5 = vst [vmem:[%s23_s1] sm:$0xff] %v4_v0 }

// kernel: tile.34
= control target key start
LH: loop header
LB: loop body
LE: loop exit
PB: predicated region body
PF: predicated region fallthrough
CT: control target
= control target key end

     0   :  { %s67_s10 = smov 112   ;;  %s68_s11 = smov 80   ;;  %vm3_vm0 = vcmask 130048   ;;  %vm9_vm1 = vcmask 1048448   ;;  %vm15_vm2 = vcmask 917248   ;;  %vm21_vm3 = vcmask 786048   ;;  %s111_s0 = inlined_call_operand.vmem [shape: f32[8,16], index: 0, kind: input, shape index: {}]   ;;  %s112_s1 = inlined_call_operand.vmem [shape: f32[1,128], index: 1, kind: output, shape index: {}]  }
   0x1   :  { %v53_v0 = vld [vmem:[%s111_s0 + $0x7] sm:$0x1]   ;;  %v55_v1 = vld [vmem:[%s111_s0 + $0x5] sm:$0x1]   ;;  %v54_v2 = vld [vmem:[%s111_s0 + $0x6] sm:$0x1]  }
   0x2   :  { %7 = vrot.lane.b32.xlu0 %v53_v0, %s67_s10  ;;  %19 = vrot.lane.b32.xlu1 %v55_v1, %s68_s11  ;;  %v56_v3 = vld [vmem:[%s111_s0 + $0x4] sm:$0x1]   ;;  %v2_v4 = vld [vmem:[%s111_s0] sm:$0x1]   ;;  %s69_s18 = smov 96   ;;  %s70_s19 = smov 64  }
   0x3   :  { %4 = vst.msk [vmem:[#allocation0] sm:$0x1] %vm3_vm0, %v2_v4   ;;  %v57_v5 = vld [vmem:[%s111_s0 + $0x3] sm:$0x1]   ;;  %v58_v6 = vld [vmem:[%s111_s0 + $0x2] sm:$0x1]  }
   0x4   :  { %s71_s24 = smov 48   ;;  %s72_s25 = smov 32   ;;  %v59_v7 = vld [vmem:[%s111_s0 + $0x1] sm:$0x1]   ;;  %vm27_vm4 = vcmask 654848   ;;  %vm33_vm5 = vcmask 523648  }
   0x5   :  { %s73_s0 = smov 16   ;;  %vm39_vm6 = vcmask 392448   ;;  %vm45_vm7 = vcmask 261248  }
   0x6   :  { %13 = vrot.lane.b32.xlu0 %v54_v2, %s69_s18  ;;  %25 = vrot.lane.b32.xlu1 %v56_v3, %s70_s19 }
   0xa   :  { %31 = vrot.lane.b32.xlu0 %v57_v5, %s71_s24  ;;  %37 = vrot.lane.b32.xlu1 %v58_v6, %s72_s25 }
   0xe   :  { %43 = vrot.lane.b32.xlu0 %v59_v7, %s73_s0 }
  0x74   :  { %v8_v8 = vpop.permute.xlu0 %7   ;;  %v20_v9 = vpop.permute.xlu1 %19  }
  0x75   :  { %10 = vst.msk [vmem:[#allocation0] sm:$0x1] %vm9_vm1, %v8_v8  }
  0x78   :  { %v14_v10 = vpop.permute.xlu0 %13   ;;  %v26_v11 = vpop.permute.xlu1 %25  }
  0x79   :  { %16 = vst.msk [vmem:[#allocation0] sm:$0x1] %vm15_vm2, %v14_v10  }
  0x7a   :  { %22 = vst.msk [vmem:[#allocation0] sm:$0x1] %vm21_vm3, %v20_v9  }
  0x7b   :  { %28 = vst.msk [vmem:[#allocation0] sm:$0x1] %vm27_vm4, %v26_v11  }
  0x7c   :  { %v32_v12 = vpop.permute.xlu0 %31   ;;  %v38_v13 = vpop.permute.xlu1 %37  }
  0x7d   :  { %34 = vst.msk [vmem:[#allocation0] sm:$0x1] %vm33_vm5, %v32_v12  }
  0x7e   :  { %40 = vst.msk [vmem:[#allocation0] sm:$0x1] %vm39_vm6, %v38_v13  }
  0x80   :  { %v44_v14 = vpop.permute.xlu0 %43  }
  0x81   :  { %46 = vst.msk [vmem:[#allocation0] sm:$0x1] %vm45_vm7, %v44_v14  }
  0x88   :  { %v50_v15 = vld [vmem:[#allocation0] sm:$0x1] }
  0x89   :  { %52 = vst [vmem:[%s112_s1] sm:$0x1] %v50_v15 }

// kernel: tile.38
= control target key start
LH: loop header
LB: loop body
LE: loop exit
PB: predicated region body
PF: predicated region fallthrough
CT: control target
= control target key end

     0   :  { %s22_s0 = inlined_call_operand.vmem [shape: f32[32], index: 0, kind: input, shape index: {}]   ;;  %s23_s1 = inlined_call_operand.vmem [shape: f32[4,32], index: 1, kind: output, shape index: {}]  }
   0x1   :  { %v4_v0 = vld [vmem:[%s22_s0] ss:$0 sm:$0xff] }
   0x2   :  { %5 = vst [vmem:[%s23_s1] sm:$0xf] %v4_v0 }

// kernel: tile.39
= control target key start
LH: loop header
LB: loop body
LE: loop exit
PB: predicated region body
PF: predicated region fallthrough
CT: control target
= control target key end

     0   :  { %vm7_vm0 = vcmask 261120   ;;  %s37_s8 = smov 32   ;;  %s38_s9 = smov 64   ;;  %vm13_vm1 = vcmask 1048320   ;;  %vm19_vm2 = vcmask 785920   ;;  %vm25_vm3 = vcmask 523520   ;;  %s55_s0 = inlined_call_operand.vmem [shape: f32[4,32], index: 0, kind: input, shape index: {}]   ;;  %s56_s1 = inlined_call_operand.vmem [shape: f32[1,128], index: 1, kind: output, shape index: {}]  }
   0x1   :  { %v4_v0 = vld [vmem:[%s55_s0] sm:$0xf]  ;;  %s36_s0 = smov 96  }
   0x2   :  { %5 = vst [vmem:[#allocation1] sm:$0xf] %v4_v0 }
   0x9   :  { %v10_v1 = vld [vmem:[#allocation1 + $0x3] sm:$0x1]   ;;  %v22_v2 = vld [vmem:[#allocation1 + $0x1] sm:$0x1]   ;;  %v6_v3 = vld [vmem:[#allocation1] sm:$0x1]  }
   0xa   :  { %11 = vrot.lane.b32.xlu0 %v10_v1, %s36_s0  ;;  %23 = vrot.lane.b32.xlu1 %v22_v2, %s37_s8  ;;  %v16_v4 = vld [vmem:[#allocation1 + $0x2] sm:$0x1]   ;;  %8 = vst.msk [vmem:[#allocation0] sm:$0x1] %vm7_vm0, %v6_v3  }
   0xe   :  { %17 = vrot.lane.b32.xlu0 %v16_v4, %s38_s9 }
  0x7c   :  { %v12_v5 = vpop.permute.xlu0 %11   ;;  %v24_v6 = vpop.permute.xlu1 %23  }
  0x7d   :  { %14 = vst.msk [vmem:[#allocation0] sm:$0x1] %vm13_vm1, %v12_v5  }
  0x80   :  { %v18_v7 = vpop.permute.xlu0 %17  }
  0x81   :  { %20 = vst.msk [vmem:[#allocation0] sm:$0x1] %vm19_vm2, %v18_v7  }
  0x82   :  { %26 = vst.msk [vmem:[#allocation0] sm:$0x1] %vm25_vm3, %v24_v6  }
  0x89   :  { %v30_v8 = vld [vmem:[#allocation0] sm:$0x1] }
  0x8a   :  { %32 = vst [vmem:[%s56_s1] sm:$0x1] %v30_v8 }

// kernel: tile.44
= control target key start
LH: loop header
LB: loop body
LE: loop exit
PB: predicated region body
PF: predicated region fallthrough
CT: control target
= control target key end

     0   :  { %vm7_vm0 = vcmask 523264   ;;  %vm13_vm1 = vcmask 1048064   ;;  %s39_s0 = inlined_call_operand.vmem [shape: f32[2,64], index: 0, kind: input, shape index: {}]   ;;  %s40_s1 = inlined_call_operand.vmem [shape: f32[1,128], index: 1, kind: output, shape index: {}]  }
   0x1   :  { %v4_v0 = vld [vmem:[%s39_s0] sm:$0x3]  ;;  %s22_s0 = smov 64  }
   0x2   :  { %5 = vst [vmem:[#allocation1] sm:$0x3] %v4_v0 }
   0x9   :  { %v10_v1 = vld [vmem:[#allocation1 + $0x1] sm:$0x1]   ;;  %v6_v2 = vld [vmem:[#allocation1] sm:$0x1]  }
   0xa   :  { %11 = vrot.lane.b32.xlu0 %v10_v1, %s22_s0  ;;  %8 = vst.msk [vmem:[#allocation0] sm:$0x1] %vm7_vm0, %v6_v2  }
  0x7c   :  { %v12_v3 = vpop.permute.xlu0 %11  }
  0x7d   :  { %14 = vst.msk [vmem:[#allocation0] sm:$0x1] %vm13_vm1, %v12_v3  }
  0x84   :  { %v18_v4 = vld [vmem:[#allocation0] sm:$0x1] }
  0x85   :  { %20 = vst [vmem:[%s40_s1] sm:$0x1] %v18_v4 }

// kernel: tile.43
= control target key start
LH: loop header
LB: loop body
LE: loop exit
PB: predicated region body
PF: predicated region fallthrough
CT: control target
= control target key end

     0   :  { %s22_s0 = inlined_call_operand.vmem [shape: f32[64], index: 0, kind: input, shape index: {}]   ;;  %s23_s1 = inlined_call_operand.vmem [shape: f32[2,64], index: 1, kind: output, shape index: {}]  }
   0x1   :  { %v4_v0 = vld [vmem:[%s22_s0] ss:$0 sm:$0xff] }
   0x2   :  { %5 = vst [vmem:[%s23_s1] sm:$0x3] %v4_v0 }

// kernel: cnn_for_segmentation_forward.1
= control target key start
LH: loop header
LB: loop body
LE: loop exit
PB: predicated region body
PF: predicated region fallthrough
CT: control target
= control target key end

     0   :  { %s7886_s0 = inlined_call_operand.vmem [shape: f32[2,16,16], index: 0, kind: input, shape index: {}]   ;;  %s7887_s1 = inlined_call_operand.vmem [shape: f32[2,3,8,16], index: 1, kind: input, shape index: {}]   ;;  %s7888_s2 = inlined_call_operand.vmem [shape: f32[3,16,256], index: 2, kind: input, shape index: {}]   ;;  %s7889_s3 = inlined_call_operand.vmem [shape: f32[1,128], index: 3, kind: input, shape index: {}]   ;;  %s7890_s4 = inlined_call_operand.vmem [shape: f32[2,3,4,8], index: 4, kind: input, shape index: {}]   ;;  %s7891_s5 = inlined_call_operand.vmem [shape: f32[3,128,256], index: 5, kind: input, shape index: {}]   ;;  %s7892_s6 = inlined_call_operand.vmem [shape: f32[1,128], index: 6, kind: input, shape index: {}]   ;;  %s7893_s7 = inlined_call_operand.vmem [shape: f32[2,3,2,4], index: 7, kind: input, shape index: {}]   ;;  %s7894_s8 = inlined_call_operand.vmem [shape: f32[3,128,256], index: 8, kind: input, shape index: {}]   ;;  %s7895_s9 = inlined_call_operand.vmem [shape: f32[1,128], index: 9, kind: input, shape index: {}]   ;;  %s7896_s10 = inlined_call_operand.vmem [shape: f32[2,128,128], index: 10, kind: input, shape index: {}]   ;;  %s7897_s11 = inlined_call_operand.vmem [shape: f32[2,4,2], index: 11, kind: input, shape index: {}]   ;;  %s7898_s12 = inlined_call_operand.vmem [shape: f32[1,128], index: 12, kind: input, shape index: {}]   ;;  %s7899_s13 = inlined_call_operand.vmem [shape: f32[2,128,128], index: 13, kind: input, shape index: {}]   ;;  %s7900_s14 = inlined_call_operand.vmem [shape: f32[2,8,4], index: 14, kind: input, shape index: {}]   ;;  %s7901_s15 = inlined_call_operand.vmem [shape: f32[1,128], index: 15, kind: input, shape index: {}]   ;;  %s7902_s16 = inlined_call_operand.vmem [shape: f32[2,128,128], index: 16, kind: input, shape index: {}]   ;;  %s7903_s17 = inlined_call_operand.vmem [shape: f32[2,16,8], index: 17, kind: input, shape index: {}]   ;;  %s7904_s18 = inlined_call_operand.vmem [shape: f32[1,128], index: 18, kind: input, shape index: {}]   ;;  %s7905_s19 = inlined_call_operand.vmem [shape: f32[128,16], index: 19, kind: input, shape index: {}]   ;;  %s7906_s20 = inlined_call_operand.<no memory space> [shape: f32[1,1], index: 20, kind: input, shape index: {}]   ;;  %s7907_s21 = inlined_call_operand.hbm [shape: f32[2,16,16], index: 21, kind: output, shape index: {}]  }
   0x1   :  { %7919 = sst [smem:[#allocation11_spill]] %s7886_s0  ;;  %v26_v0 = vstv %s7906_s20 }
   0x2   :  { %7920 = sst [smem:[#allocation12_spill]] %s7887_s1  ;;  %27 = vst [vmem:[#allocation2] sm:$0x1] %v26_v0 }
   0x3   :  { %7921 = sst [smem:[#allocation13_spill]] %s7888_s2 }
   0x4   :  { %7922 = sst [smem:[#allocation14_spill]] %s7889_s3 }
   0x5   :  { %7923 = sst [smem:[#allocation15_spill]] %s7890_s4 }
   0x6   :  { %7924 = sst [smem:[#allocation16_spill]] %s7891_s5 }
   0x7   :  { %28 = vsyncpa [#allocation4], 0 }
   0x8   :  { %30 = vsyncpa [#allocation4 + $0x1], 0  ;;  %s6470_s26 = smov 0   ;;  %s6472_s27 = smov 0  }
   0x9   :  { %s6474_s3 = smov 0   ;;  %s6476_s28 = smov 0  }
   0xa LB: > { %7925 = sst [smem:[#allocation6_spill]] %s6336_s26  ;;  %s6491_s20 = sadd.s32 4294967295, %s6348_s28   ;;  %s6348_s28 = sphi %s6476_s28, %s7941_s28   ;;  %s6344_s3 = sphi %s6474_s3, %s7943_s3   ;;  %s6340_s27 = sphi %s6472_s27, %s7945_s27   ;;  %s6336_s26 = sphi %s6470_s26, %s7944_s26  }
   0xb   : > { %7926 = sst [smem:[#allocation7_spill]] %s6344_s3  ;;  %s4785_s29 = sadd.s32 4294967294, %s6348_s28  }
   0xc   : > { %s6495_s0 = sadd.s32 1, %s6348_s28   ;;  %s489_s4 = sadd.s32 1, %s6344_s3 }
   0xd   : > { %7927 = sst [smem:[#allocation8_spill]] %s6495_s0  ;;  %s486_s30 = ssub.s32 %s6348_s28, %s6495_s0 }
   0xe   : > { %p499_p0 = scmp.ne.s32.totalorder %s6344_s3, %s6340_s27  ;;  %p487_p1 = scmp.eq.s32.totalorder %s486_s30, 0 }
   0xf   : > { %p500_p2 = scmp.eq.s32.totalorder %s6491_s20, 1  ;;  %p505_p3 = scmp.ne.s32.totalorder %s6340_s27, %s6336_s26 }
  0x10   : > { %p506_p4 = scmp.eq.s32.totalorder %s4785_s29, 1  ;;  %p4788_p7 = scmp.ge.s32.totalorder %s6348_s28, 1 }
  0x11   : > { %s6506_s5 = scalar_select %p487_p1, %s6344_s3, %s489_s4  }
  0x12   : > { %p6508_p5 = por %p500_p2, %p499_p0  ;;  %p6512_p6 = por %p506_p4, %p505_p3 }
  0x13   : > { %7928 = sst [smem:[#allocation9_spill]] %s6506_s5  ;;  %p592_p8 = scmp.lt.s32.totalorder %s6348_s28, 3 }
  0x14   : > { %s7930_s23 = scalar_select %p6512_p6, 1, 0 }
  0x15   : > { %p593_p9 = pnand %p4788_p7, %p592_p8 }
  0x16   : > { %7931 = sst [smem:[#allocation10_spill]] %s7930_s23  ;;  %p652_p10 = scmp.lt.s32.totalorder (!%p593_p9), %s6491_s20, 1  ;;  %v6350_v1 = vmov (!%p593_p9), 0.0|0.0   ;;  %vm6351_vm0 = vmmov (!%p593_p9), 0   ;;  %v6352_v2 = vmov (!%p593_p9), 0.0   ;;  %vm660_vm1 = vcmask (!%p593_p9), 130048  }
  0x17   : > { %596 = sbr.rel (%p593_p9) target bundleno = 3894 (0xf36), region = 104  ;;  %5604 = vmatprep.subr.bf16.mxu1 (!%p593_p9), %v6350_v1  ;;  %5231 = vmatprep.mubr.msk.f32.mxu1 (!%p593_p9), %vm6351_vm0, %v6352_v2  ;;  %s7932_s29 = sld [smem:[#allocation11_spill]] (!%p593_p9)  ;;  %vm1584_vm2 = vcmask (!%p593_p9), 64512   ;;  %vm2578_vm3 = vcmask (!%p593_p9), 1043456   ;;  %vm2574_vm4 = vcmask (!%p593_p9), 31744   ;;  %vm3747_vm5 = vcmask (!%p593_p9), 1041408  }
  0x18   : > { %1340 = vmatprep.mubr.f32.mxu0 (!%p593_p9), %v6352_v2  ;;  %s7933_s3 = sld [smem:[#allocation12_spill]] (!%p593_p9)  ;;  %s7935_s2 = sld [smem:[#allocation13_spill]] (!%p593_p9)  ;;  %vm3743_vm6 = vcmask (!%p593_p9), 15360  }
  0x19   : > { %s7938_s30 = sld [smem:[#allocation15_spill]] (!%p593_p9)  ;;  %s649_s26 = sand.u32 (!%p593_p9), 1, %s6340_s27  }
  0x1a   : > { %s4789_s25 = sshll.u32 (!%p593_p9), %s649_s26, 4  ;;  %s7845_s5 = scalar_lea.sflag (!%p593_p9), [#allocation4], %s649_s26 }
  0x1e   : > { %s653_s1 = scalar_select %p652_p10, %s6491_s20, 1  ;;  %v659_v6 = vld [vmem:[%s7933_s3] sm:$0xff]  ;;  %v4796_v8 = vld [vmem:[%s7935_s2 + $0x28] sm:$0xff]  ;;  %v4798_v9 = vld [vmem:[%s7935_s2 + $0x38] sm:$0xff] }
  0x1f   : > { %s7934_s0 = smov %s7933_s3  ;;  %v5610_v10 = vpack.c.bf16 %v4798_v9, %v4796_v8  ;;  %v4795_v11 = vld [vmem:[%s7935_s2 + $0x20] sm:$0xff]  ;;  %v4797_v12 = vld [vmem:[%s7935_s2 + $0x30] sm:$0xff]  ;;  %v735_v14 = vld [vmem:[%s7935_s2 + $0x8] sm:$0xff]  ;;  %s6354_s3 = smov [#allocation3]  }
  0x20   : > { %s5049_s24 = sshll.u32 %s653_s1, 4  ;;  %v4793_v7 = vld [vmem:[%s7934_s0 + $0x8] sm:$0xff]  ;;  %v5612_v13 = vpack.c.bf16 %v4797_v12, %v4795_v11  ;;  %v737_v15 = vld [vmem:[%s7935_s2 + $0x18] sm:$0xff]  ;;  %v734_v17 = vld [vmem:[%s7935_s2] sm:$0xff]  ;;  %s7936_s1 = sld [smem:[#allocation16_spill]] }
  0x21   : > { %s656_s4 = scalar_lea.vmem %s7932_s29, %s5049_s24  ;;  %5632 = vmatprep.subr.bf16.mxu0 %v5610_v10  ;;  %v5614_v16 = vpack.c.bf16 %v737_v15, %v735_v14  ;;  %v736_v18 = vld [vmem:[%s7935_s2 + $0x10] sm:$0xff]  ;;  %v4804_v24 = vld [vmem:[%s7935_s2 + $0x48] sm:$0xff]  ;;  %v4806_v25 = vld [vmem:[%s7935_s2 + $0x58] sm:$0xff]  ;;  %s5050_s29 = sshll.u32 %s6491_s20, 8 }
  0x22   : > { %v657_v3 = vld [vmem:[%s656_s4] sm:$0xff]  ;;  %v658_v4 = vld [vmem:[%s656_s4 + $0x8] sm:$0xff]  ;;  %5634 = vmatpush1.bf16.msra.mxu0 %v5612_v13  ;;  %v5616_v21 = vpack.c.bf16 %v736_v18, %v734_v17  ;;  %v5621_v26 = vpack.c.bf16 %v4806_v25, %v4804_v24  ;;  %v4805_v28 = vld [vmem:[%s7935_s2 + $0x50] sm:$0xff]  ;;  %s651_s4 = scalar_lea.vmem [#allocation3], %s4789_s25  ;;  %s7839_s24 = scalar_lea.hbm %s7907_s21, %s5050_s29 }
  0x23   : > { %v6527_v5 = vpack.c.bf16 %v658_v4, %v657_v3  ;;  %5636 = vmatprep.subr.bf16.mxu0 %v5614_v16  ;;  %v4803_v27 = vld [vmem:[%s7935_s2 + $0x40] sm:$0xff]  ;;  %v4801_v29 = vld [vmem:[%s7934_s0 + $0x10] sm:$0xff]  ;;  %v4808_v33 = vld [vmem:[%s7934_s0 + $0x18] sm:$0xff]  ;;  %s6290_s25 = sshll.u32 %s6354_s3, 4  ;;  %s6291_s25 = int_to_ptr.vmem [resolvable:$false] %s6290_s25 }
  0x24   : > { %v5623_v30 = vpack.c.bf16 %v4805_v28, %v4803_v27  ;;  %v4810_v34 = vld [vmem:[%s7934_s0 + $0x20] sm:$0xff]  ;;  %v4814_v35 = vld [vmem:[%s7934_s0 + $0x28] sm:$0xff]  ;;  %s7937_s0 = sld [smem:[#allocation14_spill]]  ;;  %s6292_s29 = scalar_lea.vmem %s6291_s25, 512 }
  0x25   : > { %5606 = vmatpush3.bf16.msra.mxu1 %v6527_v5 }
  0x26   : > { %5607 = vmatprep.subr.bf16.mxu1 %v6350_v1  ;;  %v4822_v45 = vld [vmem:[%s7936_s1 + $0x108] sm:$0xff]  ;;  %v4824_v46 = vld [vmem:[%s7936_s1 + $0x118] sm:$0xff]  ;;  %v4821_v47 = vld [vmem:[%s7936_s1 + $0x100] sm:$0xff] }
  0x27   : > { %v6640_v48 = vpack.c.bf16 %v4824_v46, %v4822_v45  ;;  %v4823_v49 = vld [vmem:[%s7936_s1 + $0x110] sm:$0xff]  ;;  %v4826_v50 = vld [vmem:[%s7936_s1 + $0x128] sm:$0xff]  ;;  %v4828_v51 = vld [vmem:[%s7936_s1 + $0x138] sm:$0xff] }
  0x28   : > { %5232 = vmatmul.mubr.msk.f32.vlgmr.msra.gmra.mrb[0].mxu1 %vm660_vm1, %v659_v6  ;;  %v6651_v52 = vpack.c.bf16 %v4823_v49, %v4821_v47  ;;  %v6653_v53 = vpack.c.bf16 %v4828_v51, %v4826_v50  ;;  %v4825_v54 = vld [vmem:[%s7936_s1 + $0x120] sm:$0xff]  ;;  %v4827_v55 = vld [vmem:[%s7936_s1 + $0x130] sm:$0xff]  ;;  %v4830_v56 = vld [vmem:[%s7936_s1 + $0x148] sm:$0xff] }
  0x29   : > { %5609 = vmatpush3.bf16.msra.mxu1 %v6527_v5  ;;  %5238 = vmatprep.mubr.msk.f32.mxu1 %vm6351_vm0, %v6352_v2  ;;  %v4832_v57 = vld [vmem:[%s7936_s1 + $0x158] sm:$0xff]  ;;  %v6669_v58 = vpack.c.bf16 %v4827_v55, %v4825_v54  ;;  %v4829_v60 = vld [vmem:[%s7936_s1 + $0x140] sm:$0xff]  ;;  %v4831_v61 = vld [vmem:[%s7936_s1 + $0x150] sm:$0xff] }
  0x2a   : > { %5611 = vmatprep.subr.bf16.mxu1 %v5610_v10  ;;  %v6672_v59 = vpack.c.bf16 %v4832_v57, %v4830_v56  ;;  %v4834_v62 = vld [vmem:[%s7936_s1 + $0x168] sm:$0xff]  ;;  %v4836_v63 = vld [vmem:[%s7936_s1 + $0x178] sm:$0xff]  ;;  %v6687_v0 = vpack.c.bf16 %v4831_v61, %v4829_v60  ;;  %v4833_v4 = vld [vmem:[%s7936_s1 + $0x160] sm:$0xff] }
  0x2b   : > { %v6690_v3 = vpack.c.bf16 %v4836_v63, %v4834_v62  ;;  %v4838_v6 = vld [vmem:[%s7936_s1 + $0x188] sm:$0xff]  ;;  %v4837_v10 = vld [vmem:[%s7936_s1 + $0x180] sm:$0xff]  ;;  %v4839_v11 = vld [vmem:[%s7936_s1 + $0x190] sm:$0xff] }
  0x2c   : > { %5239 = vmatmul.mubr.msk.f32.vlgmr.msra.gmra.mrb[2].mxu1 %vm660_vm1, %v4793_v7  ;;  %v4840_v7 = vld [vmem:[%s7936_s1 + $0x198] sm:$0xff]  ;;  %v4842_v12 = vld [vmem:[%s7936_s1 + $0x1a8] sm:$0xff]  ;;  %v5664_v14 = vpack.c.bf16 %v4839_v11, %v4837_v10  ;;  %v4843_v17 = vld [vmem:[%s7936_s1 + $0x1b0] sm:$0xff] }
  0x2d   : > { %885 = vmatprep.mubr.f32.mxu1 %v6352_v2  ;;  %5613 = vmatpush1.bf16.msra.mxu1 %v5612_v13  ;;  %v5662_v9 = vpack.c.bf16 %v4840_v7, %v4838_v6  ;;  %v4844_v13 = vld [vmem:[%s7936_s1 + $0x1b8] sm:$0xff]  ;;  %v4846_v18 = vld [vmem:[%s7936_s1 + $0x1c8] sm:$0xff]  ;;  %v4817_v28 = vld [vmem:[%s7937_s0] ss:$0 sm:$0xff]  ;;  %s4723_s0 = sshll.u32 %s651_s4, 4  ;;  %s7841_s0 = int_to_ptr.vmem [resolvable:$true] %s4723_s0 }
  0x2e   : > { %5615 = vmatprep.subr.bf16.mxu1 %v5614_v16  ;;  %v5666_v15 = vpack.c.bf16 %v4844_v13, %v4842_v12  ;;  %v4841_v16 = vld [vmem:[%s7936_s1 + $0x1a0] sm:$0xff]  ;;  %v1660_v47 = vld [vmem:[%s7936_s1 + $0x10] sm:$0xff]  ;;  %v1663_v49 = vld [vmem:[%s7936_s1 + $0x28] sm:$0xff]  ;;  %s6286_s20 = scalar_lea.vmem %s7841_s0, 256  ;;  %p6293_p0 = scmp.lt.s32.totalorder %s7841_s0, %s6291_s25 }
  0x2f   : > { %v1658_v46 = vld [vmem:[%s7936_s1] sm:$0xff]  ;;  %v1665_v50 = vld [vmem:[%s7936_s1 + $0x38] sm:$0xff]  ;;  %v1664_v55 = vld [vmem:[%s7936_s1 + $0x30] sm:$0xff]  ;;  %p6287_p11 = scmp.ne.s32.totalorder %s7841_s0, %s6286_s20  ;;  %p6294_p1 = scmp.lt.s32.totalorder %s6292_s29, %s6286_s20 }
  0x30   : > { %v1662_v54 = vld [vmem:[%s7936_s1 + $0x20] sm:$0xff]  ;;  %v1667_v57 = vld [vmem:[%s7936_s1 + $0x48] sm:$0xff]  ;;  %v1668_v63 = vld [vmem:[%s7936_s1 + $0x50] sm:$0xff] }
  0x31   : > { %v5684_v60 = vpack.c.bf16 %v1664_v55, %v1662_v54  ;;  %v1666_v62 = vld [vmem:[%s7936_s1 + $0x40] sm:$0xff]  ;;  %v1675_v11 = vld [vmem:[%s7936_s1 + $0x88] sm:$0xff]  ;;  %v1677_v12 = vld [vmem:[%s7936_s1 + $0x98] sm:$0xff]  ;;  %p6288_p12 = pnand %p6287_p11, %p6508_p5  ;;  %p6295_p2 = por %p6294_p1, %p6293_p0 }
  0x32   : > { %v5688_v6 = vpack.c.bf16 %v1668_v63, %v1666_v62  ;;  %v4869_v62 = vld [vmem:[%s7936_s1 + $0x270] sm:$0xff]  ;;  %v4872_v63 = vld [vmem:[%s7936_s1 + $0x288] sm:$0xff] }
  0x33   : > { %p6289_p13 = pneg %p6288_p12 }
  0x35   : > { %p6296_p3 = pnand %p6295_p2, %p6289_p13 }
  0xfb   : > { %v730_v19 = vpop.f32.mrb[0].mxu1 }
  0xfc   : > { %v5233_v20 = vpop.f32.mrb[1].mxu1 }
  0xfd   : > { %v5668_v20 = vpack.c.bf16 %v4843_v17, %v4841_v16  ;;  %v1674_v16 = vld [vmem:[%s7936_s1 + $0x80] sm:$0xff]  ;;  %v1676_v17 = vld [vmem:[%s7936_s1 + $0x90] sm:$0xff] }
  0xff   : > { %v809_v22 = vpop.f32.mrb[2].mxu1 }
 0x100   : > { %v5240_v23 = vpop.f32.mrb[3].mxu1  ;;  %4799 = vmatmul.mubr.msk.f32.vlgmr.msra.gmra.mrb[4].mxu1 %vm660_vm1, %v809_v22  ;;  %v4845_v22 = vld [vmem:[%s7936_s1 + $0x1c0] sm:$0xff] }
 0x101   : > { %5617 = vmatpush1.bf16.msra.mxu1 %v5616_v21  ;;  %959 = vmatprep.mubr.f32.mxu1 %v6352_v2  ;;  %v4847_v23 = vld [vmem:[%s7936_s1 + $0x1d0] sm:$0xff] }
 0x102   : > { %5618 = vmatprep.subr.bf16.mxu1 %v6350_v1  ;;  %v5672_v24 = vpack.c.bf16 %v4847_v23, %v4845_v22  ;;  %v5696_v22 = vpack.c.bf16 %v1676_v17, %v1674_v16 }
 0x108   : > { %4800 = vmatmul.mubr.msk.f32.vlgmr.msra.gmra.mrb[4].mxu1 %vm660_vm1, %v730_v19  ;;  %v4848_v19 = vld [vmem:[%s7936_s1 + $0x1d8] sm:$0xff] }
 0x109   : > { %5620 = vmatpush3.bf16.msra.mxu1 %v6527_v5  ;;  %5245 = vmatprep.mubr.msk.f32.mxu1 %vm6351_vm0, %v6352_v2 }
 0x10a   : > { %5622 = vmatprep.subr.bf16.mxu1 %v5621_v26 }
 0x10c   : > { %5246 = vmatmul.mubr.msk.f32.vlgmr.msra.gmra.mrb[6].mxu1 %vm660_vm1, %v4801_v29 }
 0x10d   : > { %5624 = vmatpush1.bf16.msra.mxu1 %v5623_v30  ;;  %1113 = vmatprep.mubr.f32.mxu1 %v6352_v2 }
 0x10e   : > { %5625 = vmatprep.subr.bf16.mxu1 %v6350_v1 }
 0x1df   : > { %v1037_v31 = vpop.f32.mrb[6].mxu1 }
 0x1e0   : > { %v5247_v32 = vpop.f32.mrb[7].mxu1  ;;  %4807 = vmatmul.mubr.msk.f32.vlgmr.msra.gmra.mrb[4].mxu1 %vm660_vm1, %v1037_v31 }
 0x1e1   : > { %5627 = vmatpush3.bf16.msra.mxu1 %v6527_v5  ;;  %5252 = vmatprep.mubr.msk.f32.mxu1 %vm6351_vm0, %v6352_v2  ;;  %v1583_v32 = vld [vmem:[%s7938_s30] sm:$0xf] }
 0x1e2   : > { %5628 = vmatprep.subr.bf16.mxu1 %v6350_v1 }
 0x1e4   : > { %5253 = vmatmul.mubr.msk.f32.vlgmr.msra.gmra.mrb[8].mxu1 %vm660_vm1, %v4808_v33  ;;  %v4819_v33 = vld [vmem:[%s7938_s30 + $0x4] sm:$0xf] }
 0x1e5   : > { %5630 = vmatpush3.bf16.msra.mxu1 %v6527_v5  ;;  %5259 = vmatprep.mubr.msk.f32.mxu1 %vm6351_vm0, %v6352_v2 }
 0x1e6   : > { %5639 = vmatprep.subr.bf16.mxu1 %v6350_v1 }
 0x1e8   : > { %5260 = vmatmul.mubr.msk.f32.vlgmr.msra.gmra.mrb[10].mxu1 %vm660_vm1, %v4810_v34  ;;  %v4853_v34 = vld [vmem:[%s7938_s30 + $0x8] sm:$0xf] }
 0x1e9   : > { %5641 = vmatpush3.bf16.msra.mxu1 %v6527_v5  ;;  %5266 = vmatprep.mubr.msk.f32.mxu1 %vm6351_vm0, %v6352_v2  ;;  %v4835_v5 = vld [vmem:[%s7936_s1 + $0x170] sm:$0xff] }
 0x1ea   : > { %5269 = vmatprep.subr.mxu1 %v6352_v2  ;;  %v6705_v8 = vpack.c.bf16 %v4835_v5, %v4833_v4  ;;  %v1673_v4 = vld [vmem:[%s7936_s1 + $0x78] sm:$0xff] }
 0x1ec   : > { %5267 = vmatmul.mubr.msk.f32.vlgmr.msra.gmra.mrb[12].mxu1 %vm660_vm1, %v4814_v35  ;;  %v4887_v35 = vld [vmem:[%s7938_s30 + $0xc] sm:$0xf] }
 0x1ed   : > { %5271 = vmatprep.mubr.msk.f32.mxu1 %vm6351_vm0, %v6352_v2 }
 0x2b3   : > { %v6619_v36 = vpop.f32.mrb[4].mxu1 }
 0x2b4   : > { %v6621_v37 = vpop.f32.mrb[5].mxu1 }
 0x2b5   : > { %v1122_v38 = vmax.f32 %v6619_v36, %v6621_v37  ;;  %v4889_v36 = vld [vmem:[%s7938_s30 + $0x10] sm:$0xf]  ;;  %v4850_v37 = vld [vmem:[%s7936_s1 + $0x1e8] sm:$0xff] }
 0x2b7   : > { %v1194_v39 = vpop.f32.mrb[8].mxu1 }
 0x2b8   : > { %v5254_v40 = vpop.f32.mrb[9].mxu1 }
 0x2b9   : > { %v4849_v40 = vld [vmem:[%s7936_s1 + $0x1e0] sm:$0xff] }
 0x2bb   : > { %v1269_v41 = vpop.f32.mrb[10].mxu1 }
 0x2bc   : > { %v5261_v42 = vpop.f32.mrb[11].mxu1  ;;  %4812 = vmatmul.mubr.msk.f32.vlgmr.msra.gmra.mrb[0].mxu0 %vm660_vm1, %v1269_v41  ;;  %v4851_v41 = vld [vmem:[%s7936_s1 + $0x1f0] sm:$0xff] }
 0x2bd   : > { %5638 = vmatpush1.bf16.msra.mxu0 %v5616_v21  ;;  %1414 = vmatprep.mubr.f32.mxu0 %v6352_v2  ;;  %v5670_v21 = vpack.c.bf16 %v4848_v19, %v4846_v18  ;;  %v5676_v42 = vpack.c.bf16 %v4851_v41, %v4849_v40  ;;  %v1679_v19 = vld [vmem:[%s7936_s1 + $0xa8] sm:$0xff]  ;;  %v4858_v40 = vld [vmem:[%s7936_s1 + $0x218] sm:$0xff] }
 0x2be   : > { %5643 = vmatprep.subr.bf16.mxu0 %v5621_v26 }
 0x2bf   : > { %v1492_v43 = vpop.f32.mrb[12].mxu1 }
 0x2c0   : > { %v5268_v44 = vpop.f32.mrb[13].mxu1 }
 0x2c1   : > { %v1661_v44 = vld [vmem:[%s7936_s1 + $0x18] sm:$0xff] }
 0x2c4   : > { %4813 = vmatmul.mubr.msk.f32.vlgmr.msra.gmra.mrb[0].mxu0 %vm660_vm1, %v1194_v39 }
 0x2c5   : > { %5645 = vmatpush1.bf16.msra.mxu0 %v5623_v30  ;;  %1563 = vmatprep.mubr.f32.mxu0 %v6352_v2 }
 0x2c6   : > { %5647 = vmatprep.subr.bf16.mxu0 %v6640_v48 }
 0x2cc   : > { %4816 = vmatmul.mubr.msk.f32.vlgmr.msra.gmra.mrb[0].mxu0 %vm660_vm1, %v1492_v43  ;;  %v1659_v43 = vld [vmem:[%s7936_s1 + $0x8] sm:$0xff] }
 0x2cd   : > { %1862 = vmatprep.mubr.f32.mxu0 %v6352_v2  ;;  %5649 = vmatpush1.bf16.msra.mxu0 %v6651_v52  ;;  %v5678_v45 = vpack.c.bf16 %v1661_v44, %v1659_v43  ;;  %v4855_v43 = vld [vmem:[%s7936_s1 + $0x200] sm:$0xff]  ;;  %v4857_v44 = vld [vmem:[%s7936_s1 + $0x210] sm:$0xff] }
 0x2ce   : > { %5651 = vmatprep.subr.bf16.mxu0 %v6653_v53 }
 0x2d1   : > { %5653 = vmatpush1.bf16.msra.mxu0 %v6669_v58 }
 0x2d2   : > { %5655 = vmatprep.subr.bf16.mxu0 %v6672_v59 }
 0x2d5   : > { %5657 = vmatpush1.bf16.msra.mxu0 %v6687_v0 }
 0x2d6   : > { %5659 = vmatprep.subr.bf16.mxu0 %v6690_v3 }
 0x2d9   : > { %5661 = vmatpush1.bf16.msra.mxu0 %v6705_v8 }
 0x2da   : > { %5663 = vmatprep.subr.bf16.mxu0 %v5662_v9 }
 0x2dd   : > { %5665 = vmatpush1.bf16.msra.mxu0 %v5664_v14 }
 0x2de   : > { %5667 = vmatprep.subr.bf16.mxu0 %v5666_v15 }
 0x2e1   : > { %5669 = vmatpush1.bf16.msra.mxu0 %v5668_v20 }
 0x2e2   : > { %5671 = vmatprep.subr.bf16.mxu0 %v5670_v21 }
 0x2e5   : > { %5673 = vmatpush1.bf16.msra.mxu0 %v5672_v24 }
 0x39f   : > { %v1565_v25 = vpop.f32.mrb[0].mxu0 }
 0x3a0   : > { %v1567_v26 = vpop.f32.mrb[1].mxu0 }
 0x3a1   : > { %v1572_v27 = vmax.f32 %v1565_v25, %v1567_v26  ;;  %v1680_v25 = vld [vmem:[%s7936_s1 + $0xb0] sm:$0xff]  ;;  %v1683_v26 = vld [vmem:[%s7936_s1 + $0xc8] sm:$0xff] }
 0x3a3   : > { %v1573_v29 = vmax.f32 %v1122_v38, %v1572_v27  ;;  %v4852_v38 = vld [vmem:[%s7936_s1 + $0x1f8] sm:$0xff] }
 0x3a4   : > { %v5674_v39 = vpack.c.bf16 %v4852_v38, %v4850_v37  ;;  %v1685_v27 = vld [vmem:[%s7936_s1 + $0xd8] sm:$0xff]  ;;  %v1686_v37 = vld [vmem:[%s7936_s1 + $0xe0] sm:$0xff]  ;;  %v1688_v38 = vld [vmem:[%s7936_s1 + $0xf0] sm:$0xff] }
 0x3a5   : > { %v1581_v30 = vadd.f32 %v4817_v28, %v1573_v29  ;;  %v5702_v29 = vpack.c.bf16 %v1685_v27, %v1683_v26  ;;  %v5708_v41 = vpack.c.bf16 %v1688_v38, %v1686_v37 }
 0x3a6   : > { %5675 = vmatprep.subr.bf16.mxu0 %v5674_v39 }
 0x3a7   : > { %v6745_v31 = vmax.f32 %v1581_v30, 0.0  ;;  %5677 = vmatpush1.bf16.msra.mxu0 %v5676_v42  ;;  %v1682_v30 = vld [vmem:[%s7936_s1 + $0xc0] sm:$0xff] }
 0x3a8   : > { %5679 = vmatprep.subr.bf16.mxu0 %v5678_v45 }
 0x3a9   : > { %5270 = vmatpush3.msra.mxu1 %v6745_v31 }
 0x3aa   : > { %5272 = vmatmul.mubr.msk.f32.vlgmr.msra.gmra.mrb[14].mxu1 %vm1584_vm2, %v1583_v32  ;;  %5274 = vmatprep.subr.mxu1 %v6352_v2  ;;  %v1684_v32 = vld [vmem:[%s7936_s1 + $0xd0] sm:$0xff] }
 0x3ab   : > { %5275 = vmatpush3.msra.mxu1 %v6745_v31  ;;  %5276 = vmatprep.mubr.msk.f32.mxu1 %vm6351_vm0, %v6352_v2 }
 0x3ac   : > { %5279 = vmatprep.subr.mxu1 %v6352_v2 }
 0x3ae   : > { %5277 = vmatmul.mubr.msk.f32.vlgmr.msra.gmra.mrb[16].mxu1 %vm1584_vm2, %v4819_v33  ;;  %v1687_v33 = vld [vmem:[%s7936_s1 + $0xe8] sm:$0xff] }
 0x3af   : > { %5280 = vmatpush3.msra.mxu1 %v6745_v31  ;;  %5281 = vmatprep.mubr.msk.f32.mxu1 %vm6351_vm0, %v6352_v2 }
 0x3b0   : > { %5284 = vmatprep.subr.mxu1 %v6352_v2 }
 0x3b2   : > { %5282 = vmatmul.mubr.msk.f32.vlgmr.msra.gmra.mrb[18].mxu1 %vm1584_vm2, %v4853_v34  ;;  %v1689_v34 = vld [vmem:[%s7936_s1 + $0xf8] sm:$0xff] }
 0x3b3   : > { %5285 = vmatpush3.msra.mxu1 %v6745_v31  ;;  %5286 = vmatprep.mubr.msk.f32.mxu1 %vm6351_vm0, %v6352_v2 }
 0x3b4   : > { %5289 = vmatprep.subr.mxu1 %v6352_v2 }
 0x3b6   : > { %5287 = vmatmul.mubr.msk.f32.vlgmr.msra.gmra.mrb[20].mxu1 %vm1584_vm2, %v4887_v35  ;;  %v5704_v35 = vpack.c.bf16 %v1684_v32, %v1682_v30 }
 0x3b7   : > { %5290 = vmatpush3.msra.mxu1 %v6745_v31  ;;  %5291 = vmatprep.mubr.msk.f32.mxu1 %vm6351_vm0, %v6352_v2 }
 0x3b8   : > { %5743 = vmatprep.subr.bf16.mxu1 %v6640_v48 }
 0x3ba   : > { %5292 = vmatmul.mubr.msk.f32.vlgmr.msra.gmra.mrb[22].mxu1 %vm1584_vm2, %v4889_v36  ;;  %v5706_v36 = vpack.c.bf16 %v1689_v34, %v1687_v33 }
 0x3bb   : > { %5745 = vmatpush1.bf16.msra.mxu1 %v6651_v52  ;;  %2336 = vmatprep.mubr.f32.mxu1 %v6352_v2  ;;  %v5680_v52 = vpack.c.bf16 %v1660_v47, %v1658_v46  ;;  %v4862_v46 = vld [vmem:[%s7936_s1 + $0x238] sm:$0xff]  ;;  %v5712_v47 = vpack.c.bf16 %v4857_v44, %v4855_v43  ;;  %v4899_v43 = vld [vmem:[%s7894_s8 + $0x100] sm:$0xff]  ;;  %v4901_v44 = vld [vmem:[%s7894_s8 + $0x110] sm:$0xff] }
 0x3bc   : > { %5747 = vmatprep.subr.bf16.mxu1 %v6653_v53  ;;  %v5682_v53 = vpack.c.bf16 %v1665_v50, %v1663_v49  ;;  %v4859_v50 = vld [vmem:[%s7936_s1 + $0x220] sm:$0xff] }
 0x3bf   : > { %5749 = vmatpush1.bf16.msra.mxu1 %v6669_v58  ;;  %v1669_v58 = vld [vmem:[%s7936_s1 + $0x58] sm:$0xff] }
 0x3c0   : > { %5751 = vmatprep.subr.bf16.mxu1 %v6672_v59  ;;  %v5686_v61 = vpack.c.bf16 %v1669_v58, %v1667_v57  ;;  %v4865_v57 = vld [vmem:[%s7936_s1 + $0x250] sm:$0xff]  ;;  %v4868_v58 = vld [vmem:[%s7936_s1 + $0x268] sm:$0xff] }
 0x3c3   : > { %5753 = vmatpush1.bf16.msra.mxu1 %v6687_v0 }
 0x3c4   : > { %5755 = vmatprep.subr.bf16.mxu1 %v6690_v3  ;;  %v1671_v3 = vld [vmem:[%s7936_s1 + $0x68] sm:$0xff] }
 0x3c5   : > { %v5690_v7 = vpack.c.bf16 %v1673_v4, %v1671_v3  ;;  %v4874_v3 = vld [vmem:[%s7936_s1 + $0x298] sm:$0xff] }
 0x3c7   : > { %5757 = vmatpush1.bf16.msra.mxu1 %v6705_v8  ;;  %v1670_v8 = vld [vmem:[%s7936_s1 + $0x60] sm:$0xff] }
 0x3c8   : > { %5759 = vmatprep.subr.bf16.mxu1 %v5662_v9  ;;  %v1672_v9 = vld [vmem:[%s7936_s1 + $0x70] sm:$0xff] }
 0x3cb   : > { %5761 = vmatpush1.bf16.msra.mxu1 %v5664_v14  ;;  %v5692_v14 = vpack.c.bf16 %v1672_v9, %v1670_v8  ;;  %v4876_v8 = vld [vmem:[%s7936_s1 + $0x2a8] sm:$0xff]  ;;  %v4878_v9 = vld [vmem:[%s7936_s1 + $0x2b8] sm:$0xff] }
 0x3cc   : > { %5763 = vmatprep.subr.bf16.mxu1 %v5666_v15  ;;  %v5694_v15 = vpack.c.bf16 %v1677_v12, %v1675_v11  ;;  %v4891_v11 = vld [vmem:[%s7938_s30 + $0x14] sm:$0xf] }
 0x3cf   : > { %5765 = vmatpush1.bf16.msra.mxu1 %v5668_v20  ;;  %v1681_v20 = vld [vmem:[%s7936_s1 + $0xb8] sm:$0xff] }
 0x3d0   : > { %5767 = vmatprep.subr.bf16.mxu1 %v5670_v21  ;;  %v5698_v23 = vpack.c.bf16 %v1681_v20, %v1679_v19  ;;  %v4881_v19 = vld [vmem:[%s7936_s1 + $0x2d0] sm:$0xff]  ;;  %v4884_v20 = vld [vmem:[%s7936_s1 + $0x2e8] sm:$0xff] }
 0x3d3   : > { %5769 = vmatpush1.bf16.msra.mxu1 %v5672_v24  ;;  %v1678_v24 = vld [vmem:[%s7936_s1 + $0xa0] sm:$0xff] }
 0x3d4   : > { %5771 = vmatprep.subr.bf16.mxu1 %v5674_v39  ;;  %v5700_v28 = vpack.c.bf16 %v1680_v25, %v1678_v24  ;;  %v4856_v39 = vld [vmem:[%s7936_s1 + $0x208] sm:$0xff]  ;;  %v4883_v24 = vld [vmem:[%s7936_s1 + $0x2e0] sm:$0xff]  ;;  %v4885_v25 = vld [vmem:[%s7936_s1 + $0x2f0] sm:$0xff] }
 0x3d5   : > { %v5740_v26 = vpack.c.bf16 %v4885_v25, %v4883_v24  ;;  %v4930_v24 = vld [vmem:[%s7894_s8 + $0x1f8] sm:$0xff] }
 0x3d7   : > { %5773 = vmatpush1.bf16.msra.mxu1 %v5676_v42  ;;  %v5710_v42 = vpack.c.bf16 %v4858_v40, %v4856_v39  ;;  %v2573_v39 = vld [vmem:[%s7893_s7] sm:$0x3]  ;;  %v4931_v40 = vld [vmem:[%s7893_s7 + $0x4] sm:$0x3] }
 0x3d8   : > { %5775 = vmatprep.subr.bf16.mxu1 %v5678_v45  ;;  %v4860_v45 = vld [vmem:[%s7936_s1 + $0x228] sm:$0xff] }
 0x3d9   : > { %v5714_v49 = vpack.c.bf16 %v4862_v46, %v4860_v45  ;;  %v4896_v45 = vld [vmem:[%s7893_s7 + $0x2] sm:$0x3] }
 0x47d   : > { %v6817_v48 = vpop.f32.mrb[14].mxu1 }
 0x47e   : > { %v5273_v51 = vpop.f32.mrb[15].mxu1 }
 0x47f   : > { %v4861_v51 = vld [vmem:[%s7936_s1 + $0x230] sm:$0xff] }
 0x480   : > { %v5716_v54 = vpack.c.bf16 %v4861_v51, %v4859_v50  ;;  %v4966_v50 = vld [vmem:[%s7893_s7 + $0x6] sm:$0x3]  ;;  %v5840_v51 = vpack.c.bf16 %v4901_v44, %v4899_v43 }
 0x481   : > { %v1761_v56 = vpop.f32.mrb[16].mxu1  ;;  %v2656_v44 = vld [vmem:[%s7894_s8 + $0x20] sm:$0xff] }
 0x482   : > { %v5278_v59 = vpop.f32.mrb[17].mxu1  ;;  %1863 = vmatmul.mubr.f32.vlgmr.msra.gmra.mrb[2].mxu0 %v1761_v56  ;;  %v4863_v56 = vld [vmem:[%s7936_s1 + $0x240] sm:$0xff] }
 0x483   : > { %5681 = vmatpush1.bf16.msra.mxu0 %v5680_v52  ;;  %1933 = vmatprep.mubr.f32.mxu0 %v6352_v2  ;;  %v5720_v59 = vpack.c.bf16 %v4865_v57, %v4863_v56  ;;  %v4910_v56 = vld [vmem:[%s7894_s8 + $0x158] sm:$0xff]  ;;  %v4969_v57 = vld [vmem:[%s7893_s7 + $0x8] sm:$0x3] }
 0x484   : > { %5683 = vmatprep.subr.bf16.mxu0 %v5682_v53 }
 0x485   : > { %v6844_v0 = vpop.f32.mrb[18].mxu1 }
 0x486   : > { %v5283_v5 = vpop.f32.mrb[19].mxu1 }
 0x487   : > { %5685 = vmatpush1.bf16.msra.mxu0 %v5684_v60  ;;  %v5726_v5 = vpack.c.bf16 %v4874_v3, %v4872_v63 }
 0x488   : > { %5687 = vmatprep.subr.bf16.mxu0 %v5686_v61 }
 0x489   : > { %v6858_v10 = vpop.f32.mrb[20].mxu1 }
 0x48a   : > { %v5288_v13 = vpop.f32.mrb[21].mxu1 }
 0x48b   : > { %5689 = vmatpush1.bf16.msra.mxu0 %v5688_v6  ;;  %v5730_v13 = vpack.c.bf16 %v4878_v9, %v4876_v8 }
 0x48c   : > { %5691 = vmatprep.subr.bf16.mxu0 %v5690_v7 }
 0x48d   : > { %v2268_v18 = vpop.f32.mrb[22].mxu1 }
 0x48e   : > { %v5293_v21 = vpop.f32.mrb[23].mxu1  ;;  %2337 = vmatmul.mubr.f32.vlgmr.msra.gmra.mrb[24].mxu1 %v2268_v18  ;;  %v4879_v18 = vld [vmem:[%s7936_s1 + $0x2c0] sm:$0xff] }
 0x48f   : > { %5693 = vmatpush1.bf16.msra.mxu0 %v5692_v14  ;;  %5777 = vmatpush1.bf16.msra.mxu1 %v5680_v52  ;;  %v4864_v52 = vld [vmem:[%s7936_s1 + $0x248] sm:$0xff]  ;;  %v4886_v21 = vld [vmem:[%s7936_s1 + $0x2f8] sm:$0xff] }
 0x490   : > { %5695 = vmatprep.subr.bf16.mxu0 %v5694_v15  ;;  %5779 = vmatprep.subr.bf16.mxu1 %v5682_v53  ;;  %v4866_v53 = vld [vmem:[%s7936_s1 + $0x258] sm:$0xff] }
 0x491   : > { %2407 = vmatprep.mubr.f32.mxu1 %v6352_v2  ;;  %v5718_v55 = vpack.c.bf16 %v4866_v53, %v4864_v52  ;;  %v4903_v53 = vld [vmem:[%s7894_s8 + $0x120] sm:$0xff] }
 0x493   : > { %5697 = vmatpush1.bf16.msra.mxu0 %v5696_v22  ;;  %5781 = vmatpush1.bf16.msra.mxu1 %v5684_v60 }
 0x494   : > { %5699 = vmatprep.subr.bf16.mxu0 %v5698_v23  ;;  %5783 = vmatprep.subr.bf16.mxu1 %v5686_v61  ;;  %v4867_v61 = vld [vmem:[%s7936_s1 + $0x260] sm:$0xff] }
 0x495   : > { %v5724_v4 = vpack.c.bf16 %v4869_v62, %v4867_v61  ;;  %v4912_v61 = vld [vmem:[%s7894_s8 + $0x168] sm:$0xff]  ;;  %v4914_v62 = vld [vmem:[%s7894_s8 + $0x178] sm:$0xff] }
 0x496   : > { %v5850_v3 = vpack.c.bf16 %v4914_v62, %v4912_v61  ;;  %v2664_v62 = vld [vmem:[%s7894_s8 + $0x60] sm:$0xff] }
 0x497   : > { %5701 = vmatpush1.bf16.msra.mxu0 %v5700_v28  ;;  %5785 = vmatpush1.bf16.msra.mxu1 %v5688_v6  ;;  %v4871_v6 = vld [vmem:[%s7936_s1 + $0x280] sm:$0xff] }
 0x498   : > { %5703 = vmatprep.subr.bf16.mxu0 %v5702_v29  ;;  %5787 = vmatprep.subr.bf16.mxu1 %v5690_v7  ;;  %v4873_v7 = vld [vmem:[%s7936_s1 + $0x290] sm:$0xff] }
 0x499   : > { %v5728_v12 = vpack.c.bf16 %v4873_v7, %v4871_v6  ;;  %v4916_v6 = vld [vmem:[%s7894_s8 + $0x188] sm:$0xff]  ;;  %v4918_v7 = vld [vmem:[%s7894_s8 + $0x198] sm:$0xff] }
 0x49a   : > { %v5854_v9 = vpack.c.bf16 %v4918_v7, %v4916_v6  ;;  %v2668_v7 = vld [vmem:[%s7894_s8 + $0x80] sm:$0xff] }
 0x49b   : > { %5705 = vmatpush1.bf16.msra.mxu0 %v5704_v35  ;;  %5789 = vmatpush1.bf16.msra.mxu1 %v5692_v14  ;;  %v4875_v14 = vld [vmem:[%s7936_s1 + $0x2a0] sm:$0xff] }
 0x49c   : > { %5707 = vmatprep.subr.bf16.mxu0 %v5706_v36  ;;  %5791 = vmatprep.subr.bf16.mxu1 %v5694_v15  ;;  %v4882_v15 = vld [vmem:[%s7936_s1 + $0x2d8] sm:$0xff] }
 0x49f   : > { %5709 = vmatpush1.bf16.msra.mxu0 %v5708_v41  ;;  %5793 = vmatpush1.bf16.msra.mxu1 %v5696_v22  ;;  %v5736_v22 = vpack.c.bf16 %v4881_v19, %v4879_v18  ;;  %v4926_v18 = vld [vmem:[%s7894_s8 + $0x1d8] sm:$0xff] }
 0x4a0   : > { %5711 = vmatprep.subr.bf16.mxu0 %v5710_v42  ;;  %5795 = vmatprep.subr.bf16.mxu1 %v5698_v23  ;;  %v5738_v23 = vpack.c.bf16 %v4886_v21, %v4884_v20  ;;  %v4923_v21 = vld [vmem:[%s7894_s8 + $0x1c0] sm:$0xff] }
 0x4a2   : > { %1934 = vmatmul.mubr.f32.vlgmr.msra.gmra.mrb[2].mxu0 %v6817_v48  ;;  %v4870_v48 = vld [vmem:[%s7936_s1 + $0x278] sm:$0xff] }
 0x4a3   : > { %5713 = vmatpush1.bf16.msra.mxu0 %v5712_v47  ;;  %5797 = vmatpush1.bf16.msra.mxu1 %v5700_v28  ;;  %v5722_v60 = vpack.c.bf16 %v4870_v48, %v4868_v58 }
 0x4a4   : > { %5715 = vmatprep.subr.bf16.mxu0 %v5714_v49  ;;  %5799 = vmatprep.subr.bf16.mxu1 %v5702_v29 }
 0x4a5   : > { %2112 = vmatprep.mubr.f32.mxu0 %v6352_v2 }
 0x4a7   : > { %5717 = vmatpush1.bf16.msra.mxu0 %v5716_v54  ;;  %5801 = vmatpush1.bf16.msra.mxu1 %v5704_v35  ;;  %v4893_v35 = vld [vmem:[%s7892_s6] ss:$0 sm:$0xff] }
 0x4a8   : > { %5719 = vmatprep.subr.bf16.mxu0 %v5718_v55  ;;  %5803 = vmatprep.subr.bf16.mxu1 %v5706_v36 }
 0x4ab   : > { %5721 = vmatpush1.bf16.msra.mxu0 %v5720_v59  ;;  %5805 = vmatpush1.bf16.msra.mxu1 %v5708_v41  ;;  %v4900_v41 = vld [vmem:[%s7894_s8 + $0x108] sm:$0xff] }
 0x4ac   : > { %5723 = vmatprep.subr.bf16.mxu0 %v5722_v60  ;;  %5294 = vmatprep.subr.mxu1 %v6352_v2 }
 0x4ae   : > { %2408 = vmatmul.mubr.f32.vlgmr.msra.gmra.mrb[24].mxu1 %v6858_v10  ;;  %v4877_v10 = vld [vmem:[%s7936_s1 + $0x2b0] sm:$0xff] }
 0x4af   : > { %5725 = vmatpush1.bf16.msra.mxu0 %v5724_v4  ;;  %5295 = vmatpush3.msra.mxu1 %v6745_v31  ;;  %v4880_v31 = vld [vmem:[%s7936_s1 + $0x2c8] sm:$0xff]  ;;  %v5732_v16 = vpack.c.bf16 %v4877_v10, %v4875_v14  ;;  %v4922_v14 = vld [vmem:[%s7894_s8 + $0x1b8] sm:$0xff] }
 0x4b0   : > { %5296 = vmatprep.mubr.msk.f32.mxu1 %vm6351_vm0, %v6352_v2  ;;  %5727 = vmatprep.subr.bf16.mxu0 %v5726_v5  ;;  %v5734_v17 = vpack.c.bf16 %v4882_v15, %v4880_v31  ;;  %v4919_v15 = vld [vmem:[%s7894_s8 + $0x1a0] sm:$0xff] }
 0x4b1   : > { %5807 = vmatprep.subr.bf16.mxu1 %v5710_v42  ;;  %v4902_v42 = vld [vmem:[%s7894_s8 + $0x118] sm:$0xff] }
 0x4b2   : > { %5297 = vmatmul.mubr.msk.f32.vlgmr.msra.gmra.mrb[26].mxu1 %vm1584_vm2, %v4891_v11  ;;  %v5838_v46 = vpack.c.bf16 %v4902_v42, %v4900_v41  ;;  %v4915_v11 = vld [vmem:[%s7894_s8 + $0x180] sm:$0xff] }
 0x4b3   : > { %5729 = vmatpush1.bf16.msra.mxu0 %v5728_v12  ;;  %5809 = vmatpush1.bf16.msra.mxu1 %v5712_v47  ;;  %v4904_v47 = vld [vmem:[%s7894_s8 + $0x128] sm:$0xff] }
 0x4b4   : > { %5731 = vmatprep.subr.bf16.mxu0 %v5730_v13  ;;  %5811 = vmatprep.subr.bf16.mxu1 %v5714_v49  ;;  %v4906_v49 = vld [vmem:[%s7894_s8 + $0x138] sm:$0xff] }
 0x4b5   : > { %2553 = vmatprep.mubr.f32.mxu1 %v6352_v2  ;;  %v5842_v52 = vpack.c.bf16 %v4906_v49, %v4904_v47  ;;  %v2661_v47 = vld [vmem:[%s7894_s8 + $0x48] sm:$0xff]  ;;  %v2663_v49 = vld [vmem:[%s7894_s8 + $0x58] sm:$0xff] }
 0x4b7   : > { %5733 = vmatpush1.bf16.msra.mxu0 %v5732_v16  ;;  %5813 = vmatpush1.bf16.msra.mxu1 %v5716_v54  ;;  %v4905_v54 = vld [vmem:[%s7894_s8 + $0x130] sm:$0xff] }
 0x4b8   : > { %5735 = vmatprep.subr.bf16.mxu0 %v5734_v17  ;;  %5815 = vmatprep.subr.bf16.mxu1 %v5718_v55  ;;  %v4908_v55 = vld [vmem:[%s7894_s8 + $0x148] sm:$0xff]  ;;  %v5844_v58 = vpack.c.bf16 %v4905_v54, %v4903_v53  ;;  %v5878_v54 = vpack.c.bf16 %v2663_v49, %v2661_v47  ;;  %v4949_v47 = vld [vmem:[%s7894_s8 + $0x278] sm:$0xff] }
 0x4b9   : > { %v5846_v48 = vpack.c.bf16 %v4910_v56, %v4908_v55  ;;  %v2660_v55 = vld [vmem:[%s7894_s8 + $0x40] sm:$0xff]  ;;  %v2662_v56 = vld [vmem:[%s7894_s8 + $0x50] sm:$0xff] }
 0x4bb   : > { %5737 = vmatpush1.bf16.msra.mxu0 %v5736_v22  ;;  %5817 = vmatpush1.bf16.msra.mxu1 %v5720_v59  ;;  %v4907_v59 = vld [vmem:[%s7894_s8 + $0x140] sm:$0xff] }
 0x4bc   : > { %5739 = vmatprep.subr.bf16.mxu0 %v5738_v23  ;;  %5819 = vmatprep.subr.bf16.mxu1 %v5722_v60  ;;  %v4909_v60 = vld [vmem:[%s7894_s8 + $0x150] sm:$0xff] }
 0x4bd   : > { %v5848_v63 = vpack.c.bf16 %v4909_v60, %v4907_v59  ;;  %v5880_v60 = vpack.c.bf16 %v2662_v56, %v2660_v55 }
 0x4bf   : > { %5741 = vmatpush1.bf16.msra.mxu0 %v5740_v26  ;;  %5821 = vmatpush1.bf16.msra.mxu1 %v5724_v4  ;;  %v4911_v4 = vld [vmem:[%s7894_s8 + $0x160] sm:$0xff] }
 0x4c0   : > { %5823 = vmatprep.subr.bf16.mxu1 %v5726_v5  ;;  %5299 = vmatprep.subr.mxu0 %v6352_v2  ;;  %v4913_v5 = vld [vmem:[%s7894_s8 + $0x170] sm:$0xff] }
 0x4c1   : > { %v5852_v8 = vpack.c.bf16 %v4913_v5, %v4911_v4  ;;  %v2671_v4 = vld [vmem:[%s7894_s8 + $0x98] sm:$0xff] }
 0x4c2   : > { %2113 = vmatmul.mubr.f32.vlgmr.msra.gmra.mrb[2].mxu0 %v6844_v0 }
 0x4c3   : > { %5825 = vmatpush1.bf16.msra.mxu1 %v5728_v12  ;;  %5301 = vmatprep.mubr.msk.f32.mxu0 %vm6351_vm0, %v6352_v2  ;;  %v4917_v12 = vld [vmem:[%s7894_s8 + $0x190] sm:$0xff] }
 0x4c4   : > { %5827 = vmatprep.subr.bf16.mxu1 %v5730_v13  ;;  %v4920_v13 = vld [vmem:[%s7894_s8 + $0x1a8] sm:$0xff]  ;;  %v5856_v10 = vpack.c.bf16 %v4917_v12, %v4915_v11  ;;  %v2675_v11 = vld [vmem:[%s7894_s8 + $0xb8] sm:$0xff] }
 0x4c5   : > { %v5858_v31 = vpack.c.bf16 %v4922_v14, %v4920_v13  ;;  %v2672_v14 = vld [vmem:[%s7894_s8 + $0xa0] sm:$0xff] }
 0x4c7   : > { %5829 = vmatpush1.bf16.msra.mxu1 %v5732_v16  ;;  %v4921_v16 = vld [vmem:[%s7894_s8 + $0x1b0] sm:$0xff] }
 0x4c8   : > { %5831 = vmatprep.subr.bf16.mxu1 %v5734_v17  ;;  %v4924_v17 = vld [vmem:[%s7894_s8 + $0x1c8] sm:$0xff]  ;;  %v5860_v19 = vpack.c.bf16 %v4921_v16, %v4919_v15  ;;  %v2679_v15 = vld [vmem:[%s7894_s8 + $0xd8] sm:$0xff] }
 0x4c9   : > { %v5862_v20 = vpack.c.bf16 %v4926_v18, %v4924_v17  ;;  %v2676_v18 = vld [vmem:[%s7894_s8 + $0xc0] sm:$0xff] }
 0x4cb   : > { %5833 = vmatpush1.bf16.msra.mxu1 %v5736_v22  ;;  %v4925_v22 = vld [vmem:[%s7894_s8 + $0x1d0] sm:$0xff] }
 0x4cc   : > { %5835 = vmatprep.subr.bf16.mxu1 %v5738_v23  ;;  %v4928_v23 = vld [vmem:[%s7894_s8 + $0x1e8] sm:$0xff]  ;;  %v5864_v25 = vpack.c.bf16 %v4925_v22, %v4923_v21  ;;  %v2683_v21 = vld [vmem:[%s7894_s8 + $0xf8] sm:$0xff] }
 0x4cf   : > { %5837 = vmatpush1.bf16.msra.mxu1 %v5740_v26  ;;  %v5866_v26 = vpack.c.bf16 %v4930_v24, %v4928_v23  ;;  %v2680_v24 = vld [vmem:[%s7894_s8 + $0xe0] sm:$0xff] }
 0x4d0   : > { %5309 = vmatprep.subr.mxu1 %v6352_v2 }
 0x585   : > { %v2485_v27 = vpop.f32.mrb[26].mxu1 }
 0x586   : > { %v5298_v28 = vpop.f32.mrb[27].mxu1  ;;  %2554 = vmatmul.mubr.f32.vlgmr.msra.gmra.mrb[24].mxu1 %v2485_v27  ;;  %v4927_v27 = vld [vmem:[%s7894_s8 + $0x1e0] sm:$0xff] }
 0x587   : > { %5311 = vmatprep.mubr.msk.f32.mxu1 %vm6351_vm0, %v6352_v2  ;;  %v4929_v28 = vld [vmem:[%s7894_s8 + $0x1f0] sm:$0xff] }
 0x595   : > { %v2114_v29 = vpop.f32.mrb[2].mxu0 }
 0x596   : > { %v2116_v0 = vpop.f32.mrb[3].mxu0 }
 0x597   : > { %v2121_v30 = vmax.f32 %v2114_v29, %v2116_v0  ;;  %v5868_v29 = vpack.c.bf16 %v4929_v28, %v4927_v27  ;;  %v2653_v0 = vld [vmem:[%s7894_s8 + $0x8] sm:$0xff]  ;;  %v4937_v27 = vld [vmem:[%s7894_s8 + $0x218] sm:$0xff] }
 0x659   : > { %v2555_v32 = vpop.f32.mrb[24].mxu1 }
 0x65a   : > { %v2557_v33 = vpop.f32.mrb[25].mxu1 }
 0x65b   : > { %v2562_v34 = vmax.f32 %v2555_v32, %v2557_v33  ;;  %v2652_v33 = vld [vmem:[%s7894_s8] sm:$0xff] }
 0x65d   : > { %v2563_v36 = vmax.f32 %v2121_v30, %v2562_v34  ;;  %v2655_v30 = vld [vmem:[%s7894_s8 + $0x18] sm:$0xff]  ;;  %v2654_v34 = vld [vmem:[%s7894_s8 + $0x10] sm:$0xff] }
 0x65e   : > { %v5870_v32 = vpack.c.bf16 %v2655_v30, %v2653_v0  ;;  %v5872_v42 = vpack.c.bf16 %v2654_v34, %v2652_v33  ;;  %v4934_v0 = vld [vmem:[%s7894_s8 + $0x200] sm:$0xff]  ;;  %v4936_v30 = vld [vmem:[%s7894_s8 + $0x210] sm:$0xff]  ;;  %v4941_v33 = vld [vmem:[%s7894_s8 + $0x238] sm:$0xff] }
 0x65f   : > { %v2571_v37 = vadd.f32 %v4893_v35, %v2563_v36  ;;  %v2657_v36 = vld [vmem:[%s7894_s8 + $0x28] sm:$0xff]  ;;  %v5904_v34 = vpack.c.bf16 %v4936_v30, %v4934_v0  ;;  %v3578_v0 = vld [vmem:[%s7896_s10 + $0x58] sm:$0xff] }
 0x661   : > { %v7027_v38 = vmax.f32 %v2571_v37, 0.0  ;;  %v2659_v37 = vld [vmem:[%s7894_s8 + $0x38] sm:$0xff] }
 0x662   : > { %v5874_v43 = vpack.c.bf16 %v2659_v37, %v2657_v36  ;;  %v4938_v37 = vld [vmem:[%s7894_s8 + $0x220] sm:$0xff] }
 0x663   : > { %5300 = vmatpush3.msk.msra.mxu0 %vm2578_vm3, %v7027_v38  ;;  %5310 = vmatpush3.msk.msra.mxu1 %vm2578_vm3, %v7027_v38 }
 0x664   : > { %5302 = vmatmul.mubr.msk.f32.vlgmr.msra.gmra.mrb[4].mxu0 %vm2574_vm4, %v2573_v39  ;;  %5304 = vmatprep.subr.mxu0 %v6352_v2 }
 0x665   : > { %5312 = vmatmul.mubr.msk.f32.vlgmr.msra.gmra.mrb[28].mxu1 %vm2574_vm4, %v4931_v40  ;;  %5314 = vmatprep.subr.mxu1 %v6352_v2 }
 0x666   : > { %5305 = vmatpush3.msk.msra.mxu0 %vm2578_vm3, %v7027_v38  ;;  %5315 = vmatpush3.msk.msra.mxu1 %vm2578_vm3, %v7027_v38 }
 0x667   : > { %5306 = vmatprep.mubr.msk.f32.mxu0 %vm6351_vm0, %v6352_v2  ;;  %5316 = vmatprep.mubr.msk.f32.mxu1 %vm6351_vm0, %v6352_v2 }
 0x668   : > { %5319 = vmatprep.subr.mxu1 %v6352_v2  ;;  %5307 = vmatmul.mubr.msk.f32.vlgmr.msra.gmra.mrb[6].mxu0 %vm2574_vm4, %v4896_v45  ;;  %v2658_v45 = vld [vmem:[%s7894_s8 + $0x30] sm:$0xff] }
 0x669   : > { %5317 = vmatmul.mubr.msk.f32.vlgmr.msra.gmra.mrb[30].mxu1 %vm2574_vm4, %v4966_v50  ;;  %5839 = vmatprep.subr.bf16.mxu0 %v5838_v46  ;;  %v5876_v53 = vpack.c.bf16 %v2658_v45, %v2656_v44  ;;  %v4942_v44 = vld [vmem:[%s7894_s8 + $0x240] sm:$0xff] }
 0x66a   : > { %5320 = vmatpush3.msk.msra.mxu1 %vm2578_vm3, %v7027_v38  ;;  %5321 = vmatprep.mubr.msk.f32.mxu1 %vm6351_vm0, %v6352_v2 }
 0x66b   : > { %5841 = vmatpush1.bf16.msra.mxu0 %v5840_v51  ;;  %5935 = vmatprep.subr.bf16.mxu1 %v5838_v46 }
 0x66c   : > { %5843 = vmatprep.subr.bf16.mxu0 %v5842_v52  ;;  %2856 = vmatprep.mubr.f32.mxu0 %v6352_v2 }
 0x66d   : > { %5322 = vmatmul.mubr.msk.f32.vlgmr.msra.gmra.mrb[32].mxu1 %vm2574_vm4, %v4969_v57  ;;  %v2665_v57 = vld [vmem:[%s7894_s8 + $0x68] sm:$0xff] }
 0x66e   : > { %5937 = vmatpush1.bf16.msra.mxu1 %v5840_v51  ;;  %3330 = vmatprep.mubr.f32.mxu1 %v6352_v2 }
 0x66f   : > { %5845 = vmatpush1.bf16.msra.mxu0 %v5844_v58  ;;  %5939 = vmatprep.subr.bf16.mxu1 %v5842_v52 }
 0x670   : > { %5847 = vmatprep.subr.bf16.mxu0 %v5846_v48 }
 0x672   : > { %5941 = vmatpush1.bf16.msra.mxu1 %v5844_v58  ;;  %v2667_v58 = vld [vmem:[%s7894_s8 + $0x78] sm:$0xff] }
 0x673   : > { %5849 = vmatpush1.bf16.msra.mxu0 %v5848_v63  ;;  %5943 = vmatprep.subr.bf16.mxu1 %v5846_v48  ;;  %v5882_v61 = vpack.c.bf16 %v2667_v58, %v2665_v57  ;;  %v4950_v57 = vld [vmem:[%s7894_s8 + $0x280] sm:$0xff]  ;;  %v4952_v58 = vld [vmem:[%s7894_s8 + $0x290] sm:$0xff] }
 0x674   : > { %5851 = vmatprep.subr.bf16.mxu0 %v5850_v3 }
 0x676   : > { %5945 = vmatpush1.bf16.msra.mxu1 %v5848_v63  ;;  %v2666_v63 = vld [vmem:[%s7894_s8 + $0x70] sm:$0xff] }
 0x677   : > { %5853 = vmatpush1.bf16.msra.mxu0 %v5852_v8  ;;  %5947 = vmatprep.subr.bf16.mxu1 %v5850_v3  ;;  %v2669_v3 = vld [vmem:[%s7894_s8 + $0x88] sm:$0xff]  ;;  %v5884_v5 = vpack.c.bf16 %v2666_v63, %v2664_v62  ;;  %v4954_v62 = vld [vmem:[%s7894_s8 + $0x2a0] sm:$0xff]  ;;  %v4956_v63 = vld [vmem:[%s7894_s8 + $0x2b0] sm:$0xff] }
 0x678   : > { %5855 = vmatprep.subr.bf16.mxu0 %v5854_v9  ;;  %v5886_v6 = vpack.c.bf16 %v2671_v4, %v2669_v3  ;;  %v4959_v3 = vld [vmem:[%s7894_s8 + $0x2c8] sm:$0xff]  ;;  %v4961_v4 = vld [vmem:[%s7894_s8 + $0x2d8] sm:$0xff] }
 0x67a   : > { %5949 = vmatpush1.bf16.msra.mxu1 %v5852_v8  ;;  %v2670_v8 = vld [vmem:[%s7894_s8 + $0x90] sm:$0xff] }
 0x67b   : > { %5857 = vmatpush1.bf16.msra.mxu0 %v5856_v10  ;;  %5951 = vmatprep.subr.bf16.mxu1 %v5854_v9  ;;  %v2673_v9 = vld [vmem:[%s7894_s8 + $0xa8] sm:$0xff]  ;;  %v5888_v12 = vpack.c.bf16 %v2670_v8, %v2668_v7  ;;  %v4958_v7 = vld [vmem:[%s7894_s8 + $0x2c0] sm:$0xff]  ;;  %v4960_v8 = vld [vmem:[%s7894_s8 + $0x2d0] sm:$0xff] }
 0x67c   : > { %5859 = vmatprep.subr.bf16.mxu0 %v5858_v31  ;;  %v5890_v13 = vpack.c.bf16 %v2675_v11, %v2673_v9  ;;  %v4963_v9 = vld [vmem:[%s7894_s8 + $0x2e8] sm:$0xff]  ;;  %v4965_v11 = vld [vmem:[%s7894_s8 + $0x2f8] sm:$0xff] }
 0x67e   : > { %5953 = vmatpush1.bf16.msra.mxu1 %v5856_v10  ;;  %v2674_v10 = vld [vmem:[%s7894_s8 + $0xb0] sm:$0xff] }
 0x67f   : > { %5861 = vmatpush1.bf16.msra.mxu0 %v5860_v19  ;;  %5955 = vmatprep.subr.bf16.mxu1 %v5858_v31  ;;  %v2677_v31 = vld [vmem:[%s7894_s8 + $0xc8] sm:$0xff]  ;;  %v5892_v16 = vpack.c.bf16 %v2674_v10, %v2672_v14  ;;  %v4962_v14 = vld [vmem:[%s7894_s8 + $0x2e0] sm:$0xff]  ;;  %v4964_v10 = vld [vmem:[%s7894_s8 + $0x2f0] sm:$0xff] }
 0x680   : > { %5863 = vmatprep.subr.bf16.mxu0 %v5862_v20  ;;  %v5894_v17 = vpack.c.bf16 %v2679_v15, %v2677_v31  ;;  %v5932_v31 = vpack.c.bf16 %v4964_v10, %v4962_v14  ;;  %v3567_v15 = vld [vmem:[%s7896_s10] sm:$0xff] }
 0x681   : > { %v4998_v10 = vld [vmem:[%s7899_s13 + $0x80] sm:$0xff] }
 0x682   : > { %5957 = vmatpush1.bf16.msra.mxu1 %v5860_v19  ;;  %v2678_v19 = vld [vmem:[%s7894_s8 + $0xd0] sm:$0xff] }
 0x683   : > { %5865 = vmatpush1.bf16.msra.mxu0 %v5864_v25  ;;  %5959 = vmatprep.subr.bf16.mxu1 %v5862_v20  ;;  %v2681_v20 = vld [vmem:[%s7894_s8 + $0xe8] sm:$0xff]  ;;  %v5896_v22 = vpack.c.bf16 %v2678_v19, %v2676_v18  ;;  %v3570_v18 = vld [vmem:[%s7896_s10 + $0x18] sm:$0xff] }
 0x684   : > { %5867 = vmatprep.subr.bf16.mxu0 %v5866_v26  ;;  %v5898_v23 = vpack.c.bf16 %v2683_v21, %v2681_v20  ;;  %v3571_v20 = vld [vmem:[%s7896_s10 + $0x20] sm:$0xff]  ;;  %v3572_v21 = vld [vmem:[%s7896_s10 + $0x28] sm:$0xff] }
 0x686   : > { %5961 = vmatpush1.bf16.msra.mxu1 %v5864_v25  ;;  %v2682_v25 = vld [vmem:[%s7894_s8 + $0xf0] sm:$0xff] }
 0x687   : > { %5963 = vmatprep.subr.bf16.mxu1 %v5866_v26  ;;  %5869 = vmatpush1.bf16.msra.mxu0 %v5868_v29  ;;  %v4935_v26 = vld [vmem:[%s7894_s8 + $0x208] sm:$0xff]  ;;  %v5900_v28 = vpack.c.bf16 %v2682_v25, %v2680_v24  ;;  %v3574_v24 = vld [vmem:[%s7896_s10 + $0x38] sm:$0xff] }
 0x688   : > { %5871 = vmatprep.subr.bf16.mxu0 %v5870_v32 }
 0x68a   : > { %5965 = vmatpush1.bf16.msra.mxu1 %v5868_v29  ;;  %v5902_v29 = vpack.c.bf16 %v4937_v27, %v4935_v26  ;;  %v3575_v26 = vld [vmem:[%s7896_s10 + $0x40] sm:$0xff]  ;;  %v3576_v27 = vld [vmem:[%s7896_s10 + $0x48] sm:$0xff] }
 0x68b   : > { %5967 = vmatprep.subr.bf16.mxu1 %v5870_v32  ;;  %v4939_v32 = vld [vmem:[%s7894_s8 + $0x228] sm:$0xff] }
 0x68c   : > { %v5906_v36 = vpack.c.bf16 %v4941_v33, %v4939_v32  ;;  %v4976_v32 = vld [vmem:[%s7896_s10 + $0x80] sm:$0xff]  ;;  %v4977_v33 = vld [vmem:[%s7896_s10 + $0x88] sm:$0xff] }
 0x737   : > { %v7178_v35 = vpop.f32.mrb[4].mxu0 }
 0x738   : > { %v7186_v39 = vpop.f32.mrb[28].mxu1  ;;  %v5303_v40 = vpop.f32.mrb[5].mxu0 }
 0x739   : > { %v5313_v41 = vpop.f32.mrb[29].mxu1  ;;  %v4940_v40 = vld [vmem:[%s7894_s8 + $0x230] sm:$0xff] }
 0x73a   : > { %v4943_v41 = vld [vmem:[%s7894_s8 + $0x248] sm:$0xff] }
 0x73b   : > { %v2755_v46 = vpop.f32.mrb[6].mxu0 }
 0x73c   : > { %v7200_v50 = vpop.f32.mrb[30].mxu1  ;;  %2857 = vmatmul.mubr.f32.vlgmr.msra.gmra.mrb[8].mxu0 %v2755_v46  ;;  %v5308_v51 = vpop.f32.mrb[7].mxu0  ;;  %v4947_v46 = vld [vmem:[%s7894_s8 + $0x268] sm:$0xff] }
 0x73d   : > { %5873 = vmatpush1.bf16.msra.mxu0 %v5872_v42  ;;  %v5318_v52 = vpop.f32.mrb[31].mxu1  ;;  %2927 = vmatprep.mubr.f32.mxu0 %v6352_v2  ;;  %v4972_v51 = vld [vmem:[%s7893_s7 + $0xa] sm:$0x3] }
 0x73e   : > { %5875 = vmatprep.subr.bf16.mxu0 %v5874_v43  ;;  %v5914_v52 = vpack.c.bf16 %v4949_v47, %v4947_v46  ;;  %v4983_v46 = vld [vmem:[%s7896_s10 + $0xb8] sm:$0xff] }
 0x740   : > { %v3262_v48 = vpop.f32.mrb[32].mxu1 }
 0x741   : > { %5877 = vmatpush1.bf16.msra.mxu0 %v5876_v53  ;;  %v5323_v59 = vpop.f32.mrb[33].mxu1  ;;  %3331 = vmatmul.mubr.f32.vlgmr.msra.gmra.mrb[34].mxu1 %v3262_v48  ;;  %v4955_v48 = vld [vmem:[%s7894_s8 + $0x2a8] sm:$0xff] }
 0x742   : > { %5969 = vmatpush1.bf16.msra.mxu1 %v5872_v42  ;;  %5879 = vmatprep.subr.bf16.mxu0 %v5878_v54  ;;  %v4945_v42 = vld [vmem:[%s7894_s8 + $0x258] sm:$0xff] }
 0x743   : > { %5971 = vmatprep.subr.bf16.mxu1 %v5874_v43  ;;  %3401 = vmatprep.mubr.f32.mxu1 %v6352_v2  ;;  %v5908_v43 = vpack.c.bf16 %v4940_v40, %v4938_v37  ;;  %v5910_v45 = vpack.c.bf16 %v4945_v42, %v4943_v41  ;;  %v4957_v59 = vld [vmem:[%s7894_s8 + $0x2b8] sm:$0xff] }
 0x744   : > { %v4979_v37 = vld [vmem:[%s7896_s10 + $0x98] sm:$0xff] }
 0x745   : > { %5881 = vmatpush1.bf16.msra.mxu0 %v5880_v60 }
 0x746   : > { %5973 = vmatpush1.bf16.msra.mxu1 %v5876_v53  ;;  %5883 = vmatprep.subr.bf16.mxu0 %v5882_v61  ;;  %v4946_v53 = vld [vmem:[%s7894_s8 + $0x260] sm:$0xff] }
 0x747   : > { %5975 = vmatprep.subr.bf16.mxu1 %v5878_v54  ;;  %v4953_v54 = vld [vmem:[%s7894_s8 + $0x298] sm:$0xff] }
 0x749   : > { %5885 = vmatpush1.bf16.msra.mxu0 %v5884_v5 }
 0x74a   : > { %5977 = vmatpush1.bf16.msra.mxu1 %v5880_v60  ;;  %5887 = vmatprep.subr.bf16.mxu0 %v5886_v6  ;;  %v5920_v60 = vpack.c.bf16 %v4952_v58, %v4950_v57  ;;  %v3579_v57 = vld [vmem:[%s7896_s10 + $0x60] sm:$0xff]  ;;  %v3580_v58 = vld [vmem:[%s7896_s10 + $0x68] sm:$0xff] }
 0x74b   : > { %5979 = vmatprep.subr.bf16.mxu1 %v5882_v61  ;;  %v5922_v61 = vpack.c.bf16 %v4957_v59, %v4955_v48  ;;  %v4988_v48 = vld [vmem:[%s7896_s10 + $0xe0] sm:$0xff]  ;;  %v6049_v59 = vpack.c.bf16 %v3580_v58, %v3579_v57  ;;  %v3919_v57 = vld [vmem:[%s7899_s13 + $0x68] sm:$0xff] }
 0x74c   : > { %v5010_v58 = vld [vmem:[%s7899_s13 + $0xe0] sm:$0xff] }
 0x74d   : > { %5889 = vmatpush1.bf16.msra.mxu0 %v5888_v12 }
 0x74e   : > { %5981 = vmatpush1.bf16.msra.mxu1 %v5884_v5  ;;  %5891 = vmatprep.subr.bf16.mxu0 %v5890_v13  ;;  %v5924_v5 = vpack.c.bf16 %v4956_v63, %v4954_v62  ;;  %v3581_v62 = vld [vmem:[%s7896_s10 + $0x70] sm:$0xff]  ;;  %v3582_v63 = vld [vmem:[%s7896_s10 + $0x78] sm:$0xff] }
 0x74f   : > { %5983 = vmatprep.subr.bf16.mxu1 %v5886_v6  ;;  %v5926_v6 = vpack.c.bf16 %v4961_v4, %v4959_v3  ;;  %v6052_v3 = vpack.c.bf16 %v3582_v63, %v3581_v62  ;;  %v4990_v4 = vld [vmem:[%s7896_s10 + $0xf0] sm:$0xff]  ;;  %v3921_v62 = vld [vmem:[%s7899_s13 + $0x78] sm:$0xff] }
 0x751   : > { %5893 = vmatpush1.bf16.msra.mxu0 %v5892_v16 }
 0x752   : > { %5985 = vmatpush1.bf16.msra.mxu1 %v5888_v12  ;;  %5895 = vmatprep.subr.bf16.mxu0 %v5894_v17  ;;  %v5928_v12 = vpack.c.bf16 %v4960_v8, %v4958_v7 }
 0x753   : > { %5987 = vmatprep.subr.bf16.mxu1 %v5890_v13  ;;  %v5930_v13 = vpack.c.bf16 %v4965_v11, %v4963_v9  ;;  %v4975_v11 = vld [vmem:[%s7895_s9] ss:$0 sm:$0xff] }
 0x755   : > { %5897 = vmatpush1.bf16.msra.mxu0 %v5896_v22 }
 0x756   : > { %5989 = vmatpush1.bf16.msra.mxu1 %v5892_v16  ;;  %5899 = vmatprep.subr.bf16.mxu0 %v5898_v23  ;;  %v3568_v16 = vld [vmem:[%s7896_s10 + $0x8] sm:$0xff] }
 0x757   : > { %5991 = vmatprep.subr.bf16.mxu1 %v5894_v17  ;;  %v6031_v17 = vpack.c.bf16 %v3568_v16, %v3567_v15  ;;  %v5000_v16 = vld [vmem:[%s7899_s13 + $0x90] sm:$0xff] }
 0x759   : > { %5901 = vmatpush1.bf16.msra.mxu0 %v5900_v28 }
 0x75a   : > { %5993 = vmatpush1.bf16.msra.mxu1 %v5896_v22  ;;  %5903 = vmatprep.subr.bf16.mxu0 %v5902_v29  ;;  %v6037_v22 = vpack.c.bf16 %v3572_v21, %v3571_v20  ;;  %v5004_v21 = vld [vmem:[%s7899_s13 + $0xb0] sm:$0xff] }
 0x75b   : > { %5995 = vmatprep.subr.bf16.mxu1 %v5898_v23  ;;  %v3573_v23 = vld [vmem:[%s7896_s10 + $0x30] sm:$0xff] }
 0x75c   : > { %2928 = vmatmul.mubr.f32.vlgmr.msra.gmra.mrb[8].mxu0 %v7178_v35  ;;  %v4944_v35 = vld [vmem:[%s7894_s8 + $0x250] sm:$0xff]  ;;  %v6040_v25 = vpack.c.bf16 %v3574_v24, %v3573_v23  ;;  %v5006_v24 = vld [vmem:[%s7899_s13 + $0xc0] sm:$0xff] }
 0x75d   : > { %5905 = vmatpush1.bf16.msra.mxu0 %v5904_v34  ;;  %3106 = vmatprep.mubr.f32.mxu0 %v6352_v2  ;;  %v5912_v49 = vpack.c.bf16 %v4944_v35, %v4942_v44  ;;  %v4981_v44 = vld [vmem:[%s7896_s10 + $0xa8] sm:$0xff] }
 0x75e   : > { %5997 = vmatpush1.bf16.msra.mxu1 %v5900_v28  ;;  %5907 = vmatprep.subr.bf16.mxu0 %v5906_v36  ;;  %v6043_v28 = vpack.c.bf16 %v3576_v27, %v3575_v26  ;;  %v4992_v27 = vld [vmem:[%s7897_s11 + $0x4] sm:$0xf] }
 0x75f   : > { %5324 = vmatprep.subr.mxu1 %v6352_v2 }
 0x761   : > { %3402 = vmatmul.mubr.f32.vlgmr.msra.gmra.mrb[34].mxu1 %v7200_v50  ;;  %5909 = vmatpush1.bf16.msra.mxu0 %v5908_v43  ;;  %v4948_v50 = vld [vmem:[%s7894_s8 + $0x270] sm:$0xff] }
 0x762   : > { %5325 = vmatpush3.msk.msra.mxu1 %vm2578_vm3, %v7027_v38  ;;  %5326 = vmatprep.mubr.msk.f32.mxu1 %vm6351_vm0, %v6352_v2  ;;  %v4951_v38 = vld [vmem:[%s7894_s8 + $0x288] sm:$0xff]  ;;  %v5916_v55 = vpack.c.bf16 %v4948_v50, %v4946_v53  ;;  %v4986_v53 = vld [vmem:[%s7896_s10 + $0xd0] sm:$0xff]  ;;  %v4987_v50 = vld [vmem:[%s7896_s10 + $0xd8] sm:$0xff] }
 0x763   : > { %5911 = vmatprep.subr.bf16.mxu0 %v5910_v45  ;;  %5999 = vmatprep.subr.bf16.mxu1 %v5902_v29  ;;  %v5918_v56 = vpack.c.bf16 %v4953_v54, %v4951_v38  ;;  %v3577_v29 = vld [vmem:[%s7896_s10 + $0x50] sm:$0xff]  ;;  %v6070_v38 = vpack.c.bf16 %v4987_v50, %v4986_v53  ;;  %v3917_v53 = vld [vmem:[%s7899_s13 + $0x58] sm:$0xff] }
 0x764   : > { %v6046_v30 = vpack.c.bf16 %v3578_v0, %v3577_v29  ;;  %v3906_v0 = vld [vmem:[%s7899_s13] sm:$0xff]  ;;  %v5008_v50 = vld [vmem:[%s7899_s13 + $0xd0] sm:$0xff] }
 0x765   : > { %5327 = vmatmul.mubr.msk.f32.vlgmr.msra.gmra.mrb[36].mxu1 %vm2574_vm4, %v4972_v51  ;;  %5913 = vmatpush1.bf16.msra.mxu0 %v5912_v49  ;;  %v4985_v51 = vld [vmem:[%s7896_s10 + $0xc8] sm:$0xff] }
 0x766   : > { %5915 = vmatprep.subr.bf16.mxu0 %v5914_v52  ;;  %6001 = vmatpush1.bf16.msra.mxu1 %v5904_v34  ;;  %v6055_v34 = vpack.c.bf16 %v4977_v33, %v4976_v32 }
 0x767   : > { %6003 = vmatprep.subr.bf16.mxu1 %v5906_v36  ;;  %3547 = vmatprep.mubr.f32.mxu1 %v6352_v2  ;;  %v4978_v36 = vld [vmem:[%s7896_s10 + $0x90] sm:$0xff] }
 0x768   : > { %v6058_v42 = vpack.c.bf16 %v4979_v37, %v4978_v36  ;;  %v3908_v37 = vld [vmem:[%s7899_s13 + $0x10] sm:$0xff] }
 0x769   : > { %5917 = vmatpush1.bf16.msra.mxu0 %v5916_v55 }
 0x76a   : > { %5919 = vmatprep.subr.bf16.mxu0 %v5918_v56  ;;  %6005 = vmatpush1.bf16.msra.mxu1 %v5908_v43  ;;  %v4980_v43 = vld [vmem:[%s7896_s10 + $0xa0] sm:$0xff] }
 0x76b   : > { %6007 = vmatprep.subr.bf16.mxu1 %v5910_v45  ;;  %v6061_v35 = vpack.c.bf16 %v4981_v44, %v4980_v43  ;;  %v4982_v45 = vld [vmem:[%s7896_s10 + $0xb0] sm:$0xff]  ;;  %v3911_v43 = vld [vmem:[%s7899_s13 + $0x28] sm:$0xff] }
 0x76c   : > { %v6064_v47 = vpack.c.bf16 %v4983_v46, %v4982_v45  ;;  %v3913_v45 = vld [vmem:[%s7899_s13 + $0x38] sm:$0xff] }
 0x76d   : > { %5921 = vmatpush1.bf16.msra.mxu0 %v5920_v60 }
 0x76e   : > { %5923 = vmatprep.subr.bf16.mxu0 %v5922_v61  ;;  %6009 = vmatpush1.bf16.msra.mxu1 %v5912_v49  ;;  %v4984_v49 = vld [vmem:[%s7896_s10 + $0xc0] sm:$0xff] }
 0x76f   : > { %6011 = vmatprep.subr.bf16.mxu1 %v5914_v52  ;;  %v6067_v52 = vpack.c.bf16 %v4985_v51, %v4984_v49  ;;  %v3915_v49 = vld [vmem:[%s7899_s13 + $0x48] sm:$0xff] }
 0x771   : > { %5925 = vmatpush1.bf16.msra.mxu0 %v5924_v5 }
 0x772   : > { %5927 = vmatprep.subr.bf16.mxu0 %v5926_v6  ;;  %6013 = vmatpush1.bf16.msra.mxu1 %v5916_v55 }
 0x773   : > { %6015 = vmatprep.subr.bf16.mxu1 %v5918_v56 }
 0x775   : > { %5929 = vmatpush1.bf16.msra.mxu0 %v5928_v12 }
 0x776   : > { %5931 = vmatprep.subr.bf16.mxu0 %v5930_v13  ;;  %6017 = vmatpush1.bf16.msra.mxu1 %v5920_v60  ;;  %v4989_v60 = vld [vmem:[%s7896_s10 + $0xe8] sm:$0xff] }
 0x777   : > { %6019 = vmatprep.subr.bf16.mxu1 %v5922_v61  ;;  %v6073_v61 = vpack.c.bf16 %v4989_v60, %v4988_v48 }
 0x779   : > { %5933 = vmatpush1.bf16.msra.mxu0 %v5932_v31 }
 0x77a   : > { %6021 = vmatpush1.bf16.msra.mxu1 %v5924_v5  ;;  %6030 = vmatprep.subr.bf16.mxu0 %v6350_v1  ;;  %v4991_v5 = vld [vmem:[%s7896_s10 + $0xf8] sm:$0xff] }
 0x77b   : > { %6023 = vmatprep.subr.bf16.mxu1 %v5926_v6  ;;  %v6076_v6 = vpack.c.bf16 %v4991_v5, %v4990_v4  ;;  %v5013_v4 = vld [vmem:[%s7899_s13 + $0xf8] sm:$0xff] }
 0x77c   : > { %3107 = vmatmul.mubr.f32.vlgmr.msra.gmra.mrb[8].mxu0 %v7186_v39  ;;  %v3569_v39 = vld [vmem:[%s7896_s10 + $0x10] sm:$0xff] }
 0x77d   : > { %5361 = vmatprep.mubr.msk.f32.mxu0 %vm6351_vm0, %v6352_v2  ;;  %6032 = vmatpush3.bf16.msra.mxu0 %v6031_v17  ;;  %v6034_v19 = vpack.c.bf16 %v3570_v18, %v3569_v39  ;;  %v5001_v17 = vld [vmem:[%s7899_s13 + $0x98] sm:$0xff]  ;;  %v5002_v18 = vld [vmem:[%s7899_s13 + $0xa0] sm:$0xff] }
 0x77e   : > { %6025 = vmatpush1.bf16.msra.mxu1 %v5928_v12  ;;  %6033 = vmatprep.subr.bf16.mxu0 %v6350_v1  ;;  %v6106_v39 = vpack.c.bf16 %v5001_v17, %v5000_v16  ;;  %v5022_v16 = vld [vmem:[%s7902_s16 + $0x90] sm:$0xff]  ;;  %v5023_v17 = vld [vmem:[%s7902_s16 + $0x98] sm:$0xff] }
 0x77f   : > { %6027 = vmatprep.subr.bf16.mxu1 %v5930_v13 }
 0x781   : > { %6035 = vmatpush3.bf16.msra.mxu0 %v6034_v19  ;;  %v5003_v19 = vld [vmem:[%s7899_s13 + $0xa8] sm:$0xff] }
 0x782   : > { %6029 = vmatpush1.bf16.msra.mxu1 %v5932_v31  ;;  %6036 = vmatprep.subr.bf16.mxu0 %v6350_v1  ;;  %v4999_v31 = vld [vmem:[%s7899_s13 + $0x88] sm:$0xff]  ;;  %v6109_v20 = vpack.c.bf16 %v5003_v19, %v5002_v18  ;;  %v5024_v18 = vld [vmem:[%s7902_s16 + $0xa0] sm:$0xff] }
 0x783   : > { %6054 = vmatprep.subr.bf16.mxu1 %v6350_v1  ;;  %v6103_v15 = vpack.c.bf16 %v4999_v31, %v4998_v10  ;;  %v5020_v10 = vld [vmem:[%s7902_s16 + $0x80] sm:$0xff]  ;;  %v5021_v31 = vld [vmem:[%s7902_s16 + $0x88] sm:$0xff] }
 0x784   : > { %v5025_v19 = vld [vmem:[%s7902_s16 + $0xa8] sm:$0xff] }
 0x785   : > { %6038 = vmatpush3.bf16.msra.mxu0 %v6037_v22  ;;  %v5005_v22 = vld [vmem:[%s7899_s13 + $0xb8] sm:$0xff] }
 0x786   : > { %6039 = vmatprep.subr.bf16.mxu0 %v6350_v1  ;;  %v6112_v23 = vpack.c.bf16 %v5005_v22, %v5004_v21  ;;  %v5026_v21 = vld [vmem:[%s7902_s16 + $0xb0] sm:$0xff]  ;;  %v5027_v22 = vld [vmem:[%s7902_s16 + $0xb8] sm:$0xff] }
 0x789   : > { %6041 = vmatpush3.bf16.msra.mxu0 %v6040_v25  ;;  %v5007_v25 = vld [vmem:[%s7899_s13 + $0xc8] sm:$0xff] }
 0x78a   : > { %6042 = vmatprep.subr.bf16.mxu0 %v6350_v1  ;;  %v6115_v26 = vpack.c.bf16 %v5007_v25, %v5006_v24  ;;  %v5028_v24 = vld [vmem:[%s7902_s16 + $0xc0] sm:$0xff]  ;;  %v5029_v25 = vld [vmem:[%s7902_s16 + $0xc8] sm:$0xff] }
 0x78d   : > { %6044 = vmatpush3.bf16.msra.mxu0 %v6043_v28 }
 0x78e   : > { %6045 = vmatprep.subr.bf16.mxu0 %v6350_v1 }
 0x791   : > { %6047 = vmatpush3.bf16.msra.mxu0 %v6046_v30  ;;  %v3907_v30 = vld [vmem:[%s7899_s13 + $0x8] sm:$0xff] }
 0x792   : > { %6048 = vmatprep.subr.bf16.mxu0 %v6350_v1  ;;  %v6079_v36 = vpack.c.bf16 %v3907_v30, %v3906_v0  ;;  %v4243_v0 = vld [vmem:[%s7902_s16] sm:$0xff]  ;;  %v4244_v30 = vld [vmem:[%s7902_s16 + $0x8] sm:$0xff] }
 0x795   : > { %6050 = vmatpush3.bf16.msra.mxu0 %v6049_v59  ;;  %v5011_v59 = vld [vmem:[%s7899_s13 + $0xe8] sm:$0xff] }
 0x796   : > { %6051 = vmatprep.subr.bf16.mxu0 %v6350_v1  ;;  %v6121_v60 = vpack.c.bf16 %v5011_v59, %v5010_v58 }
 0x799   : > { %6053 = vmatpush3.bf16.msra.mxu0 %v6052_v3  ;;  %v5012_v3 = vld [vmem:[%s7899_s13 + $0xf0] sm:$0xff] }
 0x79a   : > { %5399 = vmatprep.subr.mxu0 %v6352_v2  ;;  %v6124_v5 = vpack.c.bf16 %v5013_v4, %v5012_v3  ;;  %v5035_v3 = vld [vmem:[%s7902_s16 + $0xf8] sm:$0xff] }
 0x838   : > { %v3479_v40 = vpop.f32.mrb[36].mxu1 }
 0x839   : > { %v5328_v41 = vpop.f32.mrb[37].mxu1  ;;  %3548 = vmatmul.mubr.f32.vlgmr.msra.gmra.mrb[34].mxu1 %v3479_v40  ;;  %v3909_v40 = vld [vmem:[%s7899_s13 + $0x18] sm:$0xff] }
 0x83a   : > { %6056 = vmatpush3.bf16.msra.mxu1 %v6055_v34  ;;  %5396 = vmatprep.mubr.msk.f32.mxu1 %vm6351_vm0, %v6352_v2  ;;  %v3653_v34 = vld [vmem:[%s7897_s11] sm:$0xf]  ;;  %v6082_v41 = vpack.c.bf16 %v3909_v40, %v3908_v37  ;;  %v4245_v37 = vld [vmem:[%s7902_s16 + $0x10] sm:$0xff]  ;;  %v4246_v40 = vld [vmem:[%s7902_s16 + $0x18] sm:$0xff] }
 0x83b   : > { %6057 = vmatprep.subr.bf16.mxu1 %v6350_v1 }
 0x83e   : > { %6059 = vmatpush3.bf16.msra.mxu1 %v6058_v42  ;;  %v3910_v42 = vld [vmem:[%s7899_s13 + $0x20] sm:$0xff] }
 0x83f   : > { %6060 = vmatprep.subr.bf16.mxu1 %v6350_v1  ;;  %v6085_v44 = vpack.c.bf16 %v3911_v43, %v3910_v42  ;;  %v4247_v42 = vld [vmem:[%s7902_s16 + $0x20] sm:$0xff]  ;;  %v4248_v43 = vld [vmem:[%s7902_s16 + $0x28] sm:$0xff] }
 0x842   : > { %6062 = vmatpush3.bf16.msra.mxu1 %v6061_v35  ;;  %v3912_v35 = vld [vmem:[%s7899_s13 + $0x30] sm:$0xff] }
 0x843   : > { %6063 = vmatprep.subr.bf16.mxu1 %v6350_v1  ;;  %v6088_v46 = vpack.c.bf16 %v3913_v45, %v3912_v35  ;;  %v4249_v35 = vld [vmem:[%s7902_s16 + $0x30] sm:$0xff] }
 0x846   : > { %6065 = vmatpush3.bf16.msra.mxu1 %v6064_v47  ;;  %v3914_v47 = vld [vmem:[%s7899_s13 + $0x40] sm:$0xff] }
 0x847   : > { %6066 = vmatprep.subr.bf16.mxu1 %v6350_v1  ;;  %v6091_v51 = vpack.c.bf16 %v3915_v49, %v3914_v47  ;;  %v4252_v47 = vld [vmem:[%s7902_s16 + $0x48] sm:$0xff] }
 0x84a   : > { %6068 = vmatpush3.bf16.msra.mxu1 %v6067_v52  ;;  %v3916_v52 = vld [vmem:[%s7899_s13 + $0x50] sm:$0xff] }
 0x84b   : > { %6069 = vmatprep.subr.bf16.mxu1 %v6350_v1 }
 0x84e   : > { %6071 = vmatpush3.bf16.msra.mxu1 %v6070_v38  ;;  %v6094_v38 = vpack.c.bf16 %v3917_v53, %v3916_v52  ;;  %v4254_v52 = vld [vmem:[%s7902_s16 + $0x58] sm:$0xff]  ;;  %v5030_v53 = vld [vmem:[%s7902_s16 + $0xd0] sm:$0xff] }
 0x84f   : > { %v3108_v54 = vpop.f32.mrb[8].mxu0  ;;  %6072 = vmatprep.subr.bf16.mxu1 %v6350_v1 }
 0x850   : > { %v3110_v55 = vpop.f32.mrb[9].mxu0 }
 0x851   : > { %v3115_v56 = vmax.f32 %v3108_v54, %v3110_v55  ;;  %v5009_v54 = vld [vmem:[%s7899_s13 + $0xd8] sm:$0xff] }
 0x852   : > { %6074 = vmatpush3.bf16.msra.mxu1 %v6073_v61  ;;  %v6118_v55 = vpack.c.bf16 %v5009_v54, %v5008_v50  ;;  %v3920_v61 = vld [vmem:[%s7899_s13 + $0x70] sm:$0xff] }
 0x853   : > { %6075 = vmatprep.subr.bf16.mxu1 %v6350_v1  ;;  %v6100_v63 = vpack.c.bf16 %v3921_v62, %v3920_v61  ;;  %v4258_v61 = vld [vmem:[%s7902_s16 + $0x78] sm:$0xff] }
 0x856   : > { %6077 = vmatpush3.bf16.msra.mxu1 %v6076_v6 }
 0x857   : > { %6102 = vmatprep.subr.bf16.mxu1 %v6350_v1 }
 0x90c   : > { %v3549_v7 = vpop.f32.mrb[34].mxu1 }
 0x90d   : > { %v3551_v8 = vpop.f32.mrb[35].mxu1 }
 0x90e   : > { %v3556_v9 = vmax.f32 %v3549_v7, %v3551_v8 }
 0x910   : > { %v3557_v12 = vmax.f32 %v3115_v56, %v3556_v9  ;;  %v3918_v56 = vld [vmem:[%s7899_s13 + $0x60] sm:$0xff] }
 0x911   : > { %v6097_v48 = vpack.c.bf16 %v3919_v57, %v3918_v56  ;;  %v4997_v9 = vld [vmem:[%s7898_s12] ss:$0 sm:$0xff]  ;;  %v4256_v56 = vld [vmem:[%s7902_s16 + $0x68] sm:$0xff] }
 0x912   : > { %v3565_v13 = vadd.f32 %v4975_v11, %v3557_v12  ;;  %v5032_v57 = vld [vmem:[%s7902_s16 + $0xe0] sm:$0xff] }
 0x914   : > { %v3566_v14 = vmax.f32 %v3565_v13, 0.0 }
 0x916   : > { %5362 = vmatmul.mubr.f32.vlgmr.msra.gmra.mrb[10].mxu0 %v3566_v14  ;;  %5397 = vmatmul.mubr.f32.vlgmr.msra.gmra.mrb[38].mxu1 %v3566_v14 }
 0x917   : > { %5401 = vmatprep.mubr.msk.f32.mxu0 %vm6351_vm0, %v6352_v2  ;;  %5476 = vmatprep.mubr.msk.f32.mxu1 %vm6351_vm0, %v6352_v2 }
 0x918   : > { %6104 = vmatpush3.bf16.msra.mxu1 %v6103_v15  ;;  %v6151_v15 = vpack.c.bf16 %v5021_v31, %v5020_v10  ;;  %v4595_v10 = vld [vmem:[%s7905_s19 + $0x8] sm:$0xff] }
 0x919   : > { %6105 = vmatprep.subr.bf16.mxu1 %v6350_v1 }
 0x91c   : > { %6107 = vmatpush3.bf16.msra.mxu1 %v6106_v39  ;;  %v6154_v39 = vpack.c.bf16 %v5023_v17, %v5022_v16  ;;  %v5037_v16 = vld [vmem:[%s7903_s17 + $0x18] sm:$0xff] }
 0x91d   : > { %6108 = vmatprep.subr.bf16.mxu1 %v6350_v1 }
 0x920   : > { %6110 = vmatpush3.bf16.msra.mxu1 %v6109_v20  ;;  %v6157_v20 = vpack.c.bf16 %v5025_v19, %v5024_v18  ;;  %v4329_v18 = vld [vmem:[%s7903_s17] sm:$0xff] }
 0x921   : > { %6111 = vmatprep.subr.bf16.mxu1 %v6350_v1 }
 0x924   : > { %6113 = vmatpush3.bf16.msra.mxu1 %v6112_v23  ;;  %v6160_v23 = vpack.c.bf16 %v5027_v22, %v5026_v21  ;;  %v4597_v21 = vld [vmem:[%s7905_s19 + $0x18] sm:$0xff]  ;;  %v4330_v22 = vld [vmem:[%s7903_s17 + $0x8] sm:$0xff] }
 0x925   : > { %6114 = vmatprep.subr.bf16.mxu1 %v6350_v1 }
 0x928   : > { %6116 = vmatpush3.bf16.msra.mxu1 %v6115_v26  ;;  %v6163_v26 = vpack.c.bf16 %v5029_v25, %v5028_v24  ;;  %v4598_v24 = vld [vmem:[%s7905_s19 + $0x20] sm:$0xff]  ;;  %v4599_v25 = vld [vmem:[%s7905_s19 + $0x28] sm:$0xff] }
 0x929   : > { %6117 = vmatprep.subr.bf16.mxu1 %v6350_v1 }
 0x92c   : > { %6119 = vmatpush3.bf16.msra.mxu1 %v6118_v55  ;;  %v4255_v55 = vld [vmem:[%s7902_s16 + $0x60] sm:$0xff] }
 0x92d   : > { %6120 = vmatprep.subr.bf16.mxu1 %v6350_v1  ;;  %v6145_v58 = vpack.c.bf16 %v4256_v56, %v4255_v55 }
 0x930   : > { %6122 = vmatpush3.bf16.msra.mxu1 %v6121_v60  ;;  %v4257_v60 = vld [vmem:[%s7902_s16 + $0x70] sm:$0xff] }
 0x931   : > { %6123 = vmatprep.subr.bf16.mxu1 %v6350_v1  ;;  %v6148_v62 = vpack.c.bf16 %v4258_v61, %v4257_v60 }
 0x934   : > { %6125 = vmatpush3.bf16.msra.mxu1 %v6124_v5 }
 0x935   : > { %6150 = vmatprep.subr.bf16.mxu1 %v6350_v1 }
 0x9e9   : > { %v3649_v28 = vpop.f32.mrb[10].mxu0  ;;  %v3737_v29 = vpop.f32.mrb[38].mxu1 }
 0x9ea   : > { %v5363_v32 = vpop.f32.mrb[11].mxu0  ;;  %v5398_v33 = vpop.f32.mrb[39].mxu1  ;;  %5400 = vmatpush3.msk.msra.mxu0 %vm3747_vm5, %v3737_v29 }
 0x9eb   : > { %5402 = vmatmul.mubr.msk.f32.vlgmr.msra.gmra.mrb[12].mxu0 %vm3743_vm6, %v4992_v27  ;;  %5404 = vmatprep.subr.mxu0 %v6352_v2  ;;  %v5014_v27 = vld [vmem:[%s7900_s14 + $0x8] sm:$0xff] }
 0x9ec   : > { %5405 = vmatpush3.msk.msra.mxu0 %vm3747_vm5, %v3649_v28  ;;  %5406 = vmatprep.mubr.msk.f32.mxu0 %vm6351_vm0, %v6352_v2 }
 0x9ed   : > { %6078 = vmatprep.subr.bf16.mxu0 %v6350_v1 }
 0x9ef   : > { %5407 = vmatmul.mubr.msk.f32.vlgmr.msra.gmra.mrb[14].mxu0 %vm3743_vm6, %v3653_v34  ;;  %v3992_v34 = vld [vmem:[%s7900_s14] sm:$0xff] }
 0x9f0   : > { %6080 = vmatpush3.bf16.msra.mxu0 %v6079_v36  ;;  %5441 = vmatprep.mubr.msk.f32.mxu0 %vm6351_vm0, %v6352_v2  ;;  %v6127_v36 = vpack.c.bf16 %v4244_v30, %v4243_v0  ;;  %v4602_v0 = vld [vmem:[%s7905_s19 + $0x40] sm:$0xff]  ;;  %v4603_v30 = vld [vmem:[%s7905_s19 + $0x48] sm:$0xff] }
 0x9f1   : > { %6081 = vmatprep.subr.bf16.mxu0 %v6350_v1 }
 0x9f4   : > { %6083 = vmatpush3.bf16.msra.mxu0 %v6082_v41  ;;  %v6130_v41 = vpack.c.bf16 %v4246_v40, %v4245_v37  ;;  %v4606_v37 = vld [vmem:[%s7905_s19 + $0x60] sm:$0xff]  ;;  %v4607_v40 = vld [vmem:[%s7905_s19 + $0x68] sm:$0xff] }
 0x9f5   : > { %6084 = vmatprep.subr.bf16.mxu0 %v6350_v1 }
 0x9f8   : > { %6086 = vmatpush3.bf16.msra.mxu0 %v6085_v44  ;;  %v6133_v44 = vpack.c.bf16 %v4248_v43, %v4247_v42  ;;  %v4608_v42 = vld [vmem:[%s7905_s19 + $0x70] sm:$0xff]  ;;  %v4609_v43 = vld [vmem:[%s7905_s19 + $0x78] sm:$0xff] }
 0x9f9   : > { %6087 = vmatprep.subr.bf16.mxu0 %v6350_v1 }
 0x9fc   : > { %6089 = vmatpush3.bf16.msra.mxu0 %v6088_v46  ;;  %v4251_v46 = vld [vmem:[%s7902_s16 + $0x40] sm:$0xff] }
 0x9fd   : > { %6090 = vmatprep.subr.bf16.mxu0 %v6350_v1  ;;  %v6139_v49 = vpack.c.bf16 %v4252_v47, %v4251_v46 }
 0xa00   : > { %6092 = vmatpush3.bf16.msra.mxu0 %v6091_v51  ;;  %v4253_v51 = vld [vmem:[%s7902_s16 + $0x50] sm:$0xff] }
 0xa01   : > { %6093 = vmatprep.subr.bf16.mxu0 %v6350_v1  ;;  %v6142_v50 = vpack.c.bf16 %v4254_v52, %v4253_v51 }
 0xa04   : > { %6095 = vmatpush3.bf16.msra.mxu0 %v6094_v38  ;;  %v5031_v38 = vld [vmem:[%s7902_s16 + $0xd8] sm:$0xff] }
 0xa05   : > { %6096 = vmatprep.subr.bf16.mxu0 %v6350_v1  ;;  %v6166_v54 = vpack.c.bf16 %v5031_v38, %v5030_v53 }
 0xa08   : > { %6098 = vmatpush3.bf16.msra.mxu0 %v6097_v48  ;;  %v5033_v48 = vld [vmem:[%s7902_s16 + $0xe8] sm:$0xff] }
 0xa09   : > { %6099 = vmatprep.subr.bf16.mxu0 %v6350_v1  ;;  %v6169_v59 = vpack.c.bf16 %v5033_v48, %v5032_v57 }
 0xa0c   : > { %6101 = vmatpush3.bf16.msra.mxu0 %v6100_v63  ;;  %v5034_v63 = vld [vmem:[%s7902_s16 + $0xf0] sm:$0xff] }
 0xa0d   : > { %5479 = vmatprep.subr.mxu0 %v6352_v2  ;;  %v6172_v4 = vpack.c.bf16 %v5035_v3, %v5034_v63 }
 0xabe   : > { %v3817_v6 = vpop.f32.mrb[12].mxu0 }
 0xabf   : > { %v5403_v7 = vpop.f32.mrb[13].mxu0 }
 0xac2   : > { %v3893_v8 = vpop.f32.mrb[14].mxu0 }
 0xac3   : > { %v3894_v11 = vadd.f32 %v3893_v8, %v3817_v6  ;;  %v5408_v12 = vpop.f32.mrb[15].mxu0  ;;  %v5019_v8 = vld [vmem:[%s7901_s15] ss:$0 sm:$0xff] }
 0xac5   : > { %v3904_v13 = vadd.f32 %v4997_v9, %v3894_v11 }
 0xac7   : > { %v3905_v14 = vmax.f32 %v3904_v13, 0.0  ;;  %v5036_v13 = vld [vmem:[%s7903_s17 + $0x10] sm:$0xff] }
 0xac9   : > { %5442 = vmatmul.mubr.f32.vlgmr.msra.gmra.mrb[16].mxu0 %v3905_v14  ;;  %5477 = vmatmul.mubr.f32.vlgmr.msra.gmra.mrb[40].mxu1 %v3905_v14  ;;  %v4594_v14 = vld [vmem:[%s7905_s19] sm:$0xff] }
 0xaca   : > { %5481 = vmatprep.mubr.msk.f32.mxu0 %vm6351_vm0, %v6352_v2  ;;  %5556 = vmatprep.mubr.msk.f32.mxu1 %vm6351_vm0, %v6352_v2  ;;  %v6174_v19 = vpack.c.bf16 %v4595_v10, %v4594_v14 }
 0xacb   : > { %6152 = vmatpush3.bf16.msra.mxu1 %v6151_v15 }
 0xacc   : > { %6153 = vmatprep.subr.bf16.mxu1 %v6350_v1 }
 0xacf   : > { %6155 = vmatpush3.bf16.msra.mxu1 %v6154_v39 }
 0xad0   : > { %6156 = vmatprep.subr.bf16.mxu1 %v6350_v1 }
 0xad3   : > { %6158 = vmatpush3.bf16.msra.mxu1 %v6157_v20  ;;  %v4596_v20 = vld [vmem:[%s7905_s19 + $0x10] sm:$0xff] }
 0xad4   : > { %6159 = vmatprep.subr.bf16.mxu1 %v6350_v1 }
 0xad7   : > { %6161 = vmatpush3.bf16.msra.mxu1 %v6160_v23  ;;  %v6178_v23 = vpack.c.bf16 %v4597_v21, %v4596_v20 }
 0xad8   : > { %6162 = vmatprep.subr.bf16.mxu1 %v6350_v1 }
 0xadb   : > { %6164 = vmatpush3.bf16.msra.mxu1 %v6163_v26  ;;  %v6182_v26 = vpack.c.bf16 %v4599_v25, %v4598_v24 }
 0xadc   : > { %6165 = vmatprep.subr.bf16.mxu1 %v6350_v1 }
 0xadf   : > { %6167 = vmatpush3.bf16.msra.mxu1 %v6166_v54 }
 0xae0   : > { %6168 = vmatprep.subr.bf16.mxu1 %v6350_v1 }
 0xae3   : > { %6170 = vmatpush3.bf16.msra.mxu1 %v6169_v59 }
 0xae4   : > { %6171 = vmatprep.subr.bf16.mxu1 %v6350_v1 }
 0xae7   : > { %6173 = vmatpush3.bf16.msra.mxu1 %v6172_v4 }
 0xb9c   : > { %v3988_v28 = vpop.f32.mrb[16].mxu0  ;;  %v4076_v29 = vpop.f32.mrb[40].mxu1 }
 0xb9d   : > { %v5443_v32 = vpop.f32.mrb[17].mxu0  ;;  %v5478_v33 = vpop.f32.mrb[41].mxu1  ;;  %5480 = vmatpush3.msk.msra.mxu0 %vm2578_vm3, %v4076_v29 }
 0xb9e   : > { %5482 = vmatmul.mubr.msk.f32.vlgmr.msra.gmra.mrb[18].mxu0 %vm2574_vm4, %v5014_v27  ;;  %5484 = vmatprep.subr.mxu0 %v6352_v2  ;;  %v4600_v27 = vld [vmem:[%s7905_s19 + $0x30] sm:$0xff]  ;;  %v6190_v32 = vpack.c.bf16 %v4603_v30, %v4602_v0 }
 0xb9f   : > { %5485 = vmatpush3.msk.msra.mxu0 %vm2578_vm3, %v3988_v28  ;;  %5486 = vmatprep.mubr.msk.f32.mxu0 %vm6351_vm0, %v6352_v2  ;;  %v4601_v28 = vld [vmem:[%s7905_s19 + $0x38] sm:$0xff]  ;;  %v4604_v33 = vld [vmem:[%s7905_s19 + $0x50] sm:$0xff] }
 0xba0   : > { %6126 = vmatprep.subr.bf16.mxu0 %v6350_v1  ;;  %v6186_v29 = vpack.c.bf16 %v4601_v28, %v4600_v27 }
 0xba2   : > { %5487 = vmatmul.mubr.msk.f32.vlgmr.msra.gmra.mrb[20].mxu0 %vm2574_vm4, %v3992_v34  ;;  %v4605_v34 = vld [vmem:[%s7905_s19 + $0x58] sm:$0xff] }
 0xba3   : > { %6128 = vmatpush3.bf16.msra.mxu0 %v6127_v36  ;;  %5521 = vmatprep.mubr.msk.f32.mxu0 %vm6351_vm0, %v6352_v2  ;;  %v4250_v2 = vld [vmem:[%s7902_s16 + $0x38] sm:$0xff]  ;;  %v6194_v36 = vpack.c.bf16 %v4605_v34, %v4604_v33 }
 0xba4   : > { %6129 = vmatprep.subr.bf16.mxu0 %v6350_v1  ;;  %v6136_v45 = vpack.c.bf16 %v4250_v2, %v4249_v35  ;;  %v5043_v35 = vld [vmem:[#allocation2] ss:$0 sm:$0xff]  ;;  %v6353_v2 = vmov 0  }
 0xba5   : > { %6277 = vset.pattern.permute.xlu0 %v6353_v2 }
 0xba6   : > { %4617 = vperm.xlu0 %6277, %v5043_v35  }
 0xba7   : > { %6131 = vmatpush3.bf16.msra.mxu0 %v6130_v41  ;;  %v6198_v41 = vpack.c.bf16 %v4607_v40, %v4606_v37 }
 0xba8   : > { %6132 = vmatprep.subr.bf16.mxu0 %v6350_v1 }
 0xbab   : > { %6134 = vmatpush3.bf16.msra.mxu0 %v6133_v44  ;;  %v6202_v44 = vpack.c.bf16 %v4609_v43, %v4608_v42 }
 0xbac   : > { %6135 = vmatprep.subr.bf16.mxu0 %v6350_v1 }
 0xbaf   : > { %6137 = vmatpush3.bf16.msra.mxu0 %v6136_v45  ;;  %v5042_v45 = vld [vmem:[%s7904_s18] ss:$0 sm:$0xff] }
 0xbb0   : > { %6138 = vmatprep.subr.bf16.mxu0 %v6350_v1 }
 0xbb3   : > { %6140 = vmatpush3.bf16.msra.mxu0 %v6139_v49 }
 0xbb4   : > { %6141 = vmatprep.subr.bf16.mxu0 %v6350_v1 }
 0xbb7   : > { %6143 = vmatpush3.bf16.msra.mxu0 %v6142_v50 }
 0xbb8   : > { %6144 = vmatprep.subr.bf16.mxu0 %v6350_v1 }
 0xbbb   : > { %6146 = vmatpush3.bf16.msra.mxu0 %v6145_v58 }
 0xbbc   : > { %6147 = vmatprep.subr.bf16.mxu0 %v6350_v1 }
 0xbbf   : > { %6149 = vmatpush3.bf16.msra.mxu0 %v6148_v62 }
 0xc25   : > { %v4618_v50 = vpop.permute.xlu0 %4617 }
 0xc71   : > { %v4154_v5 = vpop.f32.mrb[18].mxu0 }
 0xc72   : > { %v5483_v6 = vpop.f32.mrb[19].mxu0 }
 0xc75   : > { %v4230_v7 = vpop.f32.mrb[20].mxu0 }
 0xc76   : > { %v4231_v1 = vadd.f32 %v4230_v7, %v4154_v5  ;;  %v5488_v9 = vpop.f32.mrb[21].mxu0 }
 0xc78   : > { %v4241_v11 = vadd.f32 %v5019_v8, %v4231_v1 }
 0xc7a   : > { %v4242_v12 = vmax.f32 %v4241_v11, 0.0 }
 0xc7c   : > { %5522 = vmatmul.mubr.f32.vlgmr.msra.gmra.mrb[22].mxu0 %v4242_v12  ;;  %5557 = vmatmul.mubr.f32.vlgmr.msra.gmra.mrb[42].mxu1 %v4242_v12 }
 0xc7d   : > { %5561 = vmatprep.mubr.msk.f32.mxu0 %vm1584_vm2, %v5036_v13 }
 0xd4f   : > { %v4325_v31 = vpop.f32.mrb[22].mxu0  ;;  %v4414_v15 = vpop.f32.mrb[42].mxu1 }
 0xd50   : > { %v5523_v17 = vpop.f32.mrb[23].mxu0  ;;  %v5558_v39 = vpop.f32.mrb[43].mxu1  ;;  %5559 = vmatprep.subr.mxu0 %v4414_v15 }
 0xd51   : > { %5560 = vmatpush3.msra.mxu0 %v4414_v15 }
 0xd52   : > { %5562 = vmatmul.mubr.msk.f32.vlgmr.msra.gmra.mrb[24].mxu0 %vm1584_vm2, %v5037_v16  ;;  %5564 = vmatprep.subr.mxu0 %v4325_v31 }
 0xd53   : > { %5565 = vmatpush3.msra.mxu0 %v4325_v31  ;;  %5566 = vmatprep.mubr.msk.f32.mxu0 %vm1584_vm2, %v4329_v18 }
 0xd54   : > { %6175 = vmatprep.subr.bf16.mxu0 %v6174_v19 }
 0xd5a   : > { %5567 = vmatmul.mubr.msk.f32.vlgmr.msra.gmra.mrb[24].mxu0 %vm1584_vm2, %v4330_v22 }
 0xd5b   : > { %6177 = vmatpush3.bf16.msra.mxu0 %v6174_v19 }
 0xd5c   : > { %6179 = vmatprep.subr.bf16.mxu0 %v6178_v23 }
 0xd5f   : > { %6181 = vmatpush3.bf16.msra.mxu0 %v6178_v23 }
 0xd60   : > { %6183 = vmatprep.subr.bf16.mxu0 %v6182_v26 }
 0xd63   : > { %6185 = vmatpush3.bf16.msra.mxu0 %v6182_v26 }
 0xd64   : > { %6187 = vmatprep.subr.bf16.mxu0 %v6186_v29 }
 0xd67   : > { %6189 = vmatpush3.bf16.msra.mxu0 %v6186_v29 }
 0xd68   : > { %6191 = vmatprep.subr.bf16.mxu0 %v6190_v32 }
 0xd6b   : > { %6193 = vmatpush3.bf16.msra.mxu0 %v6190_v32 }
 0xd6c   : > { %6195 = vmatprep.subr.bf16.mxu0 %v6194_v36 }
 0xd6f   : > { %6197 = vmatpush3.bf16.msra.mxu0 %v6194_v36 }
 0xd70   : > { %6199 = vmatprep.subr.bf16.mxu0 %v6198_v41 }
 0xd73   : > { %6201 = vmatpush3.bf16.msra.mxu0 %v6198_v41 }
 0xd74   : > { %6203 = vmatprep.subr.bf16.mxu0 %v6202_v44 }
 0xd77   : > { %6205 = vmatpush3.bf16.msra.mxu0 %v6202_v44 }
 0xe2d   : > { %v5568_v46 = vpop.f32.mrb[24].mxu0 }
 0xe2e   : > { %v4591_v47 = vadd.f32 %v5568_v46, %v5042_v45  ;;  %v4574_v49 = vpop.f32.mrb[25].mxu0 }
 0xe2f   : > { %v4590_v51 = vadd.f32 %v5042_v45, %v4574_v49 }
 0xe30   : > { %v4593_v53 = vmax.f32 %v4591_v47, 0.0 }
 0xe31   : > { %v4592_v52 = vmax.f32 %v4590_v51, 0.0 }
 0xe33   : > { %5601 = vmatprep.mubr.f32.mxu0 %v4592_v52 }
 0xe34   : > { %5602 = vmatmul.mubr.f32.vlgmr.msra.gmra.mrb[26].mxu0 %v4593_v53 }
 0xf07   : > { %v5603_v38 = vpop.f32.mrb[26].mxu0 }
 0xf08   : > { %v4692_v54 = vadd.f32 %v5603_v38, %v4618_v50  ;;  %v4686_v55 = vpop.f32.mrb[27].mxu0 }
 0xf09   : > { %v4687_v56 = vadd.f32 %v4686_v55, %v4618_v50 }
 0xf0a   : > { %v4696_v57 = vsub.f32 0.0, %v4692_v54 }
 0xf0b   : > { %v4695_v58 = vsub.f32 0.0, %v4687_v56 }
 0xf0c   : > { %v4699_v48 = vmul.f32 1.442695, %v4696_v57 }
 0xf0d   : > { %v4697_v59 = vmul.f32 1.442695, %v4695_v58 }
 0xf0e   : > { %6278 = vpow2.f32 %v4699_v48 }
 0xf0f   : > { %6280 = vpow2.f32 %v4697_v59 }
 0xf18   : > { %v6279_v60 = vpop.eup %6278 }
 0xf19   : > { %v6281_v61 = vpop.eup %6280  ;;  %v4702_v62 = vadd.f32 1.0, %v6279_v60 }
 0xf1a   : > { %v4701_v63 = vadd.f32 1.0, %v6281_v61 }
 0xf1b   : > { %6282 = vrcp.f32 %v4702_v62 }
 0xf1c   : > { %6284 = vrcp.f32 %v4701_v63 }
 0xf25   : > { %v6283_v3 = vpop.eup %6282 }
 0xf26   : > { %v6285_v4 = vpop.eup %6284  ;;  %4708 = vst.msk [vmem:[%s651_s4 + $0x8] sm:$0xff] %vm660_vm1, %v6283_v3 }
 0xf27   : > { %4707 = vst.msk [vmem:[%s651_s4] sm:$0xff] %vm660_vm1, %v6285_v4 }
 0xf28   : > { %6299 = shalt.err (!%p6296_p3)
}
 0xf29   : > { %s6300_s26 = scalar_lea.hbm %s7839_s24, 256  ;;  %s6304_s23 = scalar_lea.hbm %s7907_s21, 512 }
 0xf2a   : > { %p6301_p4 = scmp.ne.s32.totalorder %s7839_s24, %s6300_s26  ;;  %p6305_p9 = scmp.lt.u32.totalorder %s7839_s24, %s7907_s21 }
 0xf2b   : > { %p6306_p10 = scmp.lt.u32.totalorder %s6304_s23, %s6300_s26  ;;  %p6308_p12 = scmp.lt.u32.totalorder %s6300_s26, %s7839_s24 }
 0xf2c   : > { %p6302_p7 = pnand %p6301_p4, %p6508_p5 }
 0xf2d   : > { %p6307_p11 = por %p6306_p10, %p6305_p9 }
 0xf2e   : > { %p6303_p8 = pneg %p6302_p7 }
 0xf2f   : > { %p6309_p13 = por %p6308_p12, %p6307_p11 }
 0xf31   : > { %p6310_p0 = pnand %p6309_p13, %p6303_p8 }
 0xf33   : > { %6313 = shalt.err (!%p6310_p0)
}
 0xf34   : > { %s6355_s20 = smov 128   ;;  %s6356_s29 = smov 8  }
 0xf35   : > { %6232 = dma.vmem_to_hbm [thread:$0]  (%p6508_p5), %s7841_s0, 256, %s7839_s24, %s7845_s5, %s6355_s20, %s6355_s20, %s6356_s29  }
 0xf36 PF: > { %s7939_s4 = sld [smem:[#allocation6_spill]]  ;;  %p6238_p1 = scmp.ge.s32.totalorder %s6348_s28, 2 }
 0xf38   : > { %p6235_p2 = pnand %p6238_p1, %p6512_p6 }
 0xf3c   : > { %s4738_s3 = sand.u32 1, %s7939_s4  }
 0xf3d   : > { %s4739_s26 = scalar_lea.sflag [#allocation4], %s4738_s3 }
 0xf3e   : > { %6331 = dma.done.wait (!%p6235_p2), %s4739_s26, 256  }
 0xf3f   : > { %6333 = vsyncadd (!%p6235_p2), %s4739_s26, 4294967040  ;;  %s7941_s28 = sld [smem:[#allocation8_spill]]  ;;  %s7942_s23 = sld [smem:[#allocation7_spill]] }
 0xf40   : > { %s7943_s3 = sld [smem:[#allocation9_spill]]  ;;  %s7944_s26 = smov %s6340_s27 }
 0xf45   : > { %p33_p3 = scmp.ge.s32.totalorder %s7941_s28, 4   ;;  %s7945_s27 = smov %s7942_s23 }
 0xf47   :  { %35 = sbr.rel (!%p33_p3) target bundleno = 10 (0xa), region = 166 }
 0xf4e   :  { %4744 = vsyncpa [#allocation4], 1 }
 0xf4f   :  { %4746 = vsyncpa [#allocation4 + $0x1], 1 }

</bundles_post_ra>
